<compile_context>
chip_gen: v7x
topology: tpu7x:2x2x1
jax: 0.10.0
libtpu: 0.0.40
codegen_flags: <defaults>
</compile_context>

<pallas_src>
import functools
import math

import jax
import jax.numpy as jnp
from jax.experimental import pallas as pl
from jax.experimental.pallas import tpu as pltpu

NUM_CLASSES = 2


def _round_up(x, m):
    return (x + m - 1) // m * m


# ---------------------------------------------------------------------------
# Pallas kernels
# ---------------------------------------------------------------------------

def _mm_bias_act_kernel(a_ref, b_ref, bias_ref, o_ref, *, act):
    y = jnp.dot(a_ref[...], b_ref[...], preferred_element_type=jnp.float32)
    y = y + bias_ref[...]
    if act == "relu":
        y = jnp.maximum(y, 0.0)
    o_ref[...] = y.astype(o_ref.dtype)


def matmul_bias_act(a, b, bias, *, act=None, out_dtype=jnp.bfloat16,
                    tm_max=512):
    """y = act(a @ b + bias).  bf16 operands, fp32 accumulation.

    The full (K, N) weight and bias are held resident in VMEM; the grid is
    1-D over M tiles only (no K axis, no accumulator scratch needed).
    """
    M, K = a.shape
    K2, N = b.shape
    assert K == K2 and bias.shape == (N,)

    tm = min(tm_max, _round_up(M, 8))
    Mp = _round_up(M, tm)
    Kp = _round_up(K, 128)

    a = a.astype(jnp.bfloat16)
    b = b.astype(jnp.bfloat16)
    if (Mp, Kp) != (M, K):                       # skip pads when not needed
        a = jnp.pad(a, ((0, Mp - M), (0, Kp - K)))
    if Kp != K:
        b = jnp.pad(b, ((0, Kp - K), (0, 0)))
    bias2d = bias.reshape(1, N).astype(jnp.float32)

    out = pl.pallas_call(
        functools.partial(_mm_bias_act_kernel, act=act),
        out_shape=jax.ShapeDtypeStruct((Mp, N), out_dtype),
        grid=(Mp // tm,),
        in_specs=[
            pl.BlockSpec((tm, Kp), lambda i: (i, 0)),
            pl.BlockSpec((Kp, N), lambda i: (0, 0)),   # weight resident
            pl.BlockSpec((1, N), lambda i: (0, 0)),    # bias resident
        ],
        out_specs=pl.BlockSpec((tm, N), lambda i: (i, 0)),
        compiler_params=pltpu.CompilerParams(
            dimension_semantics=("parallel",)),
    )(a, b, bias2d)
    return out[:M]


def _window_reduce_kernel(x_ref, o_ref, *, op):
    x = x_ref[...].astype(jnp.float32)
    if op == "max":
        r = jnp.max(x, axis=0)
    else:                                        # "sum"  (LPPool p=1)
        r = jnp.sum(x, axis=0)
    o_ref[...] = r.astype(o_ref.dtype)


def window_reduce(stacked, op, out_dtype=jnp.bfloat16):
    """stacked: (W, R, C) -> (R, C), reducing over the leading window axis."""
    W, R, C = stacked.shape
    tr = min(512, _round_up(R, 8))
    Rp = _round_up(R, tr)
    if Rp != R:
        stacked = jnp.pad(stacked, ((0, 0), (0, Rp - R), (0, 0)))
    out = pl.pallas_call(
        functools.partial(_window_reduce_kernel, op=op),
        out_shape=jax.ShapeDtypeStruct((Rp, C), out_dtype),
        grid=(Rp // tr,),
        in_specs=[pl.BlockSpec((W, tr, C), lambda i: (0, i, 0))],
        out_specs=pl.BlockSpec((tr, C), lambda i: (i, 0)),
        compiler_params=pltpu.CompilerParams(
            dimension_semantics=("parallel",)),
    )(stacked)
    return out[:R]


def _fc_head_kernel(x_ref, w1_ref, b1_ref, w2_ref, b2_ref, o_ref):
    h = jnp.dot(x_ref[...], w1_ref[...], preferred_element_type=jnp.float32)
    h = h + b1_ref[...]
    h = 1.0 / (1.0 + jnp.exp(-h))                              # Sigmoid (EUP)
    y = jnp.dot(h.astype(w2_ref.dtype), w2_ref[...],
                preferred_element_type=jnp.float32) + b2_ref[...]
    o_ref[...] = y.astype(o_ref.dtype)


def fc_head(x, w1, b1, w2, b2):
    """Fused Linear(1344,256) -> Sigmoid -> Linear(256, num_classes)."""
    B, K1 = x.shape
    _, H = w1.shape
    _, N = w2.shape
    Bp = _round_up(B, 8)
    xp = x.astype(jnp.bfloat16)
    if Bp != B:
        xp = jnp.pad(xp, ((0, Bp - B), (0, 0)))
    out = pl.pallas_call(
        _fc_head_kernel,
        out_shape=jax.ShapeDtypeStruct((Bp, N), jnp.float32),
        grid=(1,),
        in_specs=[
            pl.BlockSpec((Bp, K1), lambda i: (0, 0)),
            pl.BlockSpec((K1, H), lambda i: (0, 0)),
            pl.BlockSpec((1, H), lambda i: (0, 0)),
            pl.BlockSpec((H, N), lambda i: (0, 0)),
            pl.BlockSpec((1, N), lambda i: (0, 0)),
        ],
        out_specs=pl.BlockSpec((Bp, N), lambda i: (0, 0)),
    )(xp, w1.astype(jnp.bfloat16), b1.reshape(1, H).astype(jnp.float32),
      w2.astype(jnp.bfloat16), b2.reshape(1, N).astype(jnp.float32))
    return out[:B]


# ---------------------------------------------------------------------------
# Conv / pool wrappers (indexing glue in JAX, compute in Pallas)
# ---------------------------------------------------------------------------

def _extract_patches(x, kh, kw, stride, pad):
    """x: (B,H,W,C) -> (B,Ho,Wo,kh*kw*C); feature order (ki, kj, c)."""
    if pad:
        x = jnp.pad(x, ((0, 0), (pad, pad), (pad, pad), (0, 0)))
    B, Hp, Wp, C = x.shape
    Ho = (Hp - kh) // stride + 1
    Wo = (Wp - kw) // stride + 1
    cols = []
    for i in range(kh):
        for j in range(kw):
            cols.append(x[:, i:i + stride * Ho:stride,
                          j:j + stride * Wo:stride, :])
    patches = jnp.stack(cols, axis=3)             # (B, Ho, Wo, kh*kw, C)
    return patches.reshape(B, Ho, Wo, kh * kw * C)


def conv2d_bias_act(x, wmat, bias, *, kh, kw, stride, pad, act):
    """Conv2d (+bias, +ReLU) via im2col + Pallas matmul with fused epilogue.

    wmat is already in matmul layout (kh*kw*Cin, Cout), bf16.
    """
    B = x.shape[0]
    patches = _extract_patches(x.astype(jnp.bfloat16), kh, kw, stride, pad)
    _, Ho, Wo, K = patches.shape
    a = patches.reshape(B * Ho * Wo, K)
    y = matmul_bias_act(a, wmat, bias, act=act, out_dtype=jnp.bfloat16)
    return y.reshape(B, Ho, Wo, wmat.shape[1])


def pool2x2(x, op):
    """Non-overlapping 2x2 / stride-2 pooling, floor mode (NHWC).

    'sum' == LPPool2d(norm_type=1), 'max' == MaxPool2d.  The 4 strided views
    together cover the input exactly once (no amplification).
    """
    B, H, W, C = x.shape
    H2, W2 = H // 2, W // 2
    x = x[:, :H2 * 2, :W2 * 2, :]
    views = [x[:, di::2, dj::2, :].reshape(B * H2 * W2, C)
             for di in (0, 1) for dj in (0, 1)]
    stacked = jnp.stack(views, axis=0)            # (4, B*H2*W2, C)
    return window_reduce(stacked, op).reshape(B, H2, W2, C)


# TODO(synk): adaptive average pools (layer4/5/6) run in plain JAX glue; the
# 4x4x64 feature map is too small to benefit from a dedicated Pallas kernel.
def adaptive_avg_pool_nhwc(x, out_size):
    """PyTorch AdaptiveAvgPool2d semantics on an NHWC input (fp32 output)."""
    B, H, W, C = x.shape
    x = x.astype(jnp.float32)
    rows = []
    for oh in range(out_size):
        hs, he = (oh * H) // out_size, -(-((oh + 1) * H) // out_size)
        cols = []
        for ow in range(out_size):
            ws, we = (ow * W) // out_size, -(-((ow + 1) * W) // out_size)
            cols.append(jnp.mean(x[:, hs:he, ws:we, :], axis=(1, 2)))
        rows.append(jnp.stack(cols, axis=1))      # (B, out_w, C)
    return jnp.stack(rows, axis=1)                # (B, out_h, out_w, C)


def _flatten_nchw(p):
    """NHWC -> NCHW flatten so the feature order matches torch reshape."""
    B = p.shape[0]
    return jnp.transpose(p, (0, 3, 1, 2)).reshape(B, -1)


# ---------------------------------------------------------------------------
# Parameters (deterministic synthetic init, PyTorch-default-style scaling)
# ---------------------------------------------------------------------------

def _uniform(key, shape, bound):
    return jax.random.uniform(key, shape, jnp.float32, -bound, bound)


def make_params(key):
    ks = jax.random.split(key, 10)

    def conv_p(kw_key, kb_key, cout, cin, k):
        fan_in = cin * k * k
        bound = 1.0 / math.sqrt(fan_in)
        w = _uniform(kw_key, (cout, cin, k, k), bound)        # torch layout
        # fold to matmul layout (kh*kw*Cin, Cout), feature order (ki, kj, c)
        wmat = jnp.transpose(w, (2, 3, 1, 0)).reshape(k * k * cin, cout)
        b = _uniform(kb_key, (cout,), bound)
        return wmat.astype(jnp.bfloat16), b

    def lin_p(kw_key, kb_key, nin, nout):
        bound = 1.0 / math.sqrt(nin)
        w = _uniform(kw_key, (nout, nin), bound)              # torch layout
        b = _uniform(kb_key, (nout,), bound)
        return jnp.transpose(w).astype(jnp.bfloat16), b       # (nin, nout)

    p = {}
    p["conv1_w"], p["conv1_b"] = conv_p(ks[0], ks[1], 32, 9, 11)
    p["conv2_w"], p["conv2_b"] = conv_p(ks[2], ks[3], 64, 32, 5)
    p["conv3_w"], p["conv3_b"] = conv_p(ks[4], ks[5], 64, 64, 3)
    p["fc1_w"], p["fc1_b"] = lin_p(ks[6], ks[7], (1 + 4 + 16) * 64, 256)
    p["fc2_w"], p["fc2_b"] = lin_p(ks[8], ks[9], 256, NUM_CLASSES)
    return p


# ---------------------------------------------------------------------------
# Forward
# ---------------------------------------------------------------------------

def convnet_v7_forward(params, x_nchw):
    x = jnp.transpose(x_nchw, (0, 2, 3, 1))                   # NCHW -> NHWC
    # layer1: Conv(9->32, k=11, s=4, p=10) + ReLU + LPPool2d(p=1, 2, 2)
    x = conv2d_bias_act(x, params["conv1_w"], params["conv1_b"],
                        kh=11, kw=11, stride=4, pad=10, act="relu")
    x = pool2x2(x, "sum")                                     # p=1 LP == sum
    # layer2: Conv(32->64, k=5, s=2, p=4) + ReLU + MaxPool2d(2, 2)
    x = conv2d_bias_act(x, params["conv2_w"], params["conv2_b"],
                        kh=5, kw=5, stride=2, pad=4, act="relu")
    x = pool2x2(x, "max")
    # layer3: Conv(64->64, k=3, s=1, p=1) + ReLU
    x = conv2d_bias_act(x, params["conv3_w"], params["conv3_b"],
                        kh=3, kw=3, stride=1, pad=1, act="relu")
    # layer4/5/6: adaptive average pools, concatenated in torch flatten order
    feats = jnp.concatenate(
        [_flatten_nchw(adaptive_avg_pool_nhwc(x, s)) for s in (1, 2, 4)],
        axis=1)                                               # (B, 21*64)
    # fc: Linear -> Sigmoid -> Linear, single fused Pallas call
    return fc_head(feats, params["fc1_w"], params["fc1_b"],
                   params["fc2_w"], params["fc2_b"])


if __name__ == "__main__":
    key = jax.random.PRNGKey(0)
    pkey, xkey = jax.random.split(key)
    params = make_params(pkey)

    # NCHW input, 9 channels.  Spatial 75 gives the feature-map sizes:
    # 75 -> conv1 22 -> lppool 11 -> conv2 8 -> maxpool 4 -> conv3 4,
    # so the adaptive pools (1,2,4) see a 4x4 map and the FC input is 21*64.
    x = jax.random.normal(xkey, (2, 9, 75, 75), jnp.float32)

    fwd = jax.jit(convnet_v7_forward)
    out = fwd(params, x)
    jax.block_until_ready(out)
    assert out.shape == (2, NUM_CLASSES) and out.dtype == jnp.float32
    print("KERNEL_OK")
</pallas_src>

<mosaic_0001>
module attributes {stable_mosaic.version = 11 : i64} {
  func.func @_mm_bias_act_kernel(%arg0: i32, %arg1: memref<512x1152xbf16, #tpu.memory_space<vmem>>, %arg2: memref<1152x32xbf16, #tpu.memory_space<vmem>>, %arg3: memref<1x32xf32, #tpu.memory_space<vmem>>, %arg4: memref<512x32xbf16, #tpu.memory_space<vmem>>) attributes {dimension_semantics = [#tpu.dimension_semantics<parallel>], iteration_bounds = array<i64: 2>, scalar_prefetch = 0 : i64, scratch_operands = 0 : i64, tpu.core_type = #tpu.core_type<tc>, window_params = [{transform_indices = @transform_0, window_bounds = array<i64: 512, 1152>}, {pipeline_mode = #tpu.pipeline_mode<synchronous>, transform_indices = @transform_1, window_bounds = array<i64: 1152, 32>}, {pipeline_mode = #tpu.pipeline_mode<synchronous>, transform_indices = @transform_2, window_bounds = array<i64: 1, 32>}, {transform_indices = @transform_3, window_bounds = array<i64: 512, 32>}]} {
    %c0 = arith.constant 0 : index
    %c0_0 = arith.constant 0 : index
    %0 = vector.load %arg1[%c0, %c0_0] : memref<512x1152xbf16, #tpu.memory_space<vmem>>, vector<512x1152xbf16>
    %c0_1 = arith.constant 0 : index
    %c0_2 = arith.constant 0 : index
    %1 = vector.load %arg2[%c0_1, %c0_2] : memref<1152x32xbf16, #tpu.memory_space<vmem>>, vector<1152x32xbf16>
    %cst = arith.constant dense<0.000000e+00> : vector<512x32xf32>
    %2 = tpu.matmul %0, %1, %cst {dimension_numbers = #tpu.dot_dimension_numbers<[1], [0], [0], [1], [0, 0, 1, 1], [], []>} : vector<512x1152xbf16>, vector<1152x32xbf16>, vector<512x32xf32> -> vector<512x32xf32>
    %c0_3 = arith.constant 0 : index
    %c0_4 = arith.constant 0 : index
    %3 = vector.load %arg3[%c0_3, %c0_4] : memref<1x32xf32, #tpu.memory_space<vmem>>, vector<1x32xf32>
    %4 = vector.broadcast %3 : vector<1x32xf32> to vector<512x32xf32>
    %5 = arith.addf %2, %4 : vector<512x32xf32>
    %cst_5 = arith.constant 0.000000e+00 : f32
    %6 = vector.broadcast %cst_5 : f32 to vector<512x32xf32>
    %7 = arith.maximumf %5, %6 : vector<512x32xf32>
    %8 = arith.truncf %7 : vector<512x32xf32> to vector<512x32xbf16>
    %c0_6 = arith.constant 0 : index
    %c0_7 = arith.constant 0 : index
    %9 = vector.load %arg4[%c0_6, %c0_7] : memref<512x32xbf16, #tpu.memory_space<vmem>>, vector<512x32xbf16>
    tpu.vector_store %arg4[%c0_6, %c0_7], %8 {strides = array<i32>} : memref<512x32xbf16, #tpu.memory_space<vmem>>, vector<512x32xbf16>,
    return
  }
  func.func @transform_0(%arg0: i32) -> (i32, i32) {
    %c0_i32 = arith.constant 0 : i32
    %c0_i32_0 = arith.constant 0 : i32
    return %arg0, %c0_i32 : i32, i32
  }
  func.func @transform_1(%arg0: i32) -> (i32, i32) {
    %c0_i32 = arith.constant 0 : i32
    %c0_i32_0 = arith.constant 0 : i32
    %c0_i32_1 = arith.constant 0 : i32
    return %c0_i32, %c0_i32_0 : i32, i32
  }
  func.func @transform_2(%arg0: i32) -> (i32, i32) {
    %c0_i32 = arith.constant 0 : i32
    %c0_i32_0 = arith.constant 0 : i32
    %c0_i32_1 = arith.constant 0 : i32
    return %c0_i32, %c0_i32_0 : i32, i32
  }
  func.func @transform_3(%arg0: i32) -> (i32, i32) {
    %c0_i32 = arith.constant 0 : i32
    %c0_i32_0 = arith.constant 0 : i32
    return %arg0, %c0_i32 : i32, i32
  }
}

module attributes {stable_mosaic.version = 11 : i64} {
  func.func @_window_reduce_kernel(%arg0: i32, %arg1: memref<4x248x32xbf16, #tpu.memory_space<vmem>>, %arg2: memref<248x32xbf16, #tpu.memory_space<vmem>>) attributes {dimension_semantics = [#tpu.dimension_semantics<parallel>], iteration_bounds = array<i64: 1>, scalar_prefetch = 0 : i64, scratch_operands = 0 : i64, tpu.core_type = #tpu.core_type<tc>, window_params = [{transform_indices = @transform_0, window_bounds = array<i64: 4, 248, 32>}, {transform_indices = @transform_1, window_bounds = array<i64: 248, 32>}]} {
    %c0 = arith.constant 0 : index
    %c0_0 = arith.constant 0 : index
    %c0_1 = arith.constant 0 : index
    %0 = vector.load %arg1[%c0, %c0_0, %c0_1] : memref<4x248x32xbf16, #tpu.memory_space<vmem>>, vector<4x248x32xbf16>
    %1 = arith.extf %0 : vector<4x248x32xbf16> to vector<4x248x32xf32>
    %cst = arith.constant dense<0.000000e+00> : vector<248x32xf32>
    %2 = vector.multi_reduction <add>, %1, %cst [0] : vector<4x248x32xf32> to vector<248x32xf32>
    %3 = arith.truncf %2 : vector<248x32xf32> to vector<248x32xbf16>
    %c0_2 = arith.constant 0 : index
    %c0_3 = arith.constant 0 : index
    %4 = vector.load %arg2[%c0_2, %c0_3] : memref<248x32xbf16, #tpu.memory_space<vmem>>, vector<248x32xbf16>
    tpu.vector_store %arg2[%c0_2, %c0_3], %3 {strides = array<i32>} : memref<248x32xbf16, #tpu.memory_space<vmem>>, vector<248x32xbf16>,
    return
  }
  func.func @transform_0(%arg0: i32) -> (i32, i32, i32) {
    %c0_i32 = arith.constant 0 : i32
    %c0_i32_0 = arith.constant 0 : i32
    %c0_i32_1 = arith.constant 0 : i32
    return %c0_i32, %arg0, %c0_i32_0 : i32, i32, i32
  }
  func.func @transform_1(%arg0: i32) -> (i32, i32) {
    %c0_i32 = arith.constant 0 : i32
    %c0_i32_0 = arith.constant 0 : i32
    return %arg0, %c0_i32 : i32, i32
  }
}

module attributes {stable_mosaic.version = 11 : i64} {
  func.func @_mm_bias_act_kernel(%arg0: i32, %arg1: memref<128x896xbf16, #tpu.memory_space<vmem>>, %arg2: memref<896x64xbf16, #tpu.memory_space<vmem>>, %arg3: memref<1x64xf32, #tpu.memory_space<vmem>>, %arg4: memref<128x64xbf16, #tpu.memory_space<vmem>>) attributes {dimension_semantics = [#tpu.dimension_semantics<parallel>], iteration_bounds = array<i64: 1>, scalar_prefetch = 0 : i64, scratch_operands = 0 : i64, tpu.core_type = #tpu.core_type<tc>, window_params = [{transform_indices = @transform_0, window_bounds = array<i64: 128, 896>}, {pipeline_mode = #tpu.pipeline_mode<synchronous>, transform_indices = @transform_1, window_bounds = array<i64: 896, 64>}, {pipeline_mode = #tpu.pipeline_mode<synchronous>, transform_indices = @transform_2, window_bounds = array<i64: 1, 64>}, {transform_indices = @transform_3, window_bounds = array<i64: 128, 64>}]} {
    %c0 = arith.constant 0 : index
    %c0_0 = arith.constant 0 : index
    %0 = vector.load %arg1[%c0, %c0_0] : memref<128x896xbf16, #tpu.memory_space<vmem>>, vector<128x896xbf16>
    %c0_1 = arith.constant 0 : index
    %c0_2 = arith.constant 0 : index
    %1 = vector.load %arg2[%c0_1, %c0_2] : memref<896x64xbf16, #tpu.memory_space<vmem>>, vector<896x64xbf16>
    %cst = arith.constant dense<0.000000e+00> : vector<128x64xf32>
    %2 = tpu.matmul %0, %1, %cst {dimension_numbers = #tpu.dot_dimension_numbers<[1], [0], [0], [1], [0, 0, 1, 1], [], []>} : vector<128x896xbf16>, vector<896x64xbf16>, vector<128x64xf32> -> vector<128x64xf32>
    %c0_3 = arith.constant 0 : index
    %c0_4 = arith.constant 0 : index
    %3 = vector.load %arg3[%c0_3, %c0_4] : memref<1x64xf32, #tpu.memory_space<vmem>>, vector<1x64xf32>
    %4 = vector.broadcast %3 : vector<1x64xf32> to vector<128x64xf32>
    %5 = arith.addf %2, %4 : vector<128x64xf32>
    %cst_5 = arith.constant 0.000000e+00 : f32
    %6 = vector.broadcast %cst_5 : f32 to vector<128x64xf32>
    %7 = arith.maximumf %5, %6 : vector<128x64xf32>
    %8 = arith.truncf %7 : vector<128x64xf32> to vector<128x64xbf16>
    %c0_6 = arith.constant 0 : index
    %c0_7 = arith.constant 0 : index
    %9 = vector.load %arg4[%c0_6, %c0_7] : memref<128x64xbf16, #tpu.memory_space<vmem>>, vector<128x64xbf16>
    tpu.vector_store %arg4[%c0_6, %c0_7], %8 {strides = array<i32>} : memref<128x64xbf16, #tpu.memory_space<vmem>>, vector<128x64xbf16>,
    return
  }
  func.func @transform_0(%arg0: i32) -> (i32, i32) {
    %c0_i32 = arith.constant 0 : i32
    %c0_i32_0 = arith.constant 0 : i32
    return %arg0, %c0_i32 : i32, i32
  }
  func.func @transform_1(%arg0: i32) -> (i32, i32) {
    %c0_i32 = arith.constant 0 : i32
    %c0_i32_0 = arith.constant 0 : i32
    %c0_i32_1 = arith.constant 0 : i32
    return %c0_i32, %c0_i32_0 : i32, i32
  }
  func.func @transform_2(%arg0: i32) -> (i32, i32) {
    %c0_i32 = arith.constant 0 : i32
    %c0_i32_0 = arith.constant 0 : i32
    %c0_i32_1 = arith.constant 0 : i32
    return %c0_i32, %c0_i32_0 : i32, i32
  }
  func.func @transform_3(%arg0: i32) -> (i32, i32) {
    %c0_i32 = arith.constant 0 : i32
    %c0_i32_0 = arith.constant 0 : i32
    return %arg0, %c0_i32 : i32, i32
  }
}

module attributes {stable_mosaic.version = 11 : i64} {
  func.func @_window_reduce_kernel(%arg0: i32, %arg1: memref<4x32x64xbf16, #tpu.memory_space<vmem>>, %arg2: memref<32x64xbf16, #tpu.memory_space<vmem>>) attributes {dimension_semantics = [#tpu.dimension_semantics<parallel>], iteration_bounds = array<i64: 1>, scalar_prefetch = 0 : i64, scratch_operands = 0 : i64, tpu.core_type = #tpu.core_type<tc>, window_params = [{transform_indices = @transform_0, window_bounds = array<i64: 4, 32, 64>}, {transform_indices = @transform_1, window_bounds = array<i64: 32, 64>}]} {
    %c0 = arith.constant 0 : index
    %c0_0 = arith.constant 0 : index
    %c0_1 = arith.constant 0 : index
    %0 = vector.load %arg1[%c0, %c0_0, %c0_1] : memref<4x32x64xbf16, #tpu.memory_space<vmem>>, vector<4x32x64xbf16>
    %1 = arith.extf %0 : vector<4x32x64xbf16> to vector<4x32x64xf32>
    %cst = arith.constant dense<0xFF800000> : vector<32x64xf32>
    %2 = vector.multi_reduction <maximumf>, %1, %cst [0] : vector<4x32x64xf32> to vector<32x64xf32>
    %3 = arith.truncf %2 : vector<32x64xf32> to vector<32x64xbf16>
    %c0_2 = arith.constant 0 : index
    %c0_3 = arith.constant 0 : index
    %4 = vector.load %arg2[%c0_2, %c0_3] : memref<32x64xbf16, #tpu.memory_space<vmem>>, vector<32x64xbf16>
    tpu.vector_store %arg2[%c0_2, %c0_3], %3 {strides = array<i32>} : memref<32x64xbf16, #tpu.memory_space<vmem>>, vector<32x64xbf16>,
    return
  }
  func.func @transform_0(%arg0: i32) -> (i32, i32, i32) {
    %c0_i32 = arith.constant 0 : i32
    %c0_i32_0 = arith.constant 0 : i32
    %c0_i32_1 = arith.constant 0 : i32
    return %c0_i32, %arg0, %c0_i32_0 : i32, i32, i32
  }
  func.func @transform_1(%arg0: i32) -> (i32, i32) {
    %c0_i32 = arith.constant 0 : i32
    %c0_i32_0 = arith.constant 0 : i32
    return %arg0, %c0_i32 : i32, i32
  }
}

module attributes {stable_mosaic.version = 11 : i64} {
  func.func @_mm_bias_act_kernel(%arg0: i32, %arg1: memref<32x640xbf16, #tpu.memory_space<vmem>>, %arg2: memref<640x64xbf16, #tpu.memory_space<vmem>>, %arg3: memref<1x64xf32, #tpu.memory_space<vmem>>, %arg4: memref<32x64xbf16, #tpu.memory_space<vmem>>) attributes {dimension_semantics = [#tpu.dimension_semantics<parallel>], iteration_bounds = array<i64: 1>, scalar_prefetch = 0 : i64, scratch_operands = 0 : i64, tpu.core_type = #tpu.core_type<tc>, window_params = [{transform_indices = @transform_0, window_bounds = array<i64: 32, 640>}, {pipeline_mode = #tpu.pipeline_mode<synchronous>, transform_indices = @transform_1, window_bounds = array<i64: 640, 64>}, {pipeline_mode = #tpu.pipeline_mode<synchronous>, transform_indices = @transform_2, window_bounds = array<i64: 1, 64>}, {transform_indices = @transform_3, window_bounds = array<i64: 32, 64>}]} {
    %c0 = arith.constant 0 : index
    %c0_0 = arith.constant 0 : index
    %0 = vector.load %arg1[%c0, %c0_0] : memref<32x640xbf16, #tpu.memory_space<vmem>>, vector<32x640xbf16>
    %c0_1 = arith.constant 0 : index
    %c0_2 = arith.constant 0 : index
    %1 = vector.load %arg2[%c0_1, %c0_2] : memref<640x64xbf16, #tpu.memory_space<vmem>>, vector<640x64xbf16>
    %cst = arith.constant dense<0.000000e+00> : vector<32x64xf32>
    %2 = tpu.matmul %0, %1, %cst {dimension_numbers = #tpu.dot_dimension_numbers<[1], [0], [0], [1], [0, 0, 1, 1], [], []>} : vector<32x640xbf16>, vector<640x64xbf16>, vector<32x64xf32> -> vector<32x64xf32>
    %c0_3 = arith.constant 0 : index
    %c0_4 = arith.constant 0 : index
    %3 = vector.load %arg3[%c0_3, %c0_4] : memref<1x64xf32, #tpu.memory_space<vmem>>, vector<1x64xf32>
    %4 = vector.broadcast %3 : vector<1x64xf32> to vector<32x64xf32>
    %5 = arith.addf %2, %4 : vector<32x64xf32>
    %cst_5 = arith.constant 0.000000e+00 : f32
    %6 = vector.broadcast %cst_5 : f32 to vector<32x64xf32>
    %7 = arith.maximumf %5, %6 : vector<32x64xf32>
    %8 = arith.truncf %7 : vector<32x64xf32> to vector<32x64xbf16>
    %c0_6 = arith.constant 0 : index
    %c0_7 = arith.constant 0 : index
    %9 = vector.load %arg4[%c0_6, %c0_7] : memref<32x64xbf16, #tpu.memory_space<vmem>>, vector<32x64xbf16>
    tpu.vector_store %arg4[%c0_6, %c0_7], %8 {strides = array<i32>} : memref<32x64xbf16, #tpu.memory_space<vmem>>, vector<32x64xbf16>,
    return
  }
  func.func @transform_0(%arg0: i32) -> (i32, i32) {
    %c0_i32 = arith.constant 0 : i32
    %c0_i32_0 = arith.constant 0 : i32
    return %arg0, %c0_i32 : i32, i32
  }
  func.func @transform_1(%arg0: i32) -> (i32, i32) {
    %c0_i32 = arith.constant 0 : i32
    %c0_i32_0 = arith.constant 0 : i32
    %c0_i32_1 = arith.constant 0 : i32
    return %c0_i32, %c0_i32_0 : i32, i32
  }
  func.func @transform_2(%arg0: i32) -> (i32, i32) {
    %c0_i32 = arith.constant 0 : i32
    %c0_i32_0 = arith.constant 0 : i32
    %c0_i32_1 = arith.constant 0 : i32
    return %c0_i32, %c0_i32_0 : i32, i32
  }
  func.func @transform_3(%arg0: i32) -> (i32, i32) {
    %c0_i32 = arith.constant 0 : i32
    %c0_i32_0 = arith.constant 0 : i32
    return %arg0, %c0_i32 : i32, i32
  }
}

module attributes {stable_mosaic.version = 11 : i64} {
  func.func @_fc_head_kernel(%arg0: i32, %arg1: memref<8x1344xbf16, #tpu.memory_space<vmem>>, %arg2: memref<1344x256xbf16, #tpu.memory_space<vmem>>, %arg3: memref<1x256xf32, #tpu.memory_space<vmem>>, %arg4: memref<256x2xbf16, #tpu.memory_space<vmem>>, %arg5: memref<1x2xf32, #tpu.memory_space<vmem>>, %arg6: memref<8x2xf32, #tpu.memory_space<vmem>>) attributes {dimension_semantics = [#tpu.dimension_semantics<arbitrary>], iteration_bounds = array<i64: 1>, scalar_prefetch = 0 : i64, scratch_operands = 0 : i64, tpu.core_type = #tpu.core_type<tc>, window_params = [{pipeline_mode = #tpu.pipeline_mode<synchronous>, transform_indices = @transform_0, window_bounds = array<i64: 8, 1344>}, {pipeline_mode = #tpu.pipeline_mode<synchronous>, transform_indices = @transform_1, window_bounds = array<i64: 1344, 256>}, {pipeline_mode = #tpu.pipeline_mode<synchronous>, transform_indices = @transform_2, window_bounds = array<i64: 1, 256>}, {pipeline_mode = #tpu.pipeline_mode<synchronous>, transform_indices = @transform_3, window_bounds = array<i64: 256, 2>}, {pipeline_mode = #tpu.pipeline_mode<synchronous>, transform_indices = @transform_4, window_bounds = array<i64: 1, 2>}, {pipeline_mode = #tpu.pipeline_mode<synchronous>, transform_indices = @transform_5, window_bounds = array<i64: 8, 2>}]} {
    %c0 = arith.constant 0 : index
    %c0_0 = arith.constant 0 : index
    %0 = vector.load %arg1[%c0, %c0_0] : memref<8x1344xbf16, #tpu.memory_space<vmem>>, vector<8x1344xbf16>
    %c0_1 = arith.constant 0 : index
    %c0_2 = arith.constant 0 : index
    %1 = vector.load %arg2[%c0_1, %c0_2] : memref<1344x256xbf16, #tpu.memory_space<vmem>>, vector<1344x256xbf16>
    %cst = arith.constant dense<0.000000e+00> : vector<8x256xf32>
    %2 = tpu.matmul %0, %1, %cst {dimension_numbers = #tpu.dot_dimension_numbers<[1], [0], [0], [1], [0, 0, 1, 1], [], []>} : vector<8x1344xbf16>, vector<1344x256xbf16>, vector<8x256xf32> -> vector<8x256xf32>
    %c0_3 = arith.constant 0 : index
    %c0_4 = arith.constant 0 : index
    %3 = vector.load %arg3[%c0_3, %c0_4] : memref<1x256xf32, #tpu.memory_space<vmem>>, vector<1x256xf32>
    %4 = vector.broadcast %3 : vector<1x256xf32> to vector<8x256xf32>
    %5 = arith.addf %2, %4 : vector<8x256xf32>
    %cst_5 = arith.constant 0.000000e+00 : f32
    %6 = vector.broadcast %cst_5 : f32 to vector<8x256xf32>
    %7 = arith.subf %6, %5 : vector<8x256xf32>
    %8 = math.exp %7 : vector<8x256xf32>
    %cst_6 = arith.constant 1.000000e+00 : f32
    %9 = vector.broadcast %cst_6 : f32 to vector<8x256xf32>
    %10 = arith.addf %9, %8 : vector<8x256xf32>
    %cst_7 = arith.constant 1.000000e+00 : f32
    %11 = vector.broadcast %cst_7 : f32 to vector<8x256xf32>
    %12 = arith.divf %11, %10 : vector<8x256xf32>
    %13 = arith.truncf %12 : vector<8x256xf32> to vector<8x256xbf16>
    %c0_8 = arith.constant 0 : index
    %c0_9 = arith.constant 0 : index
    %14 = vector.load %arg4[%c0_8, %c0_9] : memref<256x2xbf16, #tpu.memory_space<vmem>>, vector<256x2xbf16>
    %cst_10 = arith.constant dense<0.000000e+00> : vector<8x2xf32>
    %15 = tpu.matmul %13, %14, %cst_10 {dimension_numbers = #tpu.dot_dimension_numbers<[1], [0], [0], [1], [0, 0, 1, 1], [], []>} : vector<8x256xbf16>, vector<256x2xbf16>, vector<8x2xf32> -> vector<8x2xf32>
    %c0_11 = arith.constant 0 : index
    %c0_12 = arith.constant 0 : index
    %16 = vector.load %arg5[%c0_11, %c0_12] : memref<1x2xf32, #tpu.memory_space<vmem>>, vector<1x2xf32>
    %17 = vector.broadcast %16 : vector<1x2xf32> to vector<8x2xf32>
    %18 = arith.addf %15, %17 : vector<8x2xf32>
    %c0_13 = arith.constant 0 : index
    %c0_14 = arith.constant 0 : index
    %19 = vector.load %arg6[%c0_13, %c0_14] : memref<8x2xf32, #tpu.memory_space<vmem>>, vector<8x2xf32>
    tpu.vector_store %arg6[%c0_13, %c0_14], %18 {strides = array<i32>} : memref<8x2xf32, #tpu.memory_space<vmem>>, vector<8x2xf32>,
    return
  }
  func.func @transform_0(%arg0: i32) -> (i32, i32) {
    %c0_i32 = arith.constant 0 : i32
    %c0_i32_0 = arith.constant 0 : i32
    %c0_i32_1 = arith.constant 0 : i32
    return %c0_i32, %c0_i32_0 : i32, i32
  }
  func.func @transform_1(%arg0: i32) -> (i32, i32) {
    %c0_i32 = arith.constant 0 : i32
    %c0_i32_0 = arith.constant 0 : i32
    %c0_i32_1 = arith.constant 0 : i32
    return %c0_i32, %c0_i32_0 : i32, i32
  }
  func.func @transform_2(%arg0: i32) -> (i32, i32) {
    %c0_i32 = arith.constant 0 : i32
    %c0_i32_0 = arith.constant 0 : i32
    %c0_i32_1 = arith.constant 0 : i32
    return %c0_i32, %c0_i32_0 : i32, i32
  }
  func.func @transform_3(%arg0: i32) -> (i32, i32) {
    %c0_i32 = arith.constant 0 : i32
    %c0_i32_0 = arith.constant 0 : i32
    %c0_i32_1 = arith.constant 0 : i32
    return %c0_i32, %c0_i32_0 : i32, i32
  }
  func.func @transform_4(%arg0: i32) -> (i32, i32) {
    %c0_i32 = arith.constant 0 : i32
    %c0_i32_0 = arith.constant 0 : i32
    %c0_i32_1 = arith.constant 0 : i32
    return %c0_i32, %c0_i32_0 : i32, i32
  }
  func.func @transform_5(%arg0: i32) -> (i32, i32) {
    %c0_i32 = arith.constant 0 : i32
    %c0_i32_0 = arith.constant 0 : i32
    %c0_i32_1 = arith.constant 0 : i32
    return %c0_i32, %c0_i32_0 : i32, i32
  }
}

</mosaic_0001>

<bundles_post_ra>
// kernel: convnet_v7_forward.6
= control target key start
LH: loop header
LB: loop body
LE: loop exit
PB: predicated region body
PF: predicated region fallthrough
CT: control target
= control target key end

     0   :  { %s6003_s12 = smov 0   ;;  %s7238_s0 = inlined_call_operand.vmem [shape: bf16[1024,1152], index: 0, kind: input, shape index: {}]   ;;  %s7239_s1 = inlined_call_operand.vmem [shape: bf16[1152,32], index: 1, kind: input, shape index: {}]   ;;  %s7240_s2 = inlined_call_operand.vmem [shape: f32[1,32], index: 2, kind: input, shape index: {}]   ;;  %s7241_s3 = inlined_call_operand.vmem [shape: bf16[1024,32], index: 3, kind: output, shape index: {}]  }
   0x1 LB: > { %s4439_s13 = sadd.s32 4294967295, %s5980_s12   ;;  %p4443_p0 = scmp.ge.s32.totalorder %s5980_s12, 1  ;;  %s5980_s12 = sphi %s6003_s12, %s13_s12  }
   0x2   : > { %p139_p1 = scmp.lt.s32.totalorder %s5980_s12, 3 }
   0x4   : > { %p140_p2 = pnand %p4443_p0, %p139_p1 }
   0x6   : > { %143 = sbr.rel (%p140_p2) target bundleno = 870 (0x366), region = 32 }
   0xd   : > { %v5485_v0 = vld [vmem:[%s7239_s1] sm:$0xff]   ;;  %v5982_v1 = vmov 0   ;;  %v5487_v3 = vld [vmem:[%s7239_s1 + $0x8] sm:$0xff]   ;;  %v5489_v5 = vld [vmem:[%s7239_s1 + $0x10] sm:$0xff]   ;;  %s4444_s7 = sshll.u32 %s4439_s13, 6  ;;  %vm4318_vm0 = vcmask 257024  }
   0xe   : > { %2553 = vmatprep.subr.bf16.mxu1 %v5982_v1  ;;  %2842 = vmatprep.subr.bf16.mxu0 %v5982_v1  ;;  %v6019_v2 = vld [vmem:[%s7239_s1 + $0x80] sm:$0xff]   ;;  %v6029_v4 = vld [vmem:[%s7239_s1 + $0x88] sm:$0xff]   ;;  %v6040_v6 = vld [vmem:[%s7239_s1 + $0x90] sm:$0xff]   ;;  %p165_p3 = scmp.lt.s32.totalorder %s4444_s7, 127 }
   0xf   : > { %2554 = vmatpush1.bf16.msra.mxu1 %v5485_v0  ;;  %2843 = vmatpush1.bf16.msra.mxu0 %v6019_v2  ;;  %v5491_v7 = vld [vmem:[%s7239_s1 + $0x18] sm:$0xff]   ;;  %v5493_v9 = vld [vmem:[%s7239_s1 + $0x20] sm:$0xff]   ;;  %v5495_v11 = vld [vmem:[%s7239_s1 + $0x28] sm:$0xff]  }
  0x10   : > { %2555 = vmatprep.subr.bf16.mxu1 %v5982_v1  ;;  %2844 = vmatprep.subr.bf16.mxu0 %v5982_v1  ;;  %v6051_v8 = vld [vmem:[%s7239_s1 + $0x98] sm:$0xff]   ;;  %v6062_v10 = vld [vmem:[%s7239_s1 + $0xa0] sm:$0xff]   ;;  %v6075_v12 = vld [vmem:[%s7239_s1 + $0xa8] sm:$0xff]   ;;  %s7271_s7 = smov (!%p165_p3, %s4444_s7), 127 }
  0x11   : > { %v5497_v13 = vld [vmem:[%s7239_s1 + $0x30] sm:$0xff]   ;;  %v5499_v15 = vld [vmem:[%s7239_s1 + $0x38] sm:$0xff]   ;;  %s5475_s19 = smul.u32 36, %s7271_s7  ;;  %v5501_v17 = vld [vmem:[%s7239_s1 + $0x40] sm:$0xff]  }
  0x12   : > { %v6088_v14 = vld [vmem:[%s7239_s1 + $0xb0] sm:$0xff]   ;;  %v6100_v16 = vld [vmem:[%s7239_s1 + $0xb8] sm:$0xff]   ;;  %v6116_v18 = vld [vmem:[%s7239_s1 + $0xc0] sm:$0xff]  }
  0x13   : > { %2556 = vmatpush1.bf16.msra.mxu1 %v5487_v3  ;;  %2845 = vmatpush1.bf16.msra.mxu0 %v6029_v4  ;;  %s6109_s26 = scalar_lea.vmem %s7238_s0, %s5475_s19  ;;  %v5503_v20 = vld [vmem:[%s7239_s1 + $0x48] sm:$0xff]   ;;  %v5505_v23 = vld [vmem:[%s7239_s1 + $0x50] sm:$0xff]   ;;  %v5507_v25 = vld [vmem:[%s7239_s1 + $0x58] sm:$0xff]  }
  0x14   : > { %2557 = vmatprep.subr.bf16.mxu1 %v5982_v1  ;;  %2846 = vmatprep.subr.bf16.mxu0 %v5982_v1  ;;  %v5519_v19 = vld [vmem:[%s6109_s26 + $0x4] ss:$36 sps:$4 sm:$0xff]   ;;  %v5522_v21 = vld [vmem:[%s6109_s26 + $0xc] ss:$36 sps:$4 sm:$0xff]   ;;  %v6151_v26 = vld [vmem:[%s7239_s1 + $0xd8] sm:$0xff]  }
  0x15   : > { %v6129_v22 = vld [vmem:[%s7239_s1 + $0xc8] sm:$0xff]   ;;  %2585 = vmatprep.mubr.bf16.mxu1 %v5519_v19  ;;  %2874 = vmatprep.mubr.bf16.mxu0 %v5522_v21  ;;  %v6140_v24 = vld [vmem:[%s7239_s1 + $0xd0] sm:$0xff]   ;;  %v5509_v27 = vld [vmem:[%s7239_s1 + $0x60] sm:$0xff]  }
  0x16   : > { %v6162_v28 = vld [vmem:[%s7239_s1 + $0xe0] sm:$0xff]   ;;  %v5511_v29 = vld [vmem:[%s7239_s1 + $0x68] sm:$0xff]   ;;  %v5513_v31 = vld [vmem:[%s7239_s1 + $0x70] sm:$0xff]  }
  0x17   : > { %2558 = vmatpush1.bf16.msra.mxu1 %v5489_v5  ;;  %2847 = vmatpush1.bf16.msra.mxu0 %v6040_v6  ;;  %v6173_v30 = vld [vmem:[%s7239_s1 + $0xe8] sm:$0xff]   ;;  %v6184_v32 = vld [vmem:[%s7239_s1 + $0xf0] sm:$0xff]   ;;  %v5515_v33 = vld [vmem:[%s7239_s1 + $0x78] sm:$0xff]  }
  0x18   : > { %2559 = vmatprep.subr.bf16.mxu1 %v5982_v1  ;;  %2848 = vmatprep.subr.bf16.mxu0 %v5982_v1  ;;  %v6195_v34 = vld [vmem:[%s7239_s1 + $0xf8] sm:$0xff]   ;;  %v5517_v35 = vld [vmem:[%s6109_s26] ss:$36 sps:$4 sm:$0xff]   ;;  %v5520_v36 = vld [vmem:[%s6109_s26 + $0x8] ss:$36 sps:$4 sm:$0xff]  }
  0x19   : > { %v5523_v37 = vld [vmem:[%s7239_s1 + $0x100] sm:$0xff]   ;;  %v5525_v38 = vld [vmem:[%s6109_s26 + $0x4c] ss:$36 sps:$4 sm:$0xff]   ;;  %v5527_v39 = vld [vmem:[%s6109_s26 + $0x54] ss:$36 sps:$4 sm:$0xff]  }
  0x1a   : > { %v5524_v40 = vld [vmem:[%s7239_s1 + $0x108] sm:$0xff]   ;;  %v5530_v42 = vld [vmem:[%s6109_s26 + $0x50] ss:$36 sps:$4 sm:$0xff]   ;;  %v5535_v45 = vld [vmem:[%s6109_s26 + $0x9c] ss:$36 sps:$4 sm:$0xff]  }
  0x1b   : > { %2560 = vmatpush1.bf16.msra.mxu1 %v5491_v7  ;;  %2849 = vmatpush1.bf16.msra.mxu0 %v6051_v8  ;;  %v5529_v41 = vld [vmem:[%s6109_s26 + $0x48] ss:$36 sps:$4 sm:$0xff]   ;;  %v5533_v43 = vld [vmem:[%s6109_s26 + $0x94] ss:$36 sps:$4 sm:$0xff]   ;;  %v5539_v49 = vld [vmem:[%s7239_s1 + $0x120] sm:$0xff]  }
  0x1c   : > { %2561 = vmatprep.subr.bf16.mxu1 %v5982_v1  ;;  %2850 = vmatprep.subr.bf16.mxu0 %v5982_v1  ;;  %v5531_v44 = vld [vmem:[%s7239_s1 + $0x110] sm:$0xff]   ;;  %v5532_v46 = vld [vmem:[%s7239_s1 + $0x118] sm:$0xff]   ;;  %v5543_v51 = vld [vmem:[%s6109_s26 + $0xe4] ss:$36 sps:$4 sm:$0xff]  }
  0x1d   : > { %v5537_v47 = vld [vmem:[%s6109_s26 + $0x90] ss:$36 sps:$4 sm:$0xff]   ;;  %v5538_v48 = vld [vmem:[%s6109_s26 + $0x98] ss:$36 sps:$4 sm:$0xff]   ;;  %v5540_v52 = vld [vmem:[%s7239_s1 + $0x128] sm:$0xff]  }
  0x1e   : > { %v5541_v50 = vld [vmem:[%s6109_s26 + $0xdc] ss:$36 sps:$4 sm:$0xff]   ;;  %v5549_v55 = vld [vmem:[%s6109_s26 + $0x124] ss:$36 sps:$4 sm:$0xff]   ;;  %v5547_v56 = vld [vmem:[%s7239_s1 + $0x130] sm:$0xff]  }
  0x1f   : > { %2562 = vmatpush1.bf16.msra.mxu1 %v5493_v9  ;;  %2851 = vmatpush1.bf16.msra.mxu0 %v6062_v10  ;;  %v5545_v53 = vld [vmem:[%s6109_s26 + $0xd8] ss:$36 sps:$4 sm:$0xff]   ;;  %v5546_v54 = vld [vmem:[%s6109_s26 + $0xe0] ss:$36 sps:$4 sm:$0xff]   ;;  %v5551_v57 = vld [vmem:[%s6109_s26 + $0x12c] ss:$36 sps:$4 sm:$0xff]  }
  0x20   : > { %2563 = vmatprep.subr.bf16.mxu1 %v5982_v1  ;;  %2852 = vmatprep.subr.bf16.mxu0 %v5982_v1  ;;  %v5548_v58 = vld [vmem:[%s7239_s1 + $0x138] sm:$0xff]   ;;  %v5553_v59 = vld [vmem:[%s6109_s26 + $0x120] ss:$36 sps:$4 sm:$0xff]   ;;  %v5554_v60 = vld [vmem:[%s6109_s26 + $0x128] ss:$36 sps:$4 sm:$0xff]  }
  0x21   : > { %v5555_v61 = vld [vmem:[%s7239_s1 + $0x140] sm:$0xff]   ;;  %v5557_v62 = vld [vmem:[%s6109_s26 + $0x16c] ss:$36 sps:$4 sm:$0xff]   ;;  %v5559_v63 = vld [vmem:[%s6109_s26 + $0x174] ss:$36 sps:$4 sm:$0xff]  }
  0x22   : > { %v5556_v0 = vld [vmem:[%s7239_s1 + $0x148] sm:$0xff]   ;;  %v5562_v3 = vld [vmem:[%s6109_s26 + $0x170] ss:$36 sps:$4 sm:$0xff]   ;;  %v5564_v7 = vld [vmem:[%s7239_s1 + $0x158] sm:$0xff]  }
  0x23   : > { %2564 = vmatpush1.bf16.msra.mxu1 %v5495_v11  ;;  %2853 = vmatpush1.bf16.msra.mxu0 %v6075_v12  ;;  %v5563_v5 = vld [vmem:[%s7239_s1 + $0x150] sm:$0xff]   ;;  %v5570_v9 = vld [vmem:[%s6109_s26 + $0x1b8] ss:$36 sps:$4 sm:$0xff]  }
  0x24   : > { %2565 = vmatprep.subr.bf16.mxu1 %v5982_v1  ;;  %2854 = vmatprep.subr.bf16.mxu0 %v5982_v1  ;;  %v5573_v11 = vld [vmem:[%s6109_s26 + $0x1fc] ss:$36 sps:$4 sm:$0xff]   ;;  %v5583_v21 = vld [vmem:[%s6109_s26 + $0x10] ss:$36 sps:$4 sm:$0xff]  }
  0x25   : > { %v5580_v19 = vld [vmem:[%s7239_s1 + $0x178] sm:$0xff]  }
  0x27   : > { %2566 = vmatpush1.bf16.msra.mxu1 %v5497_v13  ;;  %2855 = vmatpush1.bf16.msra.mxu0 %v6088_v14  ;;  %v5572_v13 = vld [vmem:[%s7239_s1 + $0x168] sm:$0xff]  }
  0x28   : > { %2567 = vmatprep.subr.bf16.mxu1 %v5982_v1  ;;  %2856 = vmatprep.subr.bf16.mxu0 %v5982_v1 }
  0x2b   : > { %2568 = vmatpush1.bf16.msra.mxu1 %v5499_v15  ;;  %2857 = vmatpush1.bf16.msra.mxu0 %v6100_v16  ;;  %v5578_v15 = vld [vmem:[%s6109_s26 + $0x200] ss:$36 sps:$4 sm:$0xff]  }
  0x2c   : > { %2569 = vmatprep.subr.bf16.mxu1 %v5982_v1  ;;  %2858 = vmatprep.subr.bf16.mxu0 %v5982_v1 }
  0x2f   : > { %2570 = vmatpush1.bf16.msra.mxu1 %v5501_v17  ;;  %2859 = vmatpush1.bf16.msra.mxu0 %v6116_v18  ;;  %v5579_v17 = vld [vmem:[%s7239_s1 + $0x170] sm:$0xff]  }
  0x30   : > { %2571 = vmatprep.subr.bf16.mxu1 %v5982_v1  ;;  %2860 = vmatprep.subr.bf16.mxu0 %v5982_v1 }
  0x33   : > { %2572 = vmatpush1.bf16.msra.mxu1 %v5503_v20  ;;  %2861 = vmatpush1.bf16.msra.mxu0 %v6129_v22  ;;  %v5586_v20 = vld [vmem:[%s6109_s26 + $0x240] ss:$36 sps:$4 sm:$0xff]  }
  0x34   : > { %2573 = vmatprep.subr.bf16.mxu1 %v5982_v1  ;;  %2862 = vmatprep.subr.bf16.mxu0 %v5982_v1 }
  0x37   : > { %2574 = vmatpush1.bf16.msra.mxu1 %v5505_v23  ;;  %2863 = vmatpush1.bf16.msra.mxu0 %v6140_v24  ;;  %v5587_v23 = vld [vmem:[%s7239_s1 + $0x180] sm:$0xff]  }
  0x38   : > { %2575 = vmatprep.subr.bf16.mxu1 %v5982_v1  ;;  %2864 = vmatprep.subr.bf16.mxu0 %v5982_v1 }
  0x3b   : > { %2576 = vmatpush1.bf16.msra.mxu1 %v5507_v25  ;;  %2865 = vmatpush1.bf16.msra.mxu0 %v6151_v26  ;;  %v5592_v25 = vld [vmem:[%s6109_s26 + $0x288] ss:$36 sps:$4 sm:$0xff]  }
  0x3c   : > { %2577 = vmatprep.subr.bf16.mxu1 %v5982_v1  ;;  %2866 = vmatprep.subr.bf16.mxu0 %v5982_v1 }
  0x3f   : > { %2578 = vmatpush1.bf16.msra.mxu1 %v5509_v27  ;;  %2867 = vmatpush1.bf16.msra.mxu0 %v6162_v28  ;;  %v5593_v27 = vld [vmem:[%s6109_s26 + $0x58] ss:$36 sps:$4 sm:$0xff]  }
  0x40   : > { %2579 = vmatprep.subr.bf16.mxu1 %v5982_v1  ;;  %2868 = vmatprep.subr.bf16.mxu0 %v5982_v1 }
  0x43   : > { %2580 = vmatpush1.bf16.msra.mxu1 %v5511_v29  ;;  %2869 = vmatpush1.bf16.msra.mxu0 %v6173_v30  ;;  %v5596_v29 = vld [vmem:[%s6109_s26 + $0xa4] ss:$36 sps:$4 sm:$0xff]  }
  0x44   : > { %2581 = vmatprep.subr.bf16.mxu1 %v5982_v1  ;;  %2870 = vmatprep.subr.bf16.mxu0 %v5982_v1 }
  0x47   : > { %2582 = vmatpush1.bf16.msra.mxu1 %v5513_v31  ;;  %2871 = vmatpush1.bf16.msra.mxu0 %v6184_v32  ;;  %v5598_v31 = vld [vmem:[%s6109_s26 + $0x2d0] ss:$36 sps:$4 sm:$0xff]  }
  0x48   : > { %2583 = vmatprep.subr.bf16.mxu1 %v5982_v1  ;;  %2872 = vmatprep.subr.bf16.mxu0 %v5982_v1 }
  0x4b   : > { %2584 = vmatpush1.bf16.msra.mxu1 %v5515_v33  ;;  %2873 = vmatpush1.bf16.msra.mxu0 %v6195_v34  ;;  %v5599_v33 = vld [vmem:[%s6109_s26 + $0xa0] ss:$36 sps:$4 sm:$0xff]  }
  0x4c   : > { %5059 = vmatprep.subr.bf16.mxu1 %v5982_v1  ;;  %3131 = vmatprep.subr.bf16.mxu0 %v5982_v1 }
  0x4e   : > { %2586 = vmatmul.mubr.bf16.vlgmr.msra.gmra.mrb[0].mxu1 %v5517_v35  ;;  %2875 = vmatmul.mubr.bf16.vlgmr.msra.gmra.mrb[0].mxu0 %v5520_v36  ;;  %v5603_v35 = vld [vmem:[%s6109_s26 + $0xec] ss:$36 sps:$4 sm:$0xff]   ;;  %v5639_v36 = vld [vmem:[%s7239_s1 + $0x1a0] sm:$0xff]  }
  0x4f   : > { %5075 = vmatpush1.bf16.msra.mxu1 %v6019_v2  ;;  %3132 = vmatpush1.bf16.msra.mxu0 %v5523_v37  ;;  %v5561_v2 = vld [vmem:[%s6109_s26 + $0x168] ss:$36 sps:$4 sm:$0xff]  }
  0x50   : > { %2593 = vmatprep.mubr.bf16.mxu1 %v5525_v38  ;;  %3133 = vmatprep.subr.bf16.mxu0 %v5982_v1  ;;  %v5652_v37 = vld [vmem:[%s7239_s1 + $0x1a8] sm:$0xff]   ;;  %v5605_v38 = vld [vmem:[%s6109_s26 + $0x318] ss:$36 sps:$4 sm:$0xff]  }
  0x51   : > { %2882 = vmatprep.mubr.bf16.mxu0 %v5527_v39  ;;  %5060 = vmatprep.subr.bf16.mxu1 %v5982_v1  ;;  %v5606_v39 = vld [vmem:[%s6109_s26 + $0xe8] ss:$36 sps:$4 sm:$0xff]  }
  0x53   : > { %5076 = vmatpush1.bf16.msra.mxu1 %v6029_v4  ;;  %3134 = vmatpush1.bf16.msra.mxu0 %v5524_v40  ;;  %v5565_v4 = vld [vmem:[%s6109_s26 + $0x1b4] ss:$36 sps:$4 sm:$0xff]   ;;  %v5607_v40 = vld [vmem:[%s6109_s26 + $0x364] ss:$36 sps:$4 sm:$0xff]  }
  0x54   : > { %5061 = vmatprep.subr.bf16.mxu1 %v5982_v1  ;;  %3135 = vmatprep.subr.bf16.mxu0 %v5982_v1 }
  0x56   : > { %2594 = vmatmul.mubr.bf16.gmra.mrb[4].mxu1 %v5529_v41  ;;  %2883 = vmatmul.mubr.bf16.gmra.mrb[4].mxu0 %v5530_v42  ;;  %v5609_v41 = vld [vmem:[%s6109_s26 + $0x134] ss:$36 sps:$4 sm:$0xff]  }
  0x57   : > { %2601 = vmatprep.mubr.bf16.mxu1 %v5533_v43  ;;  %3136 = vmatpush1.bf16.msra.mxu0 %v5531_v44  ;;  %v5665_v42 = vld [vmem:[%s7239_s1 + $0x1b0] sm:$0xff]   ;;  %v5678_v43 = vld [vmem:[%s7239_s1 + $0x1b8] sm:$0xff]   ;;  %v5611_v44 = vld [vmem:[%s6109_s26 + $0x360] ss:$36 sps:$4 sm:$0xff]  }
  0x58   : > { %2890 = vmatprep.mubr.bf16.mxu0 %v5535_v45  ;;  %3137 = vmatprep.subr.bf16.mxu0 %v5982_v1  ;;  %v5612_v45 = vld [vmem:[%s6109_s26 + $0x130] ss:$36 sps:$4 sm:$0xff]  }
  0x59   : > { %5077 = vmatpush1.bf16.msra.mxu1 %v6040_v6  ;;  %v5567_v6 = vld [vmem:[%s6109_s26 + $0x1bc] ss:$36 sps:$4 sm:$0xff]  }
  0x5a   : > { %5062 = vmatprep.subr.bf16.mxu1 %v5982_v1 }
  0x5b   : > { %3138 = vmatpush1.bf16.msra.mxu0 %v5532_v46  ;;  %v5614_v46 = vld [vmem:[%s6109_s26 + $0x3ac] ss:$36 sps:$4 sm:$0xff]  }
  0x5c   : > { %3139 = vmatprep.subr.bf16.mxu0 %v5982_v1 }
  0x5d   : > { %5078 = vmatpush1.bf16.msra.mxu1 %v6051_v8  ;;  %v5569_v8 = vld [vmem:[%s6109_s26 + $0x1b0] ss:$36 sps:$4 sm:$0xff]  }
  0x5e   : > { %2602 = vmatmul.mubr.bf16.gmra.mrb[8].mxu1 %v5537_v47  ;;  %5063 = vmatprep.subr.bf16.mxu1 %v5982_v1  ;;  %v5616_v47 = vld [vmem:[%s6109_s26 + $0x17c] ss:$36 sps:$4 sm:$0xff]  }
  0x5f   : > { %2891 = vmatmul.mubr.bf16.gmra.mrb[8].mxu0 %v5538_v48  ;;  %2609 = vmatprep.mubr.bf16.mxu1 %v5541_v50  ;;  %v5691_v48 = vld [vmem:[%s7239_s1 + $0x1c0] sm:$0xff]   ;;  %v5618_v50 = vld [vmem:[%s6109_s26 + $0x3a8] ss:$36 sps:$4 sm:$0xff]  }
  0x60   : > { %3140 = vmatpush1.bf16.msra.mxu0 %v5539_v49  ;;  %2898 = vmatprep.mubr.bf16.mxu0 %v5543_v51  ;;  %v5704_v49 = vld [vmem:[%s7239_s1 + $0x1c8] sm:$0xff]   ;;  %v5619_v51 = vld [vmem:[%s6109_s26 + $0x178] ss:$36 sps:$4 sm:$0xff]  }
  0x61   : > { %3141 = vmatprep.subr.bf16.mxu0 %v5982_v1  ;;  %5079 = vmatpush1.bf16.msra.mxu1 %v6062_v10  ;;  %v5571_v10 = vld [vmem:[%s7239_s1 + $0x160] sm:$0xff]  }
  0x62   : > { %5064 = vmatprep.subr.bf16.mxu1 %v5982_v1 }
  0x64   : > { %3142 = vmatpush1.bf16.msra.mxu0 %v5540_v52  ;;  %v5620_v52 = vld [vmem:[%s6109_s26 + $0x3f4] ss:$36 sps:$4 sm:$0xff]  }
  0x65   : > { %3143 = vmatprep.subr.bf16.mxu0 %v5982_v1  ;;  %5080 = vmatpush1.bf16.msra.mxu1 %v6075_v12  ;;  %v5575_v12 = vld [vmem:[%s6109_s26 + $0x204] ss:$36 sps:$4 sm:$0xff]  }
  0x66   : > { %2610 = vmatmul.mubr.bf16.gmra.mrb[12].mxu1 %v5545_v53  ;;  %5065 = vmatprep.subr.bf16.mxu1 %v5982_v1  ;;  %v5622_v53 = vld [vmem:[%s6109_s26 + $0x1c4] ss:$36 sps:$4 sm:$0xff]  }
  0x67   : > { %2899 = vmatmul.mubr.bf16.gmra.mrb[12].mxu0 %v5546_v54  ;;  %2617 = vmatprep.mubr.bf16.mxu1 %v5549_v55  ;;  %v5717_v54 = vld [vmem:[%s7239_s1 + $0x1d0] sm:$0xff]  }
  0x68   : > { %3144 = vmatpush1.bf16.msra.mxu0 %v5547_v56  ;;  %2906 = vmatprep.mubr.bf16.mxu0 %v5551_v57  ;;  %v5624_v55 = vld [vmem:[%s6109_s26 + $0x3f0] ss:$36 sps:$4 sm:$0xff]   ;;  %v5625_v56 = vld [vmem:[%s6109_s26 + $0x1c0] ss:$36 sps:$4 sm:$0xff]  }
  0x69   : > { %3145 = vmatprep.subr.bf16.mxu0 %v5982_v1  ;;  %5081 = vmatpush1.bf16.msra.mxu1 %v6088_v14  ;;  %v5577_v14 = vld [vmem:[%s6109_s26 + $0x1f8] ss:$36 sps:$4 sm:$0xff]  }
  0x6a   : > { %5066 = vmatprep.subr.bf16.mxu1 %v5982_v1  ;;  %v5627_v57 = vld [vmem:[%s6109_s26 + $0x43c] ss:$36 sps:$4 sm:$0xff]  }
  0x6c   : > { %3146 = vmatpush1.bf16.msra.mxu0 %v5548_v58  ;;  %v5629_v58 = vld [vmem:[%s6109_s26 + $0x20c] ss:$36 sps:$4 sm:$0xff]  }
  0x6d   : > { %3147 = vmatprep.subr.bf16.mxu0 %v5982_v1  ;;  %5082 = vmatpush1.bf16.msra.mxu1 %v6100_v16  ;;  %v5581_v16 = vld [vmem:[%s6109_s26 + $0x244] ss:$36 sps:$4 sm:$0xff]  }
  0x6e   : > { %2618 = vmatmul.mubr.bf16.gmra.mrb[16].mxu1 %v5553_v59  ;;  %5067 = vmatprep.subr.bf16.mxu1 %v5982_v1  ;;  %v5730_v59 = vld [vmem:[%s7239_s1 + $0x1d8] sm:$0xff]  }
  0x6f   : > { %2907 = vmatmul.mubr.bf16.gmra.mrb[16].mxu0 %v5554_v60  ;;  %2625 = vmatprep.mubr.bf16.mxu1 %v5557_v62  ;;  %v5631_v60 = vld [vmem:[%s6109_s26 + $0x438] ss:$36 sps:$4 sm:$0xff]   ;;  %v5633_v62 = vld [vmem:[%s6109_s26 + $0x484] ss:$36 sps:$4 sm:$0xff]  }
  0x70   : > { %3148 = vmatpush1.bf16.msra.mxu0 %v5555_v61  ;;  %2914 = vmatprep.mubr.bf16.mxu0 %v5559_v63  ;;  %v5632_v61 = vld [vmem:[%s6109_s26 + $0x208] ss:$36 sps:$4 sm:$0xff]   ;;  %v5635_v63 = vld [vmem:[%s6109_s26 + $0x254] ss:$36 sps:$4 sm:$0xff]  }
  0x71   : > { %3149 = vmatprep.subr.bf16.mxu0 %v5982_v1  ;;  %5083 = vmatpush1.bf16.msra.mxu1 %v6116_v18  ;;  %v5585_v18 = vld [vmem:[%s6109_s26 + $0x14] ss:$36 sps:$4 sm:$0xff]  }
  0x72   : > { %5068 = vmatprep.subr.bf16.mxu1 %v5982_v1 }
  0x74   : > { %3150 = vmatpush1.bf16.msra.mxu0 %v5556_v0  ;;  %v5637_v0 = vld [vmem:[%s6109_s26 + $0x480] ss:$36 sps:$4 sm:$0xff]  }
  0x75   : > { %3151 = vmatprep.subr.bf16.mxu0 %v5982_v1  ;;  %5084 = vmatpush1.bf16.msra.mxu1 %v6129_v22  ;;  %v5588_v22 = vld [vmem:[%s6109_s26 + $0x28c] ss:$36 sps:$4 sm:$0xff]  }
  0x76   : > { %2626 = vmatmul.mubr.bf16.gmra.mrb[20].mxu1 %v5561_v2  ;;  %5069 = vmatprep.subr.bf16.mxu1 %v5982_v1  ;;  %v5638_v2 = vld [vmem:[%s6109_s26 + $0x250] ss:$36 sps:$4 sm:$0xff]  }
  0x77   : > { %2915 = vmatmul.mubr.bf16.gmra.mrb[20].mxu0 %v5562_v3  ;;  %2633 = vmatprep.mubr.bf16.mxu1 %v5565_v4  ;;  %v5640_v3 = vld [vmem:[%s6109_s26 + $0x4cc] ss:$36 sps:$4 sm:$0xff]   ;;  %v5642_v4 = vld [vmem:[%s6109_s26 + $0x29c] ss:$36 sps:$4 sm:$0xff]  }
  0x78   : > { %3152 = vmatpush1.bf16.msra.mxu0 %v5563_v5  ;;  %2922 = vmatprep.mubr.bf16.mxu0 %v5567_v6  ;;  %v5743_v5 = vld [vmem:[%s7239_s1 + $0x1e0] sm:$0xff]  }
  0x79   : > { %3153 = vmatprep.subr.bf16.mxu0 %v5982_v1  ;;  %5085 = vmatpush1.bf16.msra.mxu1 %v6140_v24  ;;  %v5590_v24 = vld [vmem:[%s6109_s26 + $0x5c] ss:$36 sps:$4 sm:$0xff]  }
  0x7a   : > { %5070 = vmatprep.subr.bf16.mxu1 %v5982_v1  ;;  %v6418_v6 = vld [vmem:[%s7239_s1 + $0x200] sm:$0xff]  }
  0x7c   : > { %3154 = vmatpush1.bf16.msra.mxu0 %v5564_v7  ;;  %v5644_v7 = vld [vmem:[%s6109_s26 + $0x4c8] ss:$36 sps:$4 sm:$0xff]  }
  0x7d   : > { %3155 = vmatprep.subr.bf16.mxu0 %v5982_v1  ;;  %5086 = vmatpush1.bf16.msra.mxu1 %v6151_v26  ;;  %v5600_v26 = vld [vmem:[%s7239_s1 + $0x188] sm:$0xff]  }
  0x7e   : > { %2634 = vmatmul.mubr.bf16.gmra.mrb[24].mxu1 %v5569_v8  ;;  %5071 = vmatprep.subr.bf16.mxu1 %v5982_v1  ;;  %v5645_v8 = vld [vmem:[%s6109_s26 + $0x298] ss:$36 sps:$4 sm:$0xff]  }
  0x7f   : > { %2923 = vmatmul.mubr.bf16.gmra.mrb[24].mxu0 %v5570_v9  ;;  %2641 = vmatprep.mubr.bf16.mxu1 %v5573_v11  ;;  %v5646_v9 = vld [vmem:[%s6109_s26 + $0x514] ss:$36 sps:$4 sm:$0xff]  }
  0x80   : > { %3156 = vmatpush1.bf16.msra.mxu0 %v5571_v10  ;;  %2930 = vmatprep.mubr.bf16.mxu0 %v5575_v12  ;;  %v5648_v10 = vld [vmem:[%s6109_s26 + $0x2e4] ss:$36 sps:$4 sm:$0xff]   ;;  %v5650_v11 = vld [vmem:[%s6109_s26 + $0x510] ss:$36 sps:$4 sm:$0xff]  }
  0x81   : > { %3157 = vmatprep.subr.bf16.mxu0 %v5982_v1  ;;  %5087 = vmatpush1.bf16.msra.mxu1 %v6162_v28  ;;  %v5594_v28 = vld [vmem:[%s6109_s26 + $0x2d4] ss:$36 sps:$4 sm:$0xff]   ;;  %v5651_v12 = vld [vmem:[%s6109_s26 + $0x2e0] ss:$36 sps:$4 sm:$0xff]  }
  0x82   : > { %5072 = vmatprep.subr.bf16.mxu1 %v5982_v1 }
  0x84   : > { %3158 = vmatpush1.bf16.msra.mxu0 %v5572_v13  ;;  %v5653_v13 = vld [vmem:[%s6109_s26 + $0x55c] ss:$36 sps:$4 sm:$0xff]  }
  0x85   : > { %3159 = vmatprep.subr.bf16.mxu0 %v5982_v1  ;;  %5088 = vmatpush1.bf16.msra.mxu1 %v6173_v30  ;;  %v5613_v30 = vld [vmem:[%s7239_s1 + $0x190] sm:$0xff]  }
  0x86   : > { %2642 = vmatmul.mubr.bf16.gmra.mrb[28].mxu1 %v5577_v14  ;;  %5073 = vmatprep.subr.bf16.mxu1 %v5982_v1  ;;  %v5655_v14 = vld [vmem:[%s6109_s26 + $0x32c] ss:$36 sps:$4 sm:$0xff]  }
  0x87   : > { %2931 = vmatmul.mubr.bf16.gmra.mrb[28].mxu0 %v5578_v15  ;;  %2649 = vmatprep.mubr.bf16.mxu1 %v5581_v16  ;;  %v5757_v15 = vld [vmem:[%s7239_s1 + $0x1e8] sm:$0xff]   ;;  %v5657_v16 = vld [vmem:[%s6109_s26 + $0x558] ss:$36 sps:$4 sm:$0xff]  }
  0x88   : > { %3160 = vmatpush1.bf16.msra.mxu0 %v5579_v17  ;;  %3163 = vmatprep.mubr.bf16.mxu0 %v5585_v18  ;;  %v5658_v17 = vld [vmem:[%s6109_s26 + $0x328] ss:$36 sps:$4 sm:$0xff]  }
  0x89   : > { %3161 = vmatprep.subr.bf16.mxu0 %v5982_v1  ;;  %5089 = vmatpush1.bf16.msra.mxu1 %v6184_v32  ;;  %v5626_v32 = vld [vmem:[%s7239_s1 + $0x198] sm:$0xff]   ;;  %v5659_v18 = vld [vmem:[%s6109_s26 + $0x5a4] ss:$36 sps:$4 sm:$0xff]  }
  0x8a   : > { %5074 = vmatprep.subr.bf16.mxu1 %v5982_v1 }
  0x8c   : > { %3162 = vmatpush1.bf16.msra.mxu0 %v5580_v19  ;;  %v5661_v19 = vld [vmem:[%s6109_s26 + $0x374] ss:$36 sps:$4 sm:$0xff]  }
  0x8d   : > { %3420 = vmatprep.subr.bf16.mxu0 %v5982_v1  ;;  %5090 = vmatpush1.bf16.msra.mxu1 %v6195_v34  ;;  %v5601_v34 = vld [vmem:[%s6109_s26 + $0x31c] ss:$36 sps:$4 sm:$0xff]  }
  0x8e   : > { %2650 = vmatmul.mubr.bf16.gmra.mrb[32].mxu1 %v5586_v20  ;;  %4979 = vmatprep.subr.bf16.mxu1 %v6418_v6  ;;  %v5663_v20 = vld [vmem:[%s6109_s26 + $0x5a0] ss:$36 sps:$4 sm:$0xff]  }
  0x8f   : > { %3164 = vmatmul.mubr.bf16.vlgmr.msra.gmra.mrb[0].mxu0 %v5583_v21  ;;  %2657 = vmatprep.mubr.bf16.mxu1 %v5588_v22  ;;  %v5664_v21 = vld [vmem:[%s6109_s26 + $0x370] ss:$36 sps:$4 sm:$0xff]  }
  0x90   : > { %3421 = vmatpush1.bf16.msra.mxu0 %v5587_v23  ;;  %3171 = vmatprep.mubr.bf16.mxu0 %v5590_v24  ;;  %v5666_v22 = vld [vmem:[%s6109_s26 + $0x5ec] ss:$36 sps:$4 sm:$0xff]   ;;  %v5668_v23 = vld [vmem:[%s6109_s26 + $0x3bc] ss:$36 sps:$4 sm:$0xff]  }
  0x91   : > { %3422 = vmatprep.subr.bf16.mxu0 %v5982_v1  ;;  %v5771_v24 = vld [vmem:[%s7239_s1 + $0x1f0] sm:$0xff]  }
  0x94   : > { %3423 = vmatpush1.bf16.msra.mxu0 %v5600_v26  ;;  %v5671_v26 = vld [vmem:[%s6109_s26 + $0x3b8] ss:$36 sps:$4 sm:$0xff]  }
  0x95   : > { %3424 = vmatprep.subr.bf16.mxu0 %v5982_v1 }
  0x96   : > { %2658 = vmatmul.mubr.bf16.gmra.mrb[36].mxu1 %v5592_v25  ;;  %v5670_v25 = vld [vmem:[%s6109_s26 + $0x5e8] ss:$36 sps:$4 sm:$0xff]  }
  0x97   : > { %3172 = vmatmul.mubr.bf16.gmra.mrb[4].mxu0 %v5593_v27  ;;  %2665 = vmatprep.mubr.bf16.mxu1 %v5594_v28  ;;  %v5672_v27 = vld [vmem:[%s6109_s26 + $0x634] ss:$36 sps:$4 sm:$0xff]   ;;  %v5674_v28 = vld [vmem:[%s6109_s26 + $0x404] ss:$36 sps:$4 sm:$0xff]  }
  0x98   : > { %3179 = vmatprep.mubr.bf16.mxu0 %v5596_v29  ;;  %3425 = vmatpush1.bf16.msra.mxu0 %v5613_v30  ;;  %v5676_v29 = vld [vmem:[%s6109_s26 + $0x630] ss:$36 sps:$4 sm:$0xff]   ;;  %v5677_v30 = vld [vmem:[%s6109_s26 + $0x400] ss:$36 sps:$4 sm:$0xff]  }
  0x99   : > { %3426 = vmatprep.subr.bf16.mxu0 %v5982_v1 }
  0x9c   : > { %3427 = vmatpush1.bf16.msra.mxu0 %v5626_v32  ;;  %v5681_v32 = vld [vmem:[%s6109_s26 + $0x44c] ss:$36 sps:$4 sm:$0xff]  }
  0x9d   : > { %3428 = vmatprep.subr.bf16.mxu0 %v5982_v1 }
  0x9e   : > { %2666 = vmatmul.mubr.bf16.gmra.mrb[40].mxu1 %v5598_v31  ;;  %v5679_v31 = vld [vmem:[%s6109_s26 + $0x67c] ss:$36 sps:$4 sm:$0xff]  }
  0x9f   : > { %3180 = vmatmul.mubr.bf16.gmra.mrb[8].mxu0 %v5599_v33  ;;  %2673 = vmatprep.mubr.bf16.mxu1 %v5601_v34  ;;  %v5683_v33 = vld [vmem:[%s6109_s26 + $0x678] ss:$36 sps:$4 sm:$0xff]   ;;  %v5684_v34 = vld [vmem:[%s6109_s26 + $0x448] ss:$36 sps:$4 sm:$0xff]  }
  0xa0   : > { %3187 = vmatprep.mubr.bf16.mxu0 %v5603_v35  ;;  %3429 = vmatpush1.bf16.msra.mxu0 %v5639_v36  ;;  %v5685_v35 = vld [vmem:[%s6109_s26 + $0x6c4] ss:$36 sps:$4 sm:$0xff]   ;;  %v5687_v36 = vld [vmem:[%s6109_s26 + $0x494] ss:$36 sps:$4 sm:$0xff]  }
  0xa1   : > { %3430 = vmatprep.subr.bf16.mxu0 %v5982_v1 }
  0xa4   : > { %3431 = vmatpush1.bf16.msra.mxu0 %v5652_v37  ;;  %v5689_v37 = vld [vmem:[%s6109_s26 + $0x6c0] ss:$36 sps:$4 sm:$0xff]  }
  0xa5   : > { %3432 = vmatprep.subr.bf16.mxu0 %v5982_v1 }
  0xa6   : > { %2674 = vmatmul.mubr.bf16.gmra.mrb[44].mxu1 %v5605_v38  ;;  %v5690_v38 = vld [vmem:[%s6109_s26 + $0x490] ss:$36 sps:$4 sm:$0xff]  }
  0xa7   : > { %3188 = vmatmul.mubr.bf16.gmra.mrb[12].mxu0 %v5606_v39  ;;  %2681 = vmatprep.mubr.bf16.mxu1 %v5607_v40  ;;  %v5692_v39 = vld [vmem:[%s6109_s26 + $0x70c] ss:$36 sps:$4 sm:$0xff]   ;;  %v5694_v40 = vld [vmem:[%s6109_s26 + $0x4dc] ss:$36 sps:$4 sm:$0xff]  }
  0xa8   : > { %3195 = vmatprep.mubr.bf16.mxu0 %v5609_v41  ;;  %3433 = vmatpush1.bf16.msra.mxu0 %v5665_v42  ;;  %v5696_v41 = vld [vmem:[%s6109_s26 + $0x708] ss:$36 sps:$4 sm:$0xff]   ;;  %v5697_v42 = vld [vmem:[%s6109_s26 + $0x4d8] ss:$36 sps:$4 sm:$0xff]  }
  0xa9   : > { %3434 = vmatprep.subr.bf16.mxu0 %v5982_v1 }
  0xac   : > { %3435 = vmatpush1.bf16.msra.mxu0 %v5678_v43  ;;  %v5698_v43 = vld [vmem:[%s6109_s26 + $0x754] ss:$36 sps:$4 sm:$0xff]  }
  0xad   : > { %3436 = vmatprep.subr.bf16.mxu0 %v5982_v1 }
  0xae   : > { %2682 = vmatmul.mubr.bf16.gmra.mrb[48].mxu1 %v5611_v44  ;;  %v5700_v44 = vld [vmem:[%s6109_s26 + $0x524] ss:$36 sps:$4 sm:$0xff]  }
  0xaf   : > { %3196 = vmatmul.mubr.bf16.gmra.mrb[16].mxu0 %v5612_v45  ;;  %2689 = vmatprep.mubr.bf16.mxu1 %v5614_v46  ;;  %v5702_v45 = vld [vmem:[%s6109_s26 + $0x750] ss:$36 sps:$4 sm:$0xff]   ;;  %v5703_v46 = vld [vmem:[%s6109_s26 + $0x520] ss:$36 sps:$4 sm:$0xff]  }
  0xb0   : > { %3203 = vmatprep.mubr.bf16.mxu0 %v5616_v47  ;;  %3437 = vmatpush1.bf16.msra.mxu0 %v5691_v48  ;;  %v5705_v47 = vld [vmem:[%s6109_s26 + $0x79c] ss:$36 sps:$4 sm:$0xff]   ;;  %v5707_v48 = vld [vmem:[%s6109_s26 + $0x56c] ss:$36 sps:$4 sm:$0xff]  }
  0xb1   : > { %3438 = vmatprep.subr.bf16.mxu0 %v5982_v1 }
  0xb4   : > { %3439 = vmatpush1.bf16.msra.mxu0 %v5704_v49 }
  0xb5   : > { %3440 = vmatprep.subr.bf16.mxu0 %v5982_v1 }
  0xb6   : > { %2690 = vmatmul.mubr.bf16.gmra.mrb[52].mxu1 %v5618_v50 }
  0xb7   : > { %3204 = vmatmul.mubr.bf16.gmra.mrb[20].mxu0 %v5619_v51  ;;  %2697 = vmatprep.mubr.bf16.mxu1 %v5620_v52  ;;  %v5709_v51 = vld [vmem:[%s6109_s26 + $0x798] ss:$36 sps:$4 sm:$0xff]  }
  0xb8   : > { %3211 = vmatprep.mubr.bf16.mxu0 %v5622_v53  ;;  %3441 = vmatpush1.bf16.msra.mxu0 %v5717_v54  ;;  %v5710_v53 = vld [vmem:[%s6109_s26 + $0x568] ss:$36 sps:$4 sm:$0xff]  }
  0xb9   : > { %3442 = vmatprep.subr.bf16.mxu0 %v5982_v1  ;;  %v5711_v54 = vld [vmem:[%s6109_s26 + $0x7e4] ss:$36 sps:$4 sm:$0xff]  }
  0xbc   : > { %3443 = vmatpush1.bf16.msra.mxu0 %v5730_v59  ;;  %v5715_v59 = vld [vmem:[%s6109_s26 + $0x7e0] ss:$36 sps:$4 sm:$0xff]  }
  0xbd   : > { %3444 = vmatprep.subr.bf16.mxu0 %v5982_v1 }
  0xbe   : > { %2698 = vmatmul.mubr.bf16.gmra.mrb[56].mxu1 %v5624_v55 }
  0xbf   : > { %3212 = vmatmul.mubr.bf16.gmra.mrb[24].mxu0 %v5625_v56  ;;  %2705 = vmatprep.mubr.bf16.mxu1 %v5627_v57  ;;  %v5713_v56 = vld [vmem:[%s6109_s26 + $0x5b4] ss:$36 sps:$4 sm:$0xff]  }
  0xc0   : > { %3219 = vmatprep.mubr.bf16.mxu0 %v5629_v58  ;;  %3445 = vmatpush1.bf16.msra.mxu0 %v5743_v5 }
  0xc1   : > { %3446 = vmatprep.subr.bf16.mxu0 %v5982_v1 }
  0xc4   : > { %3447 = vmatpush1.bf16.msra.mxu0 %v5757_v15  ;;  %v5729_v15 = vld [vmem:[%s6109_s26 + $0x640] ss:$36 sps:$4 sm:$0xff]  }
  0xc5   : > { %3448 = vmatprep.subr.bf16.mxu0 %v5982_v1 }
  0xc6   : > { %2706 = vmatmul.mubr.bf16.gmra.mrb[60].mxu1 %v5631_v60 }
  0xc7   : > { %3220 = vmatmul.mubr.bf16.gmra.mrb[28].mxu0 %v5632_v61  ;;  %2713 = vmatprep.mubr.bf16.mxu1 %v5633_v62  ;;  %v5716_v61 = vld [vmem:[%s6109_s26 + $0x5b0] ss:$36 sps:$4 sm:$0xff]  }
  0xc8   : > { %3227 = vmatprep.mubr.bf16.mxu0 %v5635_v63  ;;  %3449 = vmatpush1.bf16.msra.mxu0 %v5771_v24  ;;  %v5718_v62 = vld [vmem:[%s6109_s26 + $0x82c] ss:$36 sps:$4 sm:$0xff]  }
  0xc9   : > { %3450 = vmatprep.subr.bf16.mxu0 %v5982_v1  ;;  %v5784_v1 = vld [vmem:[%s7239_s1 + $0x1f8] sm:$0xff]   ;;  %v5739_v24 = vld [vmem:[%s6109_s26 + $0x24c] ss:$36 sps:$4 sm:$0xff]  }
  0xcc   : > { %3451 = vmatpush1.bf16.msra.mxu0 %v5784_v1  ;;  %v5745_v1 = vld [vmem:[%s6109_s26 + $0x294] ss:$36 sps:$4 sm:$0xff]  }
  0xce   : > { %2714 = vmatmul.mubr.bf16.gmra.mrb[64].mxu1 %v5637_v0  ;;  %v5720_v0 = vld [vmem:[%s6109_s26 + $0x5fc] ss:$36 sps:$4 sm:$0xff]  }
  0xcf   : > { %3228 = vmatmul.mubr.bf16.gmra.mrb[32].mxu0 %v5638_v2  ;;  %2721 = vmatprep.mubr.bf16.mxu1 %v5640_v3 }
  0xd0   : > { %3235 = vmatprep.mubr.bf16.mxu0 %v5642_v4  ;;  %v5722_v4 = vld [vmem:[%s6109_s26 + $0x828] ss:$36 sps:$4 sm:$0xff]  }
  0xd6   : > { %2722 = vmatmul.mubr.bf16.gmra.mrb[68].mxu1 %v5644_v7  ;;  %v5723_v7 = vld [vmem:[%s6109_s26 + $0x5f8] ss:$36 sps:$4 sm:$0xff]  }
  0xd7   : > { %3236 = vmatmul.mubr.bf16.gmra.mrb[36].mxu0 %v5645_v8  ;;  %2729 = vmatprep.mubr.bf16.mxu1 %v5646_v9  ;;  %v5724_v8 = vld [vmem:[%s6109_s26 + $0x874] ss:$36 sps:$4 sm:$0xff]  }
  0xd8   : > { %3243 = vmatprep.mubr.bf16.mxu0 %v5648_v10  ;;  %v5726_v10 = vld [vmem:[%s6109_s26 + $0x644] ss:$36 sps:$4 sm:$0xff]  }
  0xde   : > { %2730 = vmatmul.mubr.bf16.gmra.mrb[72].mxu1 %v5650_v11 }
  0xdf   : > { %3244 = vmatmul.mubr.bf16.gmra.mrb[40].mxu0 %v5651_v12  ;;  %2737 = vmatprep.mubr.bf16.mxu1 %v5653_v13  ;;  %v5728_v13 = vld [vmem:[%s6109_s26 + $0x870] ss:$36 sps:$4 sm:$0xff]  }
  0xe0   : > { %3251 = vmatprep.mubr.bf16.mxu0 %v5655_v14 }
  0xe6   : > { %2738 = vmatmul.mubr.bf16.gmra.mrb[76].mxu1 %v5657_v16  ;;  %v5731_v16 = vld [vmem:[%s6109_s26 + $0x8bc] ss:$36 sps:$4 sm:$0xff]  }
  0xe7   : > { %3252 = vmatmul.mubr.bf16.gmra.mrb[44].mxu0 %v5658_v17  ;;  %2745 = vmatprep.mubr.bf16.mxu1 %v5659_v18  ;;  %v5733_v18 = vld [vmem:[%s6109_s26 + $0x68c] ss:$36 sps:$4 sm:$0xff]  }
  0xe8   : > { %3259 = vmatprep.mubr.bf16.mxu0 %v5661_v19 }
  0xee   : > { %2746 = vmatmul.mubr.bf16.gmra.mrb[80].mxu1 %v5663_v20 }
  0xef   : > { %3260 = vmatmul.mubr.bf16.gmra.mrb[48].mxu0 %v5664_v21  ;;  %2753 = vmatprep.mubr.bf16.mxu1 %v5666_v22  ;;  %v5735_v21 = vld [vmem:[%s6109_s26 + $0x8b8] ss:$36 sps:$4 sm:$0xff]  }
  0xf0   : > { %3267 = vmatprep.mubr.bf16.mxu0 %v5668_v23  ;;  %v5736_v23 = vld [vmem:[%s6109_s26 + $0x688] ss:$36 sps:$4 sm:$0xff]  }
  0xf6   : > { %2754 = vmatmul.mubr.bf16.gmra.mrb[84].mxu1 %v5670_v25 }
  0xf7   : > { %3268 = vmatmul.mubr.bf16.gmra.mrb[52].mxu0 %v5671_v26  ;;  %2761 = vmatprep.mubr.bf16.mxu1 %v5672_v27  ;;  %v5740_v26 = vld [vmem:[%s6109_s26 + $0x6d4] ss:$36 sps:$4 sm:$0xff]  }
  0xf8   : > { %3275 = vmatprep.mubr.bf16.mxu0 %v5674_v28 }
  0xfe   : > { %2762 = vmatmul.mubr.bf16.gmra.mrb[88].mxu1 %v5676_v29  ;;  %v5737_v29 = vld [vmem:[%s6109_s26 + $0x248] ss:$36 sps:$4 sm:$0xff]  }
  0xff   : > { %3276 = vmatmul.mubr.bf16.gmra.mrb[56].mxu0 %v5677_v30  ;;  %2769 = vmatprep.mubr.bf16.mxu1 %v5679_v31  ;;  %v5742_v31 = vld [vmem:[%s6109_s26 + $0x6d0] ss:$36 sps:$4 sm:$0xff]  }
 0x100   : > { %3283 = vmatprep.mubr.bf16.mxu0 %v5681_v32 }
 0x106   : > { %2770 = vmatmul.mubr.bf16.gmra.mrb[92].mxu1 %v5683_v33  ;;  %v5747_v33 = vld [vmem:[%s6109_s26 + $0x71c] ss:$36 sps:$4 sm:$0xff]  }
 0x107   : > { %3284 = vmatmul.mubr.bf16.gmra.mrb[60].mxu0 %v5684_v34  ;;  %2777 = vmatprep.mubr.bf16.mxu1 %v5685_v35  ;;  %v5764_v34 = vld [vmem:[%s7239_s1 + $0x208] sm:$0xff]   ;;  %v5785_v35 = vld [vmem:[%s7239_s1 + $0x210] sm:$0xff]  }
 0x108   : > { %3291 = vmatprep.mubr.bf16.mxu0 %v5687_v36 }
 0x10e   : > { %2778 = vmatmul.mubr.bf16.gmra.mrb[96].mxu1 %v5689_v37 }
 0x10f   : > { %3292 = vmatmul.mubr.bf16.gmra.mrb[64].mxu0 %v5690_v38  ;;  %2785 = vmatprep.mubr.bf16.mxu1 %v5692_v39  ;;  %v5749_v38 = vld [vmem:[%s6109_s26 + $0x290] ss:$36 sps:$4 sm:$0xff]  }
 0x110   : > { %3299 = vmatprep.mubr.bf16.mxu0 %v5694_v40  ;;  %v5750_v40 = vld [vmem:[%s6109_s26 + $0x718] ss:$36 sps:$4 sm:$0xff]  }
 0x116   : > { %2786 = vmatmul.mubr.bf16.gmra.mrb[100].mxu1 %v5696_v41  ;;  %v5751_v41 = vld [vmem:[%s6109_s26 + $0x2dc] ss:$36 sps:$4 sm:$0xff]  }
 0x117   : > { %3300 = vmatmul.mubr.bf16.gmra.mrb[68].mxu0 %v5697_v42  ;;  %2793 = vmatprep.mubr.bf16.mxu1 %v5698_v43  ;;  %v5804_v43 = vld [vmem:[%s7239_s1 + $0x218] sm:$0xff]  }
 0x118   : > { %3307 = vmatprep.mubr.bf16.mxu0 %v5700_v44 }
 0x11e   : > { %2794 = vmatmul.mubr.bf16.gmra.mrb[104].mxu1 %v5702_v45  ;;  %v5823_v45 = vld [vmem:[%s7239_s1 + $0x220] sm:$0xff]  }
 0x11f   : > { %3308 = vmatmul.mubr.bf16.gmra.mrb[72].mxu0 %v5703_v46  ;;  %2801 = vmatprep.mubr.bf16.mxu1 %v5705_v47  ;;  %v5755_v47 = vld [vmem:[%s6109_s26 + $0x2d8] ss:$36 sps:$4 sm:$0xff]  }
 0x120   : > { %3315 = vmatprep.mubr.bf16.mxu0 %v5707_v48 }
 0x121   : > { %v6473_v49 = vpop.f32.mrb[0].mxu1 }
 0x122   : > { %v2589_v50 = vpop.f32.mrb[1].mxu1 }
 0x123   : > { %v6476_v52 = vpop.f32.mrb[2].mxu1  ;;  %v5756_v50 = vld [vmem:[%s6109_s26 + $0x760] ss:$36 sps:$4 sm:$0xff]  }
 0x124   : > { %v2592_v55 = vpop.f32.mrb[3].mxu1 }
 0x125   : > { %v5842_v55 = vld [vmem:[%s7239_s1 + $0x228] sm:$0xff]  }
 0x126   : > { %2802 = vmatmul.mubr.bf16.gmra.mrb[108].mxu1 %v5709_v51  ;;  %v5758_v51 = vld [vmem:[%s6109_s26 + $0x324] ss:$36 sps:$4 sm:$0xff]  }
 0x127   : > { %3316 = vmatmul.mubr.bf16.gmra.mrb[76].mxu0 %v5710_v53  ;;  %2809 = vmatprep.mubr.bf16.mxu1 %v5711_v54  ;;  %v5760_v54 = vld [vmem:[%s6109_s26 + $0x7ac] ss:$36 sps:$4 sm:$0xff]  }
 0x128   : > { %3323 = vmatprep.mubr.bf16.mxu0 %v5713_v56  ;;  %v5861_v56 = vld [vmem:[%s7239_s1 + $0x230] sm:$0xff]  }
 0x129   : > { %v6481_v57 = vpop.f32.mrb[4].mxu1 }
 0x12a   : > { %v2597_v58 = vpop.f32.mrb[5].mxu1 }
 0x12b   : > { %v6484_v60 = vpop.f32.mrb[6].mxu1  ;;  %v5762_v58 = vld [vmem:[%s6109_s26 + $0x320] ss:$36 sps:$4 sm:$0xff]  }
 0x12c   : > { %v2600_v63 = vpop.f32.mrb[7].mxu1 }
 0x12d   : > { %v5769_v63 = vld [vmem:[%s6109_s26 + $0x368] ss:$36 sps:$4 sm:$0xff]  }
 0x12e   : > { %2810 = vmatmul.mubr.bf16.gmra.mrb[112].mxu1 %v5715_v59  ;;  %v5763_v59 = vld [vmem:[%s6109_s26 + $0x7a8] ss:$36 sps:$4 sm:$0xff]  }
 0x12f   : > { %3324 = vmatmul.mubr.bf16.gmra.mrb[80].mxu0 %v5716_v61  ;;  %2817 = vmatprep.mubr.bf16.mxu1 %v5718_v62  ;;  %v5765_v61 = vld [vmem:[%s6109_s26 + $0x36c] ss:$36 sps:$4 sm:$0xff]   ;;  %v5767_v62 = vld [vmem:[%s6109_s26 + $0x7f4] ss:$36 sps:$4 sm:$0xff]  }
 0x130   : > { %3331 = vmatprep.mubr.bf16.mxu0 %v5720_v0  ;;  %v5770_v0 = vld [vmem:[%s6109_s26 + $0x7f0] ss:$36 sps:$4 sm:$0xff]  }
 0x131   : > { %v6489_v2 = vpop.f32.mrb[8].mxu1 }
 0x132   : > { %v2605_v3 = vpop.f32.mrb[9].mxu1 }
 0x133   : > { %v6492_v5 = vpop.f32.mrb[10].mxu1  ;;  %v5772_v3 = vld [vmem:[%s6109_s26 + $0x3b4] ss:$36 sps:$4 sm:$0xff]  }
 0x134   : > { %v2608_v9 = vpop.f32.mrb[11].mxu1 }
 0x135   : > { %v5778_v9 = vld [vmem:[%s6109_s26 + $0x3fc] ss:$36 sps:$4 sm:$0xff]  }
 0x136   : > { %2818 = vmatmul.mubr.bf16.gmra.mrb[116].mxu1 %v5722_v4  ;;  %v5774_v4 = vld [vmem:[%s6109_s26 + $0x83c] ss:$36 sps:$4 sm:$0xff]  }
 0x137   : > { %3332 = vmatmul.mubr.bf16.gmra.mrb[84].mxu0 %v5723_v7  ;;  %2825 = vmatprep.mubr.bf16.mxu1 %v5724_v8  ;;  %v5776_v7 = vld [vmem:[%s6109_s26 + $0x3b0] ss:$36 sps:$4 sm:$0xff]   ;;  %v5777_v8 = vld [vmem:[%s6109_s26 + $0x838] ss:$36 sps:$4 sm:$0xff]  }
 0x138   : > { %3339 = vmatprep.mubr.bf16.mxu0 %v5726_v10  ;;  %v5780_v10 = vld [vmem:[%s6109_s26 + $0x884] ss:$36 sps:$4 sm:$0xff]  }
 0x139   : > { %v6497_v11 = vpop.f32.mrb[12].mxu1 }
 0x13a   : > { %v2613_v12 = vpop.f32.mrb[13].mxu1 }
 0x13b   : > { %v6500_v14 = vpop.f32.mrb[14].mxu1  ;;  %v5880_v12 = vld [vmem:[%s7239_s1 + $0x238] sm:$0xff]  }
 0x13c   : > { %v2616_v17 = vpop.f32.mrb[15].mxu1 }
 0x13d   : > { %v5788_v17 = vld [vmem:[%s6109_s26 + $0x8cc] ss:$36 sps:$4 sm:$0xff]  }
 0x13e   : > { %2826 = vmatmul.mubr.bf16.gmra.mrb[120].mxu1 %v5728_v13  ;;  %v5782_v13 = vld [vmem:[%s6109_s26 + $0x3f8] ss:$36 sps:$4 sm:$0xff]  }
 0x13f   : > { %3340 = vmatmul.mubr.bf16.gmra.mrb[88].mxu0 %v5729_v15  ;;  %2833 = vmatprep.mubr.bf16.mxu1 %v5731_v16  ;;  %v5783_v15 = vld [vmem:[%s6109_s26 + $0x880] ss:$36 sps:$4 sm:$0xff]  }
 0x140   : > { %3347 = vmatprep.mubr.bf16.mxu0 %v5733_v18  ;;  %v5786_v16 = vld [vmem:[%s6109_s26 + $0x444] ss:$36 sps:$4 sm:$0xff]  }
 0x141   : > { %v6505_v19 = vpop.f32.mrb[16].mxu1  ;;  %v5790_v18 = vld [vmem:[%s6109_s26 + $0x440] ss:$36 sps:$4 sm:$0xff]  }
 0x142   : > { %v2621_v20 = vpop.f32.mrb[17].mxu1 }
 0x143   : > { %v6508_v22 = vpop.f32.mrb[18].mxu1  ;;  %v5791_v20 = vld [vmem:[%s6109_s26 + $0x8c8] ss:$36 sps:$4 sm:$0xff]  }
 0x144   : > { %v2624_v25 = vpop.f32.mrb[19].mxu1 }
 0x145   : > { %v5794_v25 = vld [vmem:[%s6109_s26 + $0x18] ss:$36 sps:$4 sm:$0xff]  }
 0x146   : > { %2834 = vmatmul.mubr.bf16.gmra.mrb[124].mxu1 %v5735_v21  ;;  %v5792_v21 = vld [vmem:[%s6109_s26 + $0x48c] ss:$36 sps:$4 sm:$0xff]  }
 0x147   : > { %3348 = vmatmul.mubr.bf16.gmra.mrb[92].mxu0 %v5736_v23  ;;  %2938 = vmatprep.mubr.bf16.mxu1 %v5739_v24  ;;  %v5796_v23 = vld [vmem:[%s6109_s26 + $0x1c] ss:$36 sps:$4 sm:$0xff]   ;;  %v5797_v24 = vld [vmem:[%s6109_s26 + $0x488] ss:$36 sps:$4 sm:$0xff]  }
 0x148   : > { %3355 = vmatprep.mubr.bf16.mxu0 %v5740_v26  ;;  %v5798_v26 = vld [vmem:[%s6109_s26 + $0x4d4] ss:$36 sps:$4 sm:$0xff]  }
 0x149   : > { %v6513_v27 = vpop.f32.mrb[20].mxu1 }
 0x14a   : > { %v2629_v28 = vpop.f32.mrb[21].mxu1 }
 0x14b   : > { %v6516_v30 = vpop.f32.mrb[22].mxu1  ;;  %v5800_v28 = vld [vmem:[%s6109_s26 + $0x64] ss:$36 sps:$4 sm:$0xff]  }
 0x14c   : > { %v2632_v32 = vpop.f32.mrb[23].mxu1 }
 0x14d   : > { %v5805_v32 = vld [vmem:[%s6109_s26 + $0x51c] ss:$36 sps:$4 sm:$0xff]  }
 0x14e   : > { %2939 = vmatmul.mubr.bf16.vlgmr.msra.gmra.mrb[32].mxu1 %v5737_v29  ;;  %v5802_v29 = vld [vmem:[%s6109_s26 + $0x4d0] ss:$36 sps:$4 sm:$0xff]  }
 0x14f   : > { %3356 = vmatmul.mubr.bf16.gmra.mrb[96].mxu0 %v5742_v31  ;;  %4980 = vmatpush3.bf16.msra.mxu1 %v6418_v6  ;;  %v5753_v6 = vld [vmem:[%s6109_s26 + $0x764] ss:$36 sps:$4 sm:$0xff]  }
 0x150   : > { %2946 = vmatprep.mubr.bf16.mxu1 %v5745_v1  ;;  %3363 = vmatprep.mubr.bf16.mxu0 %v5747_v33  ;;  %v5803_v31 = vld [vmem:[%s6109_s26 + $0x60] ss:$36 sps:$4 sm:$0xff]   ;;  %v5807_v1 = vld [vmem:[%s6109_s26 + $0xac] ss:$36 sps:$4 sm:$0xff]   ;;  %v5809_v33 = vld [vmem:[%s6109_s26 + $0x518] ss:$36 sps:$4 sm:$0xff]  }
 0x151   : > { %v6528_v36 = vpop.f32.mrb[24].mxu1  ;;  %4981 = vmatprep.subr.bf16.mxu1 %v5764_v34 }
 0x152   : > { %v2637_v37 = vpop.f32.mrb[25].mxu1 }
 0x153   : > { %v6531_v39 = vpop.f32.mrb[26].mxu1  ;;  %4982 = vmatpush3.bf16.msra.mxu1 %v5764_v34  ;;  %v5810_v34 = vld [vmem:[%s6109_s26 + $0xa8] ss:$36 sps:$4 sm:$0xff]   ;;  %v5813_v37 = vld [vmem:[%s6109_s26 + $0xf4] ss:$36 sps:$4 sm:$0xff]  }
 0x154   : > { %v2640_v42 = vpop.f32.mrb[27].mxu1  ;;  %4983 = vmatprep.subr.bf16.mxu1 %v5785_v35 }
 0x155   : > { %v5819_v42 = vld [vmem:[%s6109_s26 + $0x13c] ss:$36 sps:$4 sm:$0xff]  }
 0x156   : > { %2947 = vmatmul.mubr.bf16.gmra.mrb[36].mxu1 %v5749_v38  ;;  %v5815_v38 = vld [vmem:[%s6109_s26 + $0x560] ss:$36 sps:$4 sm:$0xff]  }
 0x157   : > { %3364 = vmatmul.mubr.bf16.gmra.mrb[100].mxu0 %v5750_v40  ;;  %2954 = vmatprep.mubr.bf16.mxu1 %v5751_v41  ;;  %v5816_v40 = vld [vmem:[%s6109_s26 + $0xf0] ss:$36 sps:$4 sm:$0xff]  }
 0x158   : > { %3371 = vmatprep.mubr.bf16.mxu0 %v5753_v6  ;;  %4984 = vmatpush3.bf16.msra.mxu1 %v5785_v35  ;;  %v5811_v35 = vld [vmem:[%s6109_s26 + $0x564] ss:$36 sps:$4 sm:$0xff]   ;;  %v5817_v41 = vld [vmem:[%s6109_s26 + $0x5ac] ss:$36 sps:$4 sm:$0xff]  }
 0x159   : > { %v6539_v44 = vpop.f32.mrb[28].mxu1  ;;  %4985 = vmatprep.subr.bf16.mxu1 %v5804_v43  ;;  %v5821_v6 = vld [vmem:[%s6109_s26 + $0x5a8] ss:$36 sps:$4 sm:$0xff]  }
 0x15a   : > { %v2645_v46 = vpop.f32.mrb[29].mxu1 }
 0x15b   : > { %v6545_v48 = vpop.f32.mrb[30].mxu1  ;;  %v5826_v46 = vld [vmem:[%s6109_s26 + $0x184] ss:$36 sps:$4 sm:$0xff]  }
 0x15c   : > { %v2648_v53 = vpop.f32.mrb[31].mxu1  ;;  %4986 = vmatpush3.bf16.msra.mxu1 %v5804_v43  ;;  %v5822_v43 = vld [vmem:[%s6109_s26 + $0x138] ss:$36 sps:$4 sm:$0xff]  }
 0x15d   : > { %4987 = vmatprep.subr.bf16.mxu1 %v5823_v45  ;;  %v5832_v53 = vld [vmem:[%s6109_s26 + $0x1cc] ss:$36 sps:$4 sm:$0xff]  }
 0x15e   : > { %2955 = vmatmul.mubr.bf16.gmra.mrb[40].mxu1 %v5755_v47  ;;  %v5828_v47 = vld [vmem:[%s6109_s26 + $0x5f0] ss:$36 sps:$4 sm:$0xff]  }
 0x15f   : > { %3372 = vmatmul.mubr.bf16.gmra.mrb[104].mxu0 %v5756_v50  ;;  %2962 = vmatprep.mubr.bf16.mxu1 %v5758_v51  ;;  %v5829_v50 = vld [vmem:[%s6109_s26 + $0x180] ss:$36 sps:$4 sm:$0xff]  }
 0x160   : > { %3379 = vmatprep.mubr.bf16.mxu0 %v5760_v54  ;;  %4988 = vmatpush3.bf16.msra.mxu1 %v5823_v45  ;;  %v5824_v45 = vld [vmem:[%s6109_s26 + $0x5f4] ss:$36 sps:$4 sm:$0xff]   ;;  %v5830_v51 = vld [vmem:[%s6109_s26 + $0x63c] ss:$36 sps:$4 sm:$0xff]  }
 0x161   : > { %4989 = vmatprep.subr.bf16.mxu1 %v5842_v55  ;;  %v5834_v54 = vld [vmem:[%s6109_s26 + $0x638] ss:$36 sps:$4 sm:$0xff]  }
 0x164   : > { %4990 = vmatpush3.bf16.msra.mxu1 %v5842_v55  ;;  %v5835_v55 = vld [vmem:[%s6109_s26 + $0x1c8] ss:$36 sps:$4 sm:$0xff]  }
 0x165   : > { %4991 = vmatprep.subr.bf16.mxu1 %v5861_v56 }
 0x166   : > { %2963 = vmatmul.mubr.bf16.gmra.mrb[44].mxu1 %v5762_v58  ;;  %v5838_v58 = vld [vmem:[%s6109_s26 + $0x214] ss:$36 sps:$4 sm:$0xff]  }
 0x167   : > { %3380 = vmatmul.mubr.bf16.gmra.mrb[108].mxu0 %v5763_v59  ;;  %2970 = vmatprep.mubr.bf16.mxu1 %v5765_v61  ;;  %v5840_v59 = vld [vmem:[%s6109_s26 + $0x680] ss:$36 sps:$4 sm:$0xff]   ;;  %v5841_v61 = vld [vmem:[%s6109_s26 + $0x210] ss:$36 sps:$4 sm:$0xff]  }
 0x168   : > { %3387 = vmatprep.mubr.bf16.mxu0 %v5767_v62  ;;  %4992 = vmatpush3.bf16.msra.mxu1 %v5861_v56  ;;  %v5836_v56 = vld [vmem:[%s6109_s26 + $0x684] ss:$36 sps:$4 sm:$0xff]   ;;  %v5843_v62 = vld [vmem:[%s6109_s26 + $0x6cc] ss:$36 sps:$4 sm:$0xff]  }
 0x169   : > { %4993 = vmatprep.subr.bf16.mxu1 %v5880_v12 }
 0x16c   : > { %4994 = vmatpush3.bf16.msra.mxu1 %v5880_v12  ;;  %v5857_v12 = vld [vmem:[%s6109_s26 + $0x2ec] ss:$36 sps:$4 sm:$0xff]  }
 0x16e   : > { %2971 = vmatmul.mubr.bf16.gmra.mrb[48].mxu1 %v5769_v63  ;;  %v5845_v63 = vld [vmem:[%s6109_s26 + $0x25c] ss:$36 sps:$4 sm:$0xff]  }
 0x16f   : > { %3388 = vmatmul.mubr.bf16.gmra.mrb[112].mxu0 %v5770_v0  ;;  %2978 = vmatprep.mubr.bf16.mxu1 %v5772_v3  ;;  %v5847_v0 = vld [vmem:[%s6109_s26 + $0x6c8] ss:$36 sps:$4 sm:$0xff]   ;;  %v5848_v3 = vld [vmem:[%s6109_s26 + $0x258] ss:$36 sps:$4 sm:$0xff]  }
 0x170   : > { %3395 = vmatprep.mubr.bf16.mxu0 %v5774_v4  ;;  %v5849_v4 = vld [vmem:[%s6109_s26 + $0x714] ss:$36 sps:$4 sm:$0xff]  }
 0x176   : > { %2979 = vmatmul.mubr.bf16.gmra.mrb[52].mxu1 %v5776_v7  ;;  %v5851_v7 = vld [vmem:[%s6109_s26 + $0x2a4] ss:$36 sps:$4 sm:$0xff]  }
 0x177   : > { %3396 = vmatmul.mubr.bf16.gmra.mrb[116].mxu0 %v5777_v8  ;;  %2986 = vmatprep.mubr.bf16.mxu1 %v5778_v9  ;;  %v5853_v8 = vld [vmem:[%s6109_s26 + $0x710] ss:$36 sps:$4 sm:$0xff]   ;;  %v5854_v9 = vld [vmem:[%s6109_s26 + $0x2a0] ss:$36 sps:$4 sm:$0xff]  }
 0x178   : > { %3403 = vmatprep.mubr.bf16.mxu0 %v5780_v10  ;;  %v5855_v10 = vld [vmem:[%s6109_s26 + $0x75c] ss:$36 sps:$4 sm:$0xff]  }
 0x17e   : > { %2987 = vmatmul.mubr.bf16.gmra.mrb[56].mxu1 %v5782_v13  ;;  %v5859_v13 = vld [vmem:[%s6109_s26 + $0x758] ss:$36 sps:$4 sm:$0xff]  }
 0x17f   : > { %3404 = vmatmul.mubr.bf16.gmra.mrb[120].mxu0 %v5783_v15  ;;  %2994 = vmatprep.mubr.bf16.mxu1 %v5786_v16  ;;  %v5860_v15 = vld [vmem:[%s6109_s26 + $0x2e8] ss:$36 sps:$4 sm:$0xff]  }
 0x180   : > { %3411 = vmatprep.mubr.bf16.mxu0 %v5788_v17  ;;  %v5862_v16 = vld [vmem:[%s6109_s26 + $0x7a4] ss:$36 sps:$4 sm:$0xff]   ;;  %v5864_v17 = vld [vmem:[%s6109_s26 + $0x334] ss:$36 sps:$4 sm:$0xff]  }
 0x186   : > { %2995 = vmatmul.mubr.bf16.gmra.mrb[60].mxu1 %v5790_v18  ;;  %v5866_v18 = vld [vmem:[%s6109_s26 + $0x7a0] ss:$36 sps:$4 sm:$0xff]  }
 0x187   : > { %3412 = vmatmul.mubr.bf16.gmra.mrb[124].mxu0 %v5791_v20  ;;  %3002 = vmatprep.mubr.bf16.mxu1 %v5792_v21  ;;  %v5867_v20 = vld [vmem:[%s6109_s26 + $0x330] ss:$36 sps:$4 sm:$0xff]  }
 0x188   : > { %3452 = vmatprep.mubr.bf16.mxu0 %v5796_v23  ;;  %v5868_v21 = vld [vmem:[%s6109_s26 + $0x7ec] ss:$36 sps:$4 sm:$0xff]   ;;  %v5870_v23 = vld [vmem:[%s6109_s26 + $0x37c] ss:$36 sps:$4 sm:$0xff]  }
 0x18e   : > { %3003 = vmatmul.mubr.bf16.gmra.mrb[64].mxu1 %v5797_v24  ;;  %v5872_v24 = vld [vmem:[%s6109_s26 + $0x7e8] ss:$36 sps:$4 sm:$0xff]  }
 0x18f   : > { %3453 = vmatmul.mubr.bf16.vlgmr.msra.gmra.mrb[0].mxu0 %v5794_v25  ;;  %3010 = vmatprep.mubr.bf16.mxu1 %v5798_v26  ;;  %v5873_v25 = vld [vmem:[%s6109_s26 + $0x378] ss:$36 sps:$4 sm:$0xff]  }
 0x190   : > { %3460 = vmatprep.mubr.bf16.mxu0 %v5800_v28  ;;  %v5874_v26 = vld [vmem:[%s6109_s26 + $0x834] ss:$36 sps:$4 sm:$0xff]   ;;  %v5876_v28 = vld [vmem:[%s6109_s26 + $0x3c4] ss:$36 sps:$4 sm:$0xff]  }
 0x196   : > { %3011 = vmatmul.mubr.bf16.gmra.mrb[68].mxu1 %v5802_v29  ;;  %v5878_v29 = vld [vmem:[%s6109_s26 + $0x830] ss:$36 sps:$4 sm:$0xff]  }
 0x197   : > { %3461 = vmatmul.mubr.bf16.gmra.mrb[4].mxu0 %v5803_v31  ;;  %3018 = vmatprep.mubr.bf16.mxu1 %v5805_v32  ;;  %v5879_v31 = vld [vmem:[%s6109_s26 + $0x3c0] ss:$36 sps:$4 sm:$0xff]  }
 0x198   : > { %3468 = vmatprep.mubr.bf16.mxu0 %v5807_v1  ;;  %v5881_v32 = vld [vmem:[%s6109_s26 + $0x87c] ss:$36 sps:$4 sm:$0xff]   ;;  %v5883_v1 = vld [vmem:[%s6109_s26 + $0x40c] ss:$36 sps:$4 sm:$0xff]  }
 0x19e   : > { %3019 = vmatmul.mubr.bf16.gmra.mrb[72].mxu1 %v5809_v33  ;;  %v5885_v33 = vld [vmem:[%s6109_s26 + $0x878] ss:$36 sps:$4 sm:$0xff]  }
 0x19f   : > { %3469 = vmatmul.mubr.bf16.gmra.mrb[8].mxu0 %v5810_v34  ;;  %3026 = vmatprep.mubr.bf16.mxu1 %v5811_v35  ;;  %v5886_v34 = vld [vmem:[%s6109_s26 + $0x408] ss:$36 sps:$4 sm:$0xff]  }
 0x1a0   : > { %3476 = vmatprep.mubr.bf16.mxu0 %v5813_v37  ;;  %v5887_v35 = vld [vmem:[%s6109_s26 + $0x8c4] ss:$36 sps:$4 sm:$0xff]   ;;  %v5889_v37 = vld [vmem:[%s6109_s26 + $0x454] ss:$36 sps:$4 sm:$0xff]  }
 0x1a6   : > { %3027 = vmatmul.mubr.bf16.gmra.mrb[76].mxu1 %v5815_v38  ;;  %v5891_v38 = vld [vmem:[%s6109_s26 + $0x8c0] ss:$36 sps:$4 sm:$0xff]  }
 0x1a7   : > { %3477 = vmatmul.mubr.bf16.gmra.mrb[12].mxu0 %v5816_v40  ;;  %3034 = vmatprep.mubr.bf16.mxu1 %v5817_v41  ;;  %v5892_v40 = vld [vmem:[%s6109_s26 + $0x450] ss:$36 sps:$4 sm:$0xff]   ;;  %v5895_v41 = vld [vmem:[%s6109_s26 + $0x20] ss:$36 sps:$4 sm:$0xff]  }
 0x1a8   : > { %3484 = vmatprep.mubr.bf16.mxu0 %v5819_v42  ;;  %v5893_v42 = vld [vmem:[%s6109_s26 + $0x49c] ss:$36 sps:$4 sm:$0xff]  }
 0x1ae   : > { %3035 = vmatmul.mubr.bf16.gmra.mrb[80].mxu1 %v5821_v6  ;;  %v5897_v6 = vld [vmem:[%s6109_s26 + $0x68] ss:$36 sps:$4 sm:$0xff]  }
 0x1af   : > { %3485 = vmatmul.mubr.bf16.gmra.mrb[16].mxu0 %v5822_v43  ;;  %3042 = vmatprep.mubr.bf16.mxu1 %v5824_v45  ;;  %v5896_v43 = vld [vmem:[%s6109_s26 + $0x498] ss:$36 sps:$4 sm:$0xff]   ;;  %v5900_v45 = vld [vmem:[%s6109_s26 + $0xb0] ss:$36 sps:$4 sm:$0xff]  }
 0x1b0   : > { %3492 = vmatprep.mubr.bf16.mxu0 %v5826_v46  ;;  %v5898_v46 = vld [vmem:[%s6109_s26 + $0x4e4] ss:$36 sps:$4 sm:$0xff]  }
 0x1b6   : > { %3043 = vmatmul.mubr.bf16.gmra.mrb[84].mxu1 %v5828_v47  ;;  %v5902_v47 = vld [vmem:[%s6109_s26 + $0xf8] ss:$36 sps:$4 sm:$0xff]  }
 0x1b7   : > { %3493 = vmatmul.mubr.bf16.gmra.mrb[20].mxu0 %v5829_v50  ;;  %3050 = vmatprep.mubr.bf16.mxu1 %v5830_v51  ;;  %v5901_v50 = vld [vmem:[%s6109_s26 + $0x4e0] ss:$36 sps:$4 sm:$0xff]  }
 0x1b8   : > { %3500 = vmatprep.mubr.bf16.mxu0 %v5832_v53  ;;  %v5905_v51 = vld [vmem:[%s6109_s26 + $0x140] ss:$36 sps:$4 sm:$0xff]   ;;  %v5903_v53 = vld [vmem:[%s6109_s26 + $0x52c] ss:$36 sps:$4 sm:$0xff]  }
 0x1be   : > { %3051 = vmatmul.mubr.bf16.gmra.mrb[88].mxu1 %v5834_v54  ;;  %v5907_v54 = vld [vmem:[%s6109_s26 + $0x188] ss:$36 sps:$4 sm:$0xff]  }
 0x1bf   : > { %3501 = vmatmul.mubr.bf16.gmra.mrb[24].mxu0 %v5835_v55  ;;  %3058 = vmatprep.mubr.bf16.mxu1 %v5836_v56  ;;  %v5906_v55 = vld [vmem:[%s6109_s26 + $0x528] ss:$36 sps:$4 sm:$0xff]   ;;  %v5910_v56 = vld [vmem:[%s6109_s26 + $0x1d0] ss:$36 sps:$4 sm:$0xff]  }
 0x1c0   : > { %3508 = vmatprep.mubr.bf16.mxu0 %v5838_v58  ;;  %v5908_v58 = vld [vmem:[%s6109_s26 + $0x574] ss:$36 sps:$4 sm:$0xff]  }
 0x1c6   : > { %3059 = vmatmul.mubr.bf16.gmra.mrb[92].mxu1 %v5840_v59 }
 0x1c7   : > { %3509 = vmatmul.mubr.bf16.gmra.mrb[28].mxu0 %v5841_v61  ;;  %3066 = vmatprep.mubr.bf16.mxu1 %v5843_v62  ;;  %v5912_v62 = vld [vmem:[%s6109_s26 + $0x218] ss:$36 sps:$4 sm:$0xff]  }
 0x1c8   : > { %3516 = vmatprep.mubr.bf16.mxu0 %v5845_v63 }
 0x1ce   : > { %3067 = vmatmul.mubr.bf16.gmra.mrb[96].mxu1 %v5847_v0  ;;  %v5911_v0 = vld [vmem:[%s6109_s26 + $0x570] ss:$36 sps:$4 sm:$0xff]  }
 0x1cf   : > { %3517 = vmatmul.mubr.bf16.gmra.mrb[32].mxu0 %v5848_v3  ;;  %3074 = vmatprep.mubr.bf16.mxu1 %v5849_v4  ;;  %v5915_v3 = vld [vmem:[%s6109_s26 + $0x260] ss:$36 sps:$4 sm:$0xff]  }
 0x1d0   : > { %3524 = vmatprep.mubr.bf16.mxu0 %v5851_v7  ;;  %v5913_v7 = vld [vmem:[%s6109_s26 + $0x5bc] ss:$36 sps:$4 sm:$0xff]  }
 0x1d6   : > { %3075 = vmatmul.mubr.bf16.gmra.mrb[100].mxu1 %v5853_v8 }
 0x1d7   : > { %3525 = vmatmul.mubr.bf16.gmra.mrb[36].mxu0 %v5854_v9  ;;  %3082 = vmatprep.mubr.bf16.mxu1 %v5855_v10  ;;  %v5917_v10 = vld [vmem:[%s6109_s26 + $0x2a8] ss:$36 sps:$4 sm:$0xff]  }
 0x1d8   : > { %3532 = vmatprep.mubr.bf16.mxu0 %v5857_v12 }
 0x1de   : > { %3083 = vmatmul.mubr.bf16.gmra.mrb[104].mxu1 %v5859_v13  ;;  %v5916_v13 = vld [vmem:[%s6109_s26 + $0x5b8] ss:$36 sps:$4 sm:$0xff]  }
 0x1df   : > { %3533 = vmatmul.mubr.bf16.gmra.mrb[40].mxu0 %v5860_v15  ;;  %3090 = vmatprep.mubr.bf16.mxu1 %v5862_v16  ;;  %v5920_v15 = vld [vmem:[%s6109_s26 + $0x2f0] ss:$36 sps:$4 sm:$0xff]  }
 0x1e0   : > { %3540 = vmatprep.mubr.bf16.mxu0 %v5864_v17  ;;  %v5918_v17 = vld [vmem:[%s6109_s26 + $0x604] ss:$36 sps:$4 sm:$0xff]  }
 0x1e6   : > { %3091 = vmatmul.mubr.bf16.gmra.mrb[108].mxu1 %v5866_v18 }
 0x1e7   : > { %3541 = vmatmul.mubr.bf16.gmra.mrb[44].mxu0 %v5867_v20  ;;  %3098 = vmatprep.mubr.bf16.mxu1 %v5868_v21  ;;  %v5922_v21 = vld [vmem:[%s6109_s26 + $0x338] ss:$36 sps:$4 sm:$0xff]  }
 0x1e8   : > { %3548 = vmatprep.mubr.bf16.mxu0 %v5870_v23 }
 0x1ee   : > { %3099 = vmatmul.mubr.bf16.gmra.mrb[112].mxu1 %v5872_v24  ;;  %v5921_v24 = vld [vmem:[%s6109_s26 + $0x600] ss:$36 sps:$4 sm:$0xff]  }
 0x1ef   : > { %3549 = vmatmul.mubr.bf16.gmra.mrb[48].mxu0 %v5873_v25  ;;  %3106 = vmatprep.mubr.bf16.mxu1 %v5874_v26  ;;  %v5925_v25 = vld [vmem:[%s6109_s26 + $0x380] ss:$36 sps:$4 sm:$0xff]  }
 0x1f0   : > { %3556 = vmatprep.mubr.bf16.mxu0 %v5876_v28  ;;  %v5923_v28 = vld [vmem:[%s6109_s26 + $0x64c] ss:$36 sps:$4 sm:$0xff]  }
 0x1f6   : > { %3107 = vmatmul.mubr.bf16.gmra.mrb[116].mxu1 %v5878_v29 }
 0x1f7   : > { %3557 = vmatmul.mubr.bf16.gmra.mrb[52].mxu0 %v5879_v31  ;;  %3114 = vmatprep.mubr.bf16.mxu1 %v5881_v32  ;;  %v5927_v32 = vld [vmem:[%s6109_s26 + $0x3c8] ss:$36 sps:$4 sm:$0xff]  }
 0x1f8   : > { %3564 = vmatprep.mubr.bf16.mxu0 %v5883_v1 }
 0x1fe   : > { %3115 = vmatmul.mubr.bf16.gmra.mrb[120].mxu1 %v5885_v33  ;;  %v5926_v33 = vld [vmem:[%s6109_s26 + $0x648] ss:$36 sps:$4 sm:$0xff]  }
 0x1ff   : > { %3565 = vmatmul.mubr.bf16.gmra.mrb[56].mxu0 %v5886_v34  ;;  %3122 = vmatprep.mubr.bf16.mxu1 %v5887_v35  ;;  %v5930_v34 = vld [vmem:[%s6109_s26 + $0x410] ss:$36 sps:$4 sm:$0xff]  }
 0x200   : > { %3572 = vmatprep.mubr.bf16.mxu0 %v5889_v37  ;;  %v5928_v37 = vld [vmem:[%s6109_s26 + $0x694] ss:$36 sps:$4 sm:$0xff]  }
 0x206   : > { %3123 = vmatmul.mubr.bf16.gmra.mrb[124].mxu1 %v5891_v38 }
 0x207   : > { %3573 = vmatmul.mubr.bf16.gmra.mrb[60].mxu0 %v5892_v40  ;;  %4995 = vmatprep.mubr.bf16.mxu1 %v5895_v41  ;;  %v5932_v41 = vld [vmem:[%s6109_s26 + $0x458] ss:$36 sps:$4 sm:$0xff]  }
 0x208   : > { %3580 = vmatprep.mubr.bf16.mxu0 %v5893_v42 }
 0x20e   : > { %4996 = vmatmul.mubr.bf16.vlgmr.msra.gmra.mrb[128].mxu1 %v5897_v6  ;;  %v5931_v6 = vld [vmem:[%s6109_s26 + $0x690] ss:$36 sps:$4 sm:$0xff]  }
 0x20f   : > { %3581 = vmatmul.mubr.bf16.gmra.mrb[64].mxu0 %v5896_v43  ;;  %4999 = vmatprep.mubr.bf16.mxu1 %v5900_v45  ;;  %v5935_v43 = vld [vmem:[%s6109_s26 + $0x4a0] ss:$36 sps:$4 sm:$0xff]  }
 0x210   : > { %3588 = vmatprep.mubr.bf16.mxu0 %v5898_v46  ;;  %v5933_v46 = vld [vmem:[%s6109_s26 + $0x6dc] ss:$36 sps:$4 sm:$0xff]  }
 0x216   : > { %5000 = vmatmul.mubr.bf16.gmra.mrb[132].mxu1 %v5902_v47 }
 0x217   : > { %3589 = vmatmul.mubr.bf16.gmra.mrb[68].mxu0 %v5901_v50  ;;  %5003 = vmatprep.mubr.bf16.mxu1 %v5905_v51  ;;  %v5937_v51 = vld [vmem:[%s6109_s26 + $0x4e8] ss:$36 sps:$4 sm:$0xff]  }
 0x218   : > { %3596 = vmatprep.mubr.bf16.mxu0 %v5903_v53 }
 0x21e   : > { %5004 = vmatmul.mubr.bf16.gmra.mrb[136].mxu1 %v5907_v54  ;;  %v5936_v54 = vld [vmem:[%s6109_s26 + $0x6d8] ss:$36 sps:$4 sm:$0xff]  }
 0x21f   : > { %3597 = vmatmul.mubr.bf16.gmra.mrb[72].mxu0 %v5906_v55  ;;  %5007 = vmatprep.mubr.bf16.mxu1 %v5910_v56  ;;  %v5940_v55 = vld [vmem:[%s6109_s26 + $0x530] ss:$36 sps:$4 sm:$0xff]  }
 0x220   : > { %3604 = vmatprep.mubr.bf16.mxu0 %v5908_v58  ;;  %v5938_v58 = vld [vmem:[%s6109_s26 + $0x724] ss:$36 sps:$4 sm:$0xff]  }
 0x221   : > { %v6655_v59 = vpop.f32.mrb[32].mxu1 }
 0x222   : > { %v2942_v61 = vpop.f32.mrb[33].mxu1 }
 0x223   : > { %v6658_v63 = vpop.f32.mrb[34].mxu1 }
 0x224   : > { %v2945_v4 = vpop.f32.mrb[35].mxu1 }
 0x225   : > { %v5941_v4 = vld [vmem:[%s6109_s26 + $0x720] ss:$36 sps:$4 sm:$0xff]  }
 0x226   : > { %5008 = vmatmul.mubr.bf16.gmra.mrb[140].mxu1 %v5912_v62 }
 0x227   : > { %3605 = vmatmul.mubr.bf16.gmra.mrb[76].mxu0 %v5911_v0  ;;  %5011 = vmatprep.mubr.bf16.mxu1 %v5915_v3  ;;  %v5942_v0 = vld [vmem:[%s6109_s26 + $0x578] ss:$36 sps:$4 sm:$0xff]  }
 0x228   : > { %3612 = vmatprep.mubr.bf16.mxu0 %v5913_v7  ;;  %v5945_v7 = vld [vmem:[%s6109_s26 + $0x5c0] ss:$36 sps:$4 sm:$0xff]  }
 0x229   : > { %v6663_v8 = vpop.f32.mrb[36].mxu1 }
 0x22a   : > { %v2950_v9 = vpop.f32.mrb[37].mxu1 }
 0x22b   : > { %v6666_v12 = vpop.f32.mrb[38].mxu1 }
 0x22c   : > { %v2953_v16 = vpop.f32.mrb[39].mxu1 }
 0x22d   : > { %v5947_v16 = vld [vmem:[%s6109_s26 + $0x608] ss:$36 sps:$4 sm:$0xff]  }
 0x22e   : > { %5012 = vmatmul.mubr.bf16.gmra.mrb[144].mxu1 %v5917_v10  ;;  %v5943_v10 = vld [vmem:[%s6109_s26 + $0x76c] ss:$36 sps:$4 sm:$0xff]  }
 0x22f   : > { %3613 = vmatmul.mubr.bf16.gmra.mrb[80].mxu0 %v5916_v13  ;;  %5015 = vmatprep.mubr.bf16.mxu1 %v5920_v15 }
 0x230   : > { %3620 = vmatprep.mubr.bf16.mxu0 %v5918_v17 }
 0x231   : > { %v6671_v18 = vpop.f32.mrb[40].mxu1 }
 0x232   : > { %v2958_v20 = vpop.f32.mrb[41].mxu1 }
 0x233   : > { %v6674_v23 = vpop.f32.mrb[42].mxu1  ;;  %v5946_v20 = vld [vmem:[%s6109_s26 + $0x768] ss:$36 sps:$4 sm:$0xff]  }
 0x234   : > { %v2961_v26 = vpop.f32.mrb[43].mxu1 }
 0x235   : > { %v6722_v26 = vld [vmem:[%s7240_s2] ss:$0 sm:$0xff] }
 0x236   : > { %5016 = vmatmul.mubr.bf16.gmra.mrb[148].mxu1 %v5922_v21  ;;  %v5950_v21 = vld [vmem:[%s6109_s26 + $0x650] ss:$36 sps:$4 sm:$0xff]  }
 0x237   : > { %3621 = vmatmul.mubr.bf16.gmra.mrb[84].mxu0 %v5921_v24  ;;  %5019 = vmatprep.mubr.bf16.mxu1 %v5925_v25  ;;  %v5948_v25 = vld [vmem:[%s6109_s26 + $0x7b4] ss:$36 sps:$4 sm:$0xff]  }
 0x238   : > { %3628 = vmatprep.mubr.bf16.mxu0 %v5923_v28  ;;  %v2588_v28 = vadd.f32 %v6722_v26, %v6473_v49 }
 0x239   : > { %v6679_v29 = vpop.f32.mrb[44].mxu1 }
 0x23a   : > { %v2966_v31 = vpop.f32.mrb[45].mxu1 }
 0x23b   : > { %v6682_v1 = vpop.f32.mrb[46].mxu1 }
 0x23c   : > { %v2969_v35 = vpop.f32.mrb[47].mxu1 }
 0x23d   : > { %v2591_v35 = vadd.f32 %v6722_v26, %v6476_v52  ;;  %v2596_v52 = vadd.f32 %v6722_v26, %v6481_v57 }
 0x23e   : > { %5020 = vmatmul.mubr.bf16.gmra.mrb[152].mxu1 %v5927_v32 }
 0x23f   : > { %3629 = vmatmul.mubr.bf16.gmra.mrb[88].mxu0 %v5926_v33  ;;  %5023 = vmatprep.mubr.bf16.mxu1 %v5930_v34  ;;  %v5952_v34 = vld [vmem:[%s6109_s26 + $0x698] ss:$36 sps:$4 sm:$0xff]  }
 0x240   : > { %3636 = vmatprep.mubr.bf16.mxu0 %v5928_v37 }
 0x241   : > { %v6687_v38 = vpop.f32.mrb[48].mxu1 }
 0x242   : > { %v2974_v40 = vpop.f32.mrb[49].mxu1 }
 0x243   : > { %v6690_v42 = vpop.f32.mrb[50].mxu1 }
 0x244   : > { %v2977_v45 = vpop.f32.mrb[51].mxu1 }
 0x246   : > { %5024 = vmatmul.mubr.bf16.gmra.mrb[156].mxu1 %v5932_v41 }
 0x247   : > { %3637 = vmatmul.mubr.bf16.gmra.mrb[92].mxu0 %v5931_v6  ;;  %5027 = vmatprep.mubr.bf16.mxu1 %v5935_v43  ;;  %v5951_v6 = vld [vmem:[%s6109_s26 + $0x7b0] ss:$36 sps:$4 sm:$0xff]   ;;  %v5955_v43 = vld [vmem:[%s6109_s26 + $0x6e0] ss:$36 sps:$4 sm:$0xff]  }
 0x248   : > { %3644 = vmatprep.mubr.bf16.mxu0 %v5933_v46 }
 0x249   : > { %v6695_v47 = vpop.f32.mrb[52].mxu1 }
 0x24a   : > { %v2982_v50 = vpop.f32.mrb[53].mxu1 }
 0x24b   : > { %v6698_v53 = vpop.f32.mrb[54].mxu1  ;;  %v5953_v50 = vld [vmem:[%s6109_s26 + $0x7fc] ss:$36 sps:$4 sm:$0xff]  }
 0x24c   : > { %v2985_v56 = vpop.f32.mrb[55].mxu1 }
 0x24e   : > { %5028 = vmatmul.mubr.bf16.gmra.mrb[160].mxu1 %v5937_v51 }
 0x24f   : > { %3645 = vmatmul.mubr.bf16.gmra.mrb[96].mxu0 %v5936_v54  ;;  %5031 = vmatprep.mubr.bf16.mxu1 %v5940_v55 }
 0x250   : > { %3652 = vmatprep.mubr.bf16.mxu0 %v5938_v58  ;;  %v5957_v58 = vld [vmem:[%s6109_s26 + $0x728] ss:$36 sps:$4 sm:$0xff]  }
 0x251   : > { %v6703_v61 = vpop.f32.mrb[56].mxu1 }
 0x252   : > { %v2990_v62 = vpop.f32.mrb[57].mxu1 }
 0x253   : > { %v6706_v3 = vpop.f32.mrb[58].mxu1  ;;  %v2599_v62 = vadd.f32 %v6722_v26, %v6484_v60  ;;  %v2604_v60 = vadd.f32 %v6722_v26, %v6489_v2 }
 0x254   : > { %v2993_v9 = vpop.f32.mrb[59].mxu1 }
 0x255   : > { %v5956_v9 = vld [vmem:[%s6109_s26 + $0x7f8] ss:$36 sps:$4 sm:$0xff]  }
 0x256   : > { %5032 = vmatmul.mubr.bf16.gmra.mrb[164].mxu1 %v5942_v0 }
 0x257   : > { %3653 = vmatmul.mubr.bf16.gmra.mrb[100].mxu0 %v5941_v4  ;;  %5035 = vmatprep.mubr.bf16.mxu1 %v5945_v7 }
 0x258   : > { %3660 = vmatprep.mubr.bf16.mxu0 %v5943_v10  ;;  %v5960_v10 = vld [vmem:[%s6109_s26 + $0x770] ss:$36 sps:$4 sm:$0xff]  }
 0x259   : > { %v6711_v13 = vpop.f32.mrb[60].mxu1 }
 0x25a   : > { %v2998_v15 = vpop.f32.mrb[61].mxu1 }
 0x25b   : > { %v6714_v17 = vpop.f32.mrb[62].mxu1 }
 0x25c   : > { %v3001_v24 = vpop.f32.mrb[63].mxu1 }
 0x25e   : > { %5036 = vmatmul.mubr.bf16.gmra.mrb[168].mxu1 %v5947_v16 }
 0x25f   : > { %3661 = vmatmul.mubr.bf16.gmra.mrb[104].mxu0 %v5946_v20  ;;  %5039 = vmatprep.mubr.bf16.mxu1 %v5950_v21  ;;  %v5958_v20 = vld [vmem:[%s6109_s26 + $0x844] ss:$36 sps:$4 sm:$0xff]  }
 0x260   : > { %3668 = vmatprep.mubr.bf16.mxu0 %v5948_v25 }
 0x261   : > { %v6726_v31 = vpop.f32.mrb[64].mxu1 }
 0x262   : > { %v3454_v32 = vpop.f32.mrb[0].mxu0  ;;  %v3006_v33 = vpop.f32.mrb[65].mxu1 }
 0x263   : > { %v6731_v37 = vadd.f32 %v3454_v32, %v2588_v28  ;;  %v3456_v40 = vpop.f32.mrb[1].mxu0  ;;  %v6733_v41 = vpop.f32.mrb[66].mxu1  ;;  %v5962_v32 = vld [vmem:[%s6109_s26 + $0x7b8] ss:$36 sps:$4 sm:$0xff]   ;;  %v2607_v33 = vadd.f32 %v6722_v26, %v6492_v5  ;;  %v2612_v5 = vadd.f32 %v6722_v26, %v6497_v11 }
 0x264   : > { %v3457_v45 = vpop.f32.mrb[2].mxu0  ;;  %v3009_v46 = vpop.f32.mrb[67].mxu1 }
 0x265   : > { %v6738_v49 = vadd.f32 %v3457_v45, %v2591_v35  ;;  %v3459_v51 = vpop.f32.mrb[3].mxu0 }
 0x266   : > { %5040 = vmatmul.mubr.bf16.gmra.mrb[172].mxu1 %v5952_v34 }
 0x267   : > { %3669 = vmatmul.mubr.bf16.gmra.mrb[108].mxu0 %v5951_v6  ;;  %5043 = vmatprep.mubr.bf16.mxu1 %v5955_v43  ;;  %v5961_v6 = vld [vmem:[%s6109_s26 + $0x840] ss:$36 sps:$4 sm:$0xff]  }
 0x268   : > { %3676 = vmatprep.mubr.bf16.mxu0 %v5953_v50  ;;  %v5965_v43 = vld [vmem:[%s6109_s26 + $0x800] ss:$36 sps:$4 sm:$0xff]   ;;  %v5963_v50 = vld [vmem:[%s6109_s26 + $0x88c] ss:$36 sps:$4 sm:$0xff]  }
 0x269   : > { %v6742_v54 = vpop.f32.mrb[68].mxu1 }
 0x26a   : > { %v3462_v55 = vpop.f32.mrb[4].mxu0  ;;  %v3014_v56 = vpop.f32.mrb[69].mxu1 }
 0x26b   : > { %v6747_v0 = vadd.f32 %v3462_v55, %v2596_v52  ;;  %v3464_v4 = vpop.f32.mrb[5].mxu0  ;;  %v6749_v7 = vpop.f32.mrb[70].mxu1 }
 0x26c   : > { %v3465_v15 = vpop.f32.mrb[6].mxu0  ;;  %v3017_v16 = vpop.f32.mrb[71].mxu1 }
 0x26d   : > { %v6754_v57 = vadd.f32 %v3465_v15, %v2599_v62  ;;  %v3467_v21 = vpop.f32.mrb[7].mxu0  ;;  %v2615_v62 = vadd.f32 %v6722_v26, %v6500_v14  ;;  %v5966_v15 = vld [vmem:[%s6109_s26 + $0x888] ss:$36 sps:$4 sm:$0xff]   ;;  %v5970_v16 = vld [vmem:[%s6109_s26 + $0x890] ss:$36 sps:$4 sm:$0xff]   ;;  %v2620_v14 = vadd.f32 %v6722_v26, %v6505_v19  ;;  %v2628_v19 = vadd.f32 %v6722_v26, %v6513_v27 }
 0x26e   : > { %5044 = vmatmul.mubr.bf16.gmra.mrb[176].mxu1 %v5957_v58  ;;  %v5967_v58 = vld [vmem:[%s6109_s26 + $0x848] ss:$36 sps:$4 sm:$0xff]   ;;  %v2636_v27 = vadd.f32 %v6722_v26, %v6528_v36  ;;  %v2644_v36 = vadd.f32 %v6722_v26, %v6539_v44  ;;  %v5123_v44 = vadd.f32 %v6722_v26, %v6655_v59  ;;  %v5127_v59 = vadd.f32 %v6722_v26, %v6663_v8 }
 0x26f   : > { %3677 = vmatmul.mubr.bf16.gmra.mrb[112].mxu0 %v5956_v9  ;;  %5047 = vmatprep.mubr.bf16.mxu1 %v5960_v10  ;;  %v5131_v8 = vadd.f32 %v6722_v26, %v6671_v18  ;;  %v5135_v18 = vadd.f32 %v6722_v26, %v6679_v29  ;;  %v5139_v29 = vadd.f32 %v6722_v26, %v6687_v38 }
 0x270   : > { %3684 = vmatprep.mubr.bf16.mxu0 %v5958_v20  ;;  %v5143_v38 = vadd.f32 %v6722_v26, %v6695_v47  ;;  %v5147_v47 = vadd.f32 %v6722_v26, %v6703_v61  ;;  %v5151_v61 = vadd.f32 %v6722_v26, %v6711_v13  ;;  %v5155_v13 = vadd.f32 %v6722_v26, %v6726_v31 }
 0x271   : > { %v6758_v24 = vpop.f32.mrb[72].mxu1 }
 0x272   : > { %v3470_v25 = vpop.f32.mrb[8].mxu0  ;;  %v3022_v28 = vpop.f32.mrb[73].mxu1 }
 0x273   : > { %v6763_v34 = vadd.f32 %v3470_v25, %v2604_v60  ;;  %v3472_v35 = vpop.f32.mrb[9].mxu0  ;;  %v6765_v40 = vpop.f32.mrb[74].mxu1  ;;  %v5968_v60 = vld [vmem:[%s6109_s26 + $0x8d4] ss:$36 sps:$4 sm:$0xff]  }
 0x274   : > { %v3473_v45 = vpop.f32.mrb[10].mxu0  ;;  %v3025_v46 = vpop.f32.mrb[75].mxu1  ;;  %v5972_v35 = vld [vmem:[%s6109_s26 + $0x8d8] ss:$36 sps:$4 sm:$0xff]  }
 0x275   : > { %v6770_v2 = vadd.f32 %v3473_v45, %v2607_v33  ;;  %v3475_v51 = vpop.f32.mrb[11].mxu0 }
 0x276   : > { %5048 = vmatmul.mubr.bf16.gmra.mrb[180].mxu1 %v5962_v32 }
 0x277   : > { %3685 = vmatmul.mubr.bf16.gmra.mrb[116].mxu0 %v5961_v6  ;;  %5051 = vmatprep.mubr.bf16.mxu1 %v5965_v43  ;;  %v2623_v6 = vadd.f32 %v6722_v26, %v6508_v22 }
 0x278   : > { %3692 = vmatprep.mubr.bf16.mxu0 %v5963_v50  ;;  %v5971_v50 = vld [vmem:[%s6109_s26 + $0x8d0] ss:$36 sps:$4 sm:$0xff]   ;;  %s4447_s26 = sshll.u32 %s7271_s7, 2 }
 0x279   : > { %v6774_v52 = vpop.f32.mrb[76].mxu1  ;;  %s6947_s7 = scalar_lea.vmem %s7241_s3, %s4447_s26 }
 0x27a   : > { %v3478_v55 = vpop.f32.mrb[12].mxu0  ;;  %v3030_v56 = vpop.f32.mrb[77].mxu1 }
 0x27b   : > { %v6779_v4 = vadd.f32 %v3478_v55, %v2612_v5  ;;  %v3480_v9 = vpop.f32.mrb[13].mxu0  ;;  %v6781_v10 = vpop.f32.mrb[78].mxu1 }
 0x27c   : > { %v3481_v20 = vpop.f32.mrb[14].mxu0  ;;  %v3033_v21 = vpop.f32.mrb[79].mxu1  ;;  %v2631_v9 = vadd.f32 %v6722_v26, %v6516_v30  ;;  %v2639_v30 = vadd.f32 %v6722_v26, %v6531_v39  ;;  %v2647_v39 = vadd.f32 %v6722_v26, %v6545_v48  ;;  %v5125_v48 = vadd.f32 %v6722_v26, %v6658_v63 }
 0x27d   : > { %v6786_v11 = vadd.f32 %v3481_v20, %v2615_v62  ;;  %v3483_v25 = vpop.f32.mrb[15].mxu0  ;;  %v5129_v63 = vadd.f32 %v6722_v26, %v6666_v12  ;;  %v5133_v12 = vadd.f32 %v6722_v26, %v6674_v23  ;;  %v5137_v23 = vadd.f32 %v6722_v26, %v6682_v1 }
 0x27e   : > { %5052 = vmatmul.mubr.bf16.gmra.mrb[184].mxu1 %v5967_v58  ;;  %v5141_v1 = vadd.f32 %v6722_v26, %v6690_v42  ;;  %v5145_v42 = vadd.f32 %v6722_v26, %v6698_v53  ;;  %v5149_v53 = vadd.f32 %v6722_v26, %v6706_v3  ;;  %v5153_v3 = vadd.f32 %v6722_v26, %v6714_v17 }
 0x27f   : > { %3693 = vmatmul.mubr.bf16.gmra.mrb[120].mxu0 %v5966_v15  ;;  %5055 = vmatprep.mubr.bf16.mxu1 %v5970_v16  ;;  %v5157_v17 = vadd.f32 %v6722_v26, %v6733_v41 }
 0x280   : > { %3700 = vmatprep.mubr.bf16.mxu0 %v5968_v60 }
 0x281   : > { %v6790_v28 = vpop.f32.mrb[80].mxu1 }
 0x282   : > { %v3486_v32 = vpop.f32.mrb[16].mxu0  ;;  %v3038_v33 = vpop.f32.mrb[81].mxu1 }
 0x283   : > { %v6795_v43 = vadd.f32 %v3486_v32, %v2620_v14  ;;  %v3488_v45 = vpop.f32.mrb[17].mxu0  ;;  %v6797_v46 = vpop.f32.mrb[82].mxu1 }
 0x284   : > { %v3489_v51 = vpop.f32.mrb[18].mxu0  ;;  %v3041_v5 = vpop.f32.mrb[83].mxu1 }
 0x285   : > { %v6800_v55 = vadd.f32 %v3489_v51, %v2623_v6  ;;  %v3491_v56 = vpop.f32.mrb[19].mxu0 }
 0x286   : > { %5056 = vmatmul.mubr.bf16.gmra.mrb[188].mxu1 %v5972_v35 }
 0x287   : > { %3701 = vmatmul.mubr.bf16.gmra.mrb[124].mxu0 %v5971_v50 }
 0x289   : > { %v6804_v58 = vpop.f32.mrb[84].mxu1 }
 0x28a   : > { %v3494_v62 = vpop.f32.mrb[20].mxu0  ;;  %v3046_v22 = vpop.f32.mrb[85].mxu1 }
 0x28b   : > { %v6808_v15 = vadd.f32 %v3494_v62, %v2628_v19  ;;  %v3496_v16 = vpop.f32.mrb[21].mxu0  ;;  %v6810_v20 = vpop.f32.mrb[86].mxu1 }
 0x28c   : > { %v3497_v21 = vpop.f32.mrb[22].mxu0  ;;  %v3049_v60 = vpop.f32.mrb[87].mxu1 }
 0x28d   : > { %v6812_v25 = vadd.f32 %v3497_v21, %v2631_v9  ;;  %v3499_v14 = vpop.f32.mrb[23].mxu0 }
 0x291   : > { %v6816_v32 = vpop.f32.mrb[88].mxu1 }
 0x292   : > { %v3502_v33 = vpop.f32.mrb[24].mxu0  ;;  %v3054_v35 = vpop.f32.mrb[89].mxu1 }
 0x293   : > { %v6820_v6 = vadd.f32 %v3502_v33, %v2636_v27  ;;  %v3504_v45 = vpop.f32.mrb[25].mxu0  ;;  %v6822_v50 = vpop.f32.mrb[90].mxu1 }
 0x294   : > { %v3505_v51 = vpop.f32.mrb[26].mxu0  ;;  %v3057_v5 = vpop.f32.mrb[91].mxu1 }
 0x295   : > { %v6824_v56 = vadd.f32 %v3505_v51, %v2639_v30  ;;  %v3507_v19 = vpop.f32.mrb[27].mxu0 }
 0x299   : > { %v6828_v62 = vpop.f32.mrb[92].mxu1 }
 0x29a   : > { %v3510_v22 = vpop.f32.mrb[28].mxu0  ;;  %v3062_v9 = vpop.f32.mrb[93].mxu1 }
 0x29b   : > { %v6832_v16 = vadd.f32 %v3510_v22, %v2644_v36  ;;  %v3512_v21 = vpop.f32.mrb[29].mxu0  ;;  %v6834_v60 = vpop.f32.mrb[94].mxu1 }
 0x29c   : > { %v3513_v14 = vpop.f32.mrb[30].mxu0  ;;  %v3065_v27 = vpop.f32.mrb[95].mxu1 }
 0x29d   : > { %v6836_v33 = vadd.f32 %v3513_v14, %v2647_v39  ;;  %v3515_v35 = vpop.f32.mrb[31].mxu0 }
 0x2a1   : > { %v6840_v30 = vpop.f32.mrb[96].mxu1 }
 0x2a2   : > { %v3518_v45 = vpop.f32.mrb[32].mxu0  ;;  %v3070_v51 = vpop.f32.mrb[97].mxu1 }
 0x2a3   : > { %v6844_v5 = vadd.f32 %v5123_v44, %v3518_v45  ;;  %v3520_v19 = vpop.f32.mrb[33].mxu0  ;;  %v6846_v36 = vpop.f32.mrb[98].mxu1 }
 0x2a4   : > { %7242 = vst [vmem:[#allocation2_spill] sm:$0xff] %v6846_v36  ;;  %v3521_v22 = vpop.f32.mrb[34].mxu0  ;;  %v3073_v9 = vpop.f32.mrb[99].mxu1 }
 0x2a5   : > { %v6848_v39 = vadd.f32 %v5125_v48, %v3521_v22  ;;  %v3523_v21 = vpop.f32.mrb[35].mxu0 }
 0x2a9   : > { %v6852_v14 = vpop.f32.mrb[100].mxu1 }
 0x2aa   : > { %7243 = vst [vmem:[#allocation3_spill] sm:$0xff] %v6852_v14  ;;  %v3526_v27 = vpop.f32.mrb[36].mxu0  ;;  %v3078_v35 = vpop.f32.mrb[101].mxu1 }
 0x2ab   : > { %v6856_v44 = vadd.f32 %v5127_v59, %v3526_v27  ;;  %v3528_v45 = vpop.f32.mrb[37].mxu0  ;;  %v6858_v51 = vpop.f32.mrb[102].mxu1 }
 0x2ac   : > { %7244 = vst [vmem:[#allocation4_spill] sm:$0xff] %v6858_v51  ;;  %v3529_v19 = vpop.f32.mrb[38].mxu0  ;;  %v3081_v9 = vpop.f32.mrb[103].mxu1 }
 0x2ad   : > { %v6860_v48 = vadd.f32 %v5129_v63, %v3529_v19  ;;  %v3531_v22 = vpop.f32.mrb[39].mxu0 }
 0x2b1   : > { %v6864_v21 = vpop.f32.mrb[104].mxu1 }
 0x2b2   : > { %7245 = vst [vmem:[#allocation5_spill] sm:$0xff] %v6864_v21  ;;  %v3534_v14 = vpop.f32.mrb[40].mxu0  ;;  %v3086_v35 = vpop.f32.mrb[105].mxu1 }
 0x2b3   : > { %v6868_v59 = vadd.f32 %v5131_v8, %v3534_v14  ;;  %v3536_v27 = vpop.f32.mrb[41].mxu0  ;;  %v6870_v45 = vpop.f32.mrb[106].mxu1 }
 0x2b4   : > { %7246 = vst [vmem:[#allocation6_spill] sm:$0xff] %v6870_v45  ;;  %v3537_v51 = vpop.f32.mrb[42].mxu0  ;;  %v3089_v9 = vpop.f32.mrb[107].mxu1 }
 0x2b5   : > { %v6872_v63 = vadd.f32 %v5133_v12, %v3537_v51  ;;  %v3539_v19 = vpop.f32.mrb[43].mxu0 }
 0x2b9   : > { %v6876_v22 = vpop.f32.mrb[108].mxu1 }
 0x2ba   : > { %7247 = vst [vmem:[#allocation7_spill] sm:$0xff] %v6876_v22  ;;  %v3542_v21 = vpop.f32.mrb[44].mxu0  ;;  %v3094_v35 = vpop.f32.mrb[109].mxu1 }
 0x2bb   : > { %v6880_v14 = vadd.f32 %v5135_v18, %v3542_v21  ;;  %v3544_v8 = vpop.f32.mrb[45].mxu0  ;;  %v6882_v27 = vpop.f32.mrb[110].mxu1 }
 0x2bc   : > { %7248 = vst [vmem:[#allocation8_spill] sm:$0xff] %v6882_v27  ;;  %v3545_v45 = vpop.f32.mrb[46].mxu0  ;;  %v3097_v9 = vpop.f32.mrb[111].mxu1 }
 0x2bd   : > { %v6884_v51 = vadd.f32 %v5137_v23, %v3545_v45  ;;  %v3547_v12 = vpop.f32.mrb[47].mxu0 }
 0x2c1   : > { %v6888_v19 = vpop.f32.mrb[112].mxu1 }
 0x2c2   : > { %7249 = vst [vmem:[#allocation9_spill] sm:$0xff] %v6888_v19  ;;  %v3550_v22 = vpop.f32.mrb[48].mxu0  ;;  %v3102_v35 = vpop.f32.mrb[113].mxu1 }
 0x2c3   : > { %v6892_v21 = vadd.f32 %v5139_v29, %v3550_v22  ;;  %v3552_v18 = vpop.f32.mrb[49].mxu0  ;;  %v6894_v8 = vpop.f32.mrb[114].mxu1 }
 0x2c4   : > { %7250 = vst [vmem:[#allocation10_spill] sm:$0xff] %v6894_v8  ;;  %v3553_v27 = vpop.f32.mrb[50].mxu0  ;;  %v3105_v9 = vpop.f32.mrb[115].mxu1 }
 0x2c5   : > { %v6896_v45 = vadd.f32 %v5141_v1, %v3553_v27  ;;  %v3555_v23 = vpop.f32.mrb[51].mxu0 }
 0x2c9   : > { %v6900_v12 = vpop.f32.mrb[116].mxu1 }
 0x2ca   : > { %7251 = vst [vmem:[#allocation11_spill] sm:$0xff] %v6900_v12  ;;  %v3558_v19 = vpop.f32.mrb[52].mxu0  ;;  %v3110_v35 = vpop.f32.mrb[117].mxu1 }
 0x2cb   : > { %v6904_v22 = vadd.f32 %v5143_v38, %v3558_v19  ;;  %v3560_v29 = vpop.f32.mrb[53].mxu0  ;;  %v6906_v18 = vpop.f32.mrb[118].mxu1 }
 0x2cc   : > { %7252 = vst [vmem:[#allocation12_spill] sm:$0xff] %v6906_v18  ;;  %v3561_v8 = vpop.f32.mrb[54].mxu0  ;;  %v3113_v9 = vpop.f32.mrb[119].mxu1 }
 0x2cd   : > { %v6908_v27 = vadd.f32 %v5145_v42, %v3561_v8  ;;  %v3563_v1 = vpop.f32.mrb[55].mxu0 }
 0x2d1   : > { %v6912_v23 = vpop.f32.mrb[120].mxu1 }
 0x2d2   : > { %7253 = vst [vmem:[#allocation13_spill] sm:$0xff] %v6912_v23  ;;  %v3566_v12 = vpop.f32.mrb[56].mxu0  ;;  %v3118_v35 = vpop.f32.mrb[121].mxu1 }
 0x2d3   : > { %v6916_v19 = vadd.f32 %v5147_v47, %v3566_v12  ;;  %v3568_v38 = vpop.f32.mrb[57].mxu0  ;;  %v6918_v29 = vpop.f32.mrb[122].mxu1 }
 0x2d4   : > { %7254 = vst [vmem:[#allocation14_spill] sm:$0xff] %v6918_v29  ;;  %v3569_v18 = vpop.f32.mrb[58].mxu0  ;;  %v3121_v9 = vpop.f32.mrb[123].mxu1 }
 0x2d5   : > { %v6920_v8 = vadd.f32 %v5149_v53, %v3569_v18  ;;  %v3571_v42 = vpop.f32.mrb[59].mxu0 }
 0x2d9   : > { %v6924_v1 = vpop.f32.mrb[124].mxu1 }
 0x2da   : > { %7255 = vst [vmem:[#allocation15_spill] sm:$0xff] %v6924_v1  ;;  %v3574_v35 = vpop.f32.mrb[60].mxu0  ;;  %v3126_v23 = vpop.f32.mrb[125].mxu1 }
 0x2db   : > { %v6928_v12 = vadd.f32 %v5151_v61, %v3574_v35  ;;  %v3576_v47 = vpop.f32.mrb[61].mxu0  ;;  %v6930_v38 = vpop.f32.mrb[126].mxu1 }
 0x2dc   : > { %v3577_v9 = vpop.f32.mrb[62].mxu0  ;;  %v3129_v18 = vpop.f32.mrb[127].mxu1 }
 0x2dd   : > { %v6932_v53 = vadd.f32 %v5153_v3, %v3577_v9  ;;  %v3579_v42 = vpop.f32.mrb[63].mxu0 }
 0x2e1   : > { %v4997_v29 = vpop.f32.mrb[128].mxu1 }
 0x2e2   : > { %v3582_v1 = vpop.f32.mrb[64].mxu0  ;;  %v3752_v23 = vadd.f32 %v6747_v0, %v4997_v29  ;;  %v3743_v36 = vpop.f32.mrb[129].mxu1 }
 0x2e3   : > { %v6940_v61 = vadd.f32 %v5155_v13, %v3582_v1  ;;  %v3584_v35 = vpop.f32.mrb[65].mxu0  ;;  %v3744_v47 = vadd.f32 %v6731_v37, %v3743_v36  ;;  %v4998_v3 = vpop.f32.mrb[130].mxu1 }
 0x2e4   : > { %v4000_v9 = vmax.f32 %v3752_v23, 0.0  ;;  %v3585_v18 = vpop.f32.mrb[66].mxu0  ;;  %v3755_v42 = vadd.f32 %v6754_v57, %v4998_v3  ;;  %v3746_v31 = vpop.f32.mrb[131].mxu1  ;;  %v5159_v35 = vadd.f32 %v6722_v26, %v6742_v54 }
 0x2e5   : > { %v3998_v41 = vmax.f32 %v3744_v47, 0.0  ;;  %v6949_v0 = vadd.f32 %v5157_v17, %v3585_v18  ;;  %v3587_v29 = vpop.f32.mrb[67].mxu0  ;;  %v3747_v37 = vadd.f32 %v6738_v49, %v3746_v31 }
 0x2e6   : > { %v4877_v36 = vpack.c.bf16 %v4000_v9, %v4000_v9  ;;  %v4001_v1 = vmax.f32 %v3755_v42, 0.0  ;;  %v5161_v9 = vadd.f32 %v6722_v26, %v6749_v7 }
 0x2e7   : > { %v4875_v57 = vpack.c.bf16 %v3998_v41, %v3998_v41  ;;  %v3999_v13 = vmax.f32 %v3747_v37, 0.0 }
 0x2e8   : > { %4321 = vst.msk [vmem:[%s6947_s7 + $0x8] sm:$0xf] %vm4318_vm0, %v4877_v36  ;;  %v4878_v23 = vpack.c.bf16 %v4001_v1, %v4001_v1 }
 0x2e9   : > { %4319 = vst.msk [vmem:[%s6947_s7] sm:$0xf] %vm4318_vm0, %v4875_v57  ;;  %v4876_v3 = vpack.c.bf16 %v3999_v13, %v3999_v13  ;;  %v5001_v47 = vpop.f32.mrb[132].mxu1 }
 0x2ea   : > { %4322 = vst.msk [vmem:[%s6947_s7 + $0xc] sm:$0xf] %vm4318_vm0, %v4878_v23  ;;  %v3590_v17 = vpop.f32.mrb[68].mxu0  ;;  %v3768_v49 = vadd.f32 %v6779_v4, %v5001_v47  ;;  %v3759_v18 = vpop.f32.mrb[133].mxu1 }
 0x2eb   : > { %4320 = vst.msk [vmem:[%s6947_s7 + $0x4] sm:$0xf] %vm4318_vm0, %v4876_v3  ;;  %v6965_v42 = vadd.f32 %v5159_v35, %v3590_v17  ;;  %v3592_v31 = vpop.f32.mrb[69].mxu0  ;;  %v3760_v54 = vadd.f32 %v6763_v34, %v3759_v18  ;;  %v5002_v41 = vpop.f32.mrb[134].mxu1  ;;  %v5163_v17 = vadd.f32 %v6722_v26, %v6758_v24 }
 0x2ec   : > { %v4004_v29 = vmax.f32 %v3768_v49, 0.0  ;;  %v3593_v37 = vpop.f32.mrb[70].mxu0  ;;  %v3771_v36 = vadd.f32 %v6786_v11, %v5002_v41  ;;  %v3762_v4 = vpop.f32.mrb[135].mxu1  ;;  %v5165_v31 = vadd.f32 %v6722_v26, %v6765_v40 }
 0x2ed   : > { %v4002_v1 = vmax.f32 %v3760_v54, 0.0  ;;  %v6969_v57 = vadd.f32 %v5161_v9, %v3593_v37  ;;  %v3595_v7 = vpop.f32.mrb[71].mxu0  ;;  %v3763_v13 = vadd.f32 %v6770_v2, %v3762_v4 }
 0x2ee   : > { %v4881_v23 = vpack.c.bf16 %v4004_v29, %v4004_v29  ;;  %v4005_v35 = vmax.f32 %v3771_v36, 0.0 }
 0x2ef   : > { %v4879_v3 = vpack.c.bf16 %v4002_v1, %v4002_v1  ;;  %v4003_v47 = vmax.f32 %v3763_v13, 0.0 }
 0x2f0   : > { %4325 = vst.msk [vmem:[%s6947_s7 + $0x18] sm:$0xf] %vm4318_vm0, %v4881_v23  ;;  %v4882_v34 = vpack.c.bf16 %v4005_v35, %v4005_v35 }
 0x2f1   : > { %4323 = vst.msk [vmem:[%s6947_s7 + $0x10] sm:$0xf] %vm4318_vm0, %v4879_v3  ;;  %v4880_v11 = vpack.c.bf16 %v4003_v47, %v4003_v47  ;;  %v5005_v49 = vpop.f32.mrb[136].mxu1 }
 0x2f2   : > { %4326 = vst.msk [vmem:[%s6947_s7 + $0x1c] sm:$0xf] %vm4318_vm0, %v4882_v34  ;;  %v3598_v18 = vpop.f32.mrb[72].mxu0  ;;  %v3784_v2 = vadd.f32 %v6808_v15, %v5005_v49  ;;  %v3775_v9 = vpop.f32.mrb[137].mxu1  ;;  %v5167_v34 = vadd.f32 %v6722_v26, %v6774_v52 }
 0x2f3   : > { %4324 = vst.msk [vmem:[%s6947_s7 + $0x14] sm:$0xf] %vm4318_vm0, %v4880_v11  ;;  %v6985_v54 = vadd.f32 %v5163_v17, %v3598_v18  ;;  %v3600_v41 = vpop.f32.mrb[73].mxu0  ;;  %v3776_v24 = vadd.f32 %v6795_v43, %v3775_v9  ;;  %v5006_v29 = vpop.f32.mrb[138].mxu1  ;;  %v5169_v18 = vadd.f32 %v6722_v26, %v6781_v10 }
 0x2f4   : > { %v4008_v37 = vmax.f32 %v3784_v2, 0.0  ;;  %v3601_v36 = vpop.f32.mrb[74].mxu0  ;;  %v3787_v4 = vadd.f32 %v6812_v25, %v5006_v29  ;;  %v3778_v15 = vpop.f32.mrb[139].mxu1 }
 0x2f5   : > { %v4006_v1 = vmax.f32 %v3776_v24, 0.0  ;;  %v6989_v7 = vadd.f32 %v5165_v31, %v3601_v36  ;;  %v3603_v40 = vpop.f32.mrb[75].mxu0  ;;  %v3779_v13 = vadd.f32 %v6800_v55, %v3778_v15 }
 0x2f6   : > { %v4885_v23 = vpack.c.bf16 %v4008_v37, %v4008_v37  ;;  %v4009_v35 = vmax.f32 %v3787_v4, 0.0 }
 0x2f7   : > { %v4883_v3 = vpack.c.bf16 %v4006_v1, %v4006_v1  ;;  %v4007_v47 = vmax.f32 %v3779_v13, 0.0 }
 0x2f8   : > { %4329 = vst.msk [vmem:[%s6947_s7 + $0x28] sm:$0xf] %vm4318_vm0, %v4885_v23  ;;  %v4886_v43 = vpack.c.bf16 %v4009_v35, %v4009_v35  ;;  %v5171_v23 = vadd.f32 %v6722_v26, %v6790_v28 }
 0x2f9   : > { %4327 = vst.msk [vmem:[%s6947_s7 + $0x20] sm:$0xf] %vm4318_vm0, %v4883_v3  ;;  %v4884_v25 = vpack.c.bf16 %v4007_v47, %v4007_v47  ;;  %v5009_v17 = vpop.f32.mrb[140].mxu1 }
 0x2fa   : > { %4330 = vst.msk [vmem:[%s6947_s7 + $0x2c] sm:$0xf] %vm4318_vm0, %v4886_v43  ;;  %v3606_v11 = vpop.f32.mrb[76].mxu0  ;;  %v3800_v55 = vadd.f32 %v6832_v16, %v5009_v17  ;;  %v3791_v49 = vpop.f32.mrb[141].mxu1  ;;  %v5173_v43 = vadd.f32 %v6722_v26, %v6797_v46 }
 0x2fb   : > { %4328 = vst.msk [vmem:[%s6947_s7 + $0x24] sm:$0xf] %vm4318_vm0, %v4884_v25  ;;  %v7005_v2 = vadd.f32 %v5167_v34, %v3606_v11  ;;  %v3608_v9 = vpop.f32.mrb[77].mxu0  ;;  %v3792_v52 = vadd.f32 %v6820_v6, %v3791_v49  ;;  %v5010_v31 = vpop.f32.mrb[142].mxu1 }
 0x2fc   : > { %v4012_v41 = vmax.f32 %v3800_v55, 0.0  ;;  %v3609_v24 = vpop.f32.mrb[78].mxu0  ;;  %v3803_v29 = vadd.f32 %v6836_v33, %v5010_v31  ;;  %v3794_v16 = vpop.f32.mrb[143].mxu1 }
 0x2fd   : > { %v4010_v37 = vmax.f32 %v3792_v52, 0.0  ;;  %v7009_v36 = vadd.f32 %v5169_v18, %v3609_v24  ;;  %v3611_v10 = vpop.f32.mrb[79].mxu0  ;;  %v3795_v4 = vadd.f32 %v6824_v56, %v3794_v16  ;;  %v5175_v16 = vadd.f32 %v6722_v26, %v6804_v58 }
 0x2fe   : > { %v4889_v15 = vpack.c.bf16 %v4012_v41, %v4012_v41  ;;  %v4013_v1 = vmax.f32 %v3803_v29, 0.0 }
 0x2ff   : > { %v4887_v40 = vpack.c.bf16 %v4010_v37, %v4010_v37  ;;  %v4011_v13 = vmax.f32 %v3795_v4, 0.0 }
 0x300   : > { %4333 = vst.msk [vmem:[%s6947_s7 + $0x38] sm:$0xf] %vm4318_vm0, %v4889_v15  ;;  %v4890_v6 = vpack.c.bf16 %v4013_v1, %v4013_v1  ;;  %v5177_v15 = vadd.f32 %v6722_v26, %v6810_v20 }
 0x301   : > { %4331 = vst.msk [vmem:[%s6947_s7 + $0x30] sm:$0xf] %vm4318_vm0, %v4887_v40  ;;  %v4888_v33 = vpack.c.bf16 %v4011_v13, %v4011_v13  ;;  %v5013_v35 = vpop.f32.mrb[144].mxu1 }
 0x302   : > { %4334 = vst.msk [vmem:[%s6947_s7 + $0x3c] sm:$0xf] %vm4318_vm0, %v4890_v6  ;;  %v3614_v3 = vpop.f32.mrb[80].mxu0  ;;  %v3816_v56 = vadd.f32 %v6856_v44, %v5013_v35  ;;  %v3807_v47 = vpop.f32.mrb[145].mxu1 }
 0x303   : > { %4332 = vst.msk [vmem:[%s6947_s7 + $0x34] sm:$0xf] %vm4318_vm0, %v4888_v33  ;;  %v7025_v34 = vadd.f32 %v5171_v23, %v3614_v3  ;;  %v3616_v25 = vpop.f32.mrb[81].mxu0  ;;  %v3808_v28 = vadd.f32 %v6844_v5, %v3807_v47  ;;  %v5014_v17 = vpop.f32.mrb[146].mxu1 }
 0x304   : > { %v4016_v11 = vmax.f32 %v3816_v56, 0.0  ;;  %v3617_v55 = vpop.f32.mrb[82].mxu0  ;;  %v3819_v49 = vadd.f32 %v6860_v48, %v5014_v17  ;;  %v3810_v44 = vpop.f32.mrb[147].mxu1  ;;  %v5179_v17 = vadd.f32 %v6722_v26, %v6816_v32 }
 0x305   : > { %v4014_v18 = vmax.f32 %v3808_v28, 0.0  ;;  %v7029_v9 = vadd.f32 %v5173_v43, %v3617_v55  ;;  %v3619_v46 = vpop.f32.mrb[83].mxu0  ;;  %v3811_v52 = vadd.f32 %v6848_v39, %v3810_v44  ;;  %v5181_v44 = vadd.f32 %v6722_v26, %v6822_v50 }
 0x306   : > { %v4893_v31 = vpack.c.bf16 %v4016_v11, %v4016_v11  ;;  %v4017_v41 = vmax.f32 %v3819_v49, 0.0 }
 0x307   : > { %v4891_v24 = vpack.c.bf16 %v4014_v18, %v4014_v18  ;;  %v4015_v29 = vmax.f32 %v3811_v52, 0.0 }
 0x308   : > { %4337 = vst.msk [vmem:[%s6947_s7 + $0x48] sm:$0xf] %vm4318_vm0, %v4893_v31  ;;  %v4894_v5 = vpack.c.bf16 %v4017_v41, %v4017_v41 }
 0x309   : > { %4335 = vst.msk [vmem:[%s6947_s7 + $0x40] sm:$0xf] %vm4318_vm0, %v4891_v24  ;;  %v4892_v48 = vpack.c.bf16 %v4015_v29, %v4015_v29  ;;  %v5017_v37 = vpop.f32.mrb[148].mxu1 }
 0x30a   : > { %4338 = vst.msk [vmem:[%s6947_s7 + $0x4c] sm:$0xf] %vm4318_vm0, %v4894_v5  ;;  %v3622_v10 = vpop.f32.mrb[84].mxu0  ;;  %v3832_v39 = vadd.f32 %v6880_v14, %v5017_v37  ;;  %v3823_v4 = vpop.f32.mrb[149].mxu1 }
 0x30b   : > { %4336 = vst.msk [vmem:[%s6947_s7 + $0x44] sm:$0xf] %vm4318_vm0, %v4892_v48  ;;  %v7045_v1 = vadd.f32 %v5175_v16, %v3622_v10  ;;  %v3624_v40 = vpop.f32.mrb[85].mxu0  ;;  %v3824_v58 = vadd.f32 %v6868_v59, %v3823_v4  ;;  %v5018_v13 = vpop.f32.mrb[150].mxu1  ;;  %v5183_v4 = vadd.f32 %v6722_v26, %v6828_v62 }
 0x30c   : > { %v4020_v6 = vmax.f32 %v3832_v39, 0.0  ;;  %v3625_v23 = vpop.f32.mrb[86].mxu0  ;;  %v3835_v33 = vadd.f32 %v6884_v51, %v5018_v13  ;;  %v3826_v14 = vpop.f32.mrb[151].mxu1  ;;  %v5185_v13 = vadd.f32 %v6722_v26, %v6834_v60 }
 0x30d   : > { %v4018_v35 = vmax.f32 %v3824_v58, 0.0  ;;  %v7049_v3 = vadd.f32 %v5177_v15, %v3625_v23  ;;  %v3627_v20 = vpop.f32.mrb[87].mxu0  ;;  %v3827_v56 = vadd.f32 %v6872_v63, %v3826_v14 }
 0x30e   : > { %v4897_v47 = vpack.c.bf16 %v4020_v6, %v4020_v6  ;;  %v4021_v43 = vmax.f32 %v3835_v33, 0.0 }
 0x30f   : > { %v4895_v25 = vpack.c.bf16 %v4018_v35, %v4018_v35  ;;  %v4019_v28 = vmax.f32 %v3827_v56, 0.0 }
 0x310   : > { %4341 = vst.msk [vmem:[%s6947_s7 + $0x58] sm:$0xf] %vm4318_vm0, %v4897_v47  ;;  %v4898_v59 = vpack.c.bf16 %v4021_v43, %v4021_v43 }
 0x311   : > { %4339 = vst.msk [vmem:[%s6947_s7 + $0x50] sm:$0xf] %vm4318_vm0, %v4895_v25  ;;  %v4896_v51 = vpack.c.bf16 %v4019_v28, %v4019_v28  ;;  %v5021_v11 = vpop.f32.mrb[152].mxu1 }
 0x312   : > { %4342 = vst.msk [vmem:[%s6947_s7 + $0x5c] sm:$0xf] %vm4318_vm0, %v4898_v59  ;;  %v3630_v55 = vpop.f32.mrb[88].mxu0  ;;  %v3848_v63 = vadd.f32 %v6904_v22, %v5021_v11  ;;  %v3839_v49 = vpop.f32.mrb[153].mxu1 }
 0x313   : > { %4340 = vst.msk [vmem:[%s6947_s7 + $0x54] sm:$0xf] %vm4318_vm0, %v4896_v51  ;;  %v7065_v18 = vadd.f32 %v5179_v17, %v3630_v55  ;;  %v3632_v46 = vpop.f32.mrb[89].mxu0  ;;  %v3840_v32 = vadd.f32 %v6892_v21, %v3839_v49  ;;  %v5022_v52 = vpop.f32.mrb[154].mxu1  ;;  %v5187_v51 = vadd.f32 %v6722_v26, %v6840_v30  ;;  %v7256_v49 = vld [vmem:[#allocation2_spill] sm:$0xff] }
 0x314   : > { %v4024_v31 = vmax.f32 %v3848_v63, 0.0  ;;  %v3633_v41 = vpop.f32.mrb[90].mxu0  ;;  %v3851_v24 = vadd.f32 %v6908_v27, %v5022_v52  ;;  %v3842_v22 = vpop.f32.mrb[155].mxu1 }
 0x315   : > { %v4022_v29 = vmax.f32 %v3840_v32, 0.0  ;;  %v7069_v5 = vadd.f32 %v5181_v44, %v3633_v41  ;;  %v3635_v50 = vpop.f32.mrb[91].mxu0  ;;  %v3843_v16 = vadd.f32 %v6896_v45, %v3842_v22  ;;  %v5189_v44 = vadd.f32 %v6722_v26, %v7256_v49 }
 0x316   : > { %v4901_v48 = vpack.c.bf16 %v4024_v31, %v4024_v31  ;;  %v4025_v37 = vmax.f32 %v3851_v24, 0.0 }
 0x317   : > { %v4899_v10 = vpack.c.bf16 %v4022_v29, %v4022_v29  ;;  %v4023_v39 = vmax.f32 %v3843_v16, 0.0 }
 0x318   : > { %4345 = vst.msk [vmem:[%s6947_s7 + $0x68] sm:$0xf] %vm4318_vm0, %v4901_v48  ;;  %v4902_v21 = vpack.c.bf16 %v4025_v37, %v4025_v37 }
 0x319   : > { %4343 = vst.msk [vmem:[%s6947_s7 + $0x60] sm:$0xf] %vm4318_vm0, %v4899_v10  ;;  %v4900_v27 = vpack.c.bf16 %v4023_v39, %v4023_v39  ;;  %v5025_v15 = vpop.f32.mrb[156].mxu1 }
 0x31a   : > { %4346 = vst.msk [vmem:[%s6947_s7 + $0x6c] sm:$0xf] %vm4318_vm0, %v4902_v21  ;;  %v3638_v40 = vpop.f32.mrb[92].mxu0  ;;  %v3864_v45 = vadd.f32 %v6928_v12, %v5025_v15  ;;  %v3855_v58 = vpop.f32.mrb[157].mxu1  ;;  %v7257_v21 = vld [vmem:[#allocation3_spill] sm:$0xff] }
 0x31b   : > { %4344 = vst.msk [vmem:[%s6947_s7 + $0x64] sm:$0xf] %vm4318_vm0, %v4900_v27  ;;  %v7085_v6 = vadd.f32 %v5183_v4, %v3638_v40  ;;  %v3640_v23 = vpop.f32.mrb[93].mxu0  ;;  %v3856_v62 = vadd.f32 %v6916_v19, %v3855_v58  ;;  %v5026_v33 = vpop.f32.mrb[158].mxu1  ;;  %v5191_v4 = vadd.f32 %v6722_v26, %v7257_v21 }
 0x31c   : > { %v4028_v14 = vmax.f32 %v3864_v45, 0.0  ;;  %v3641_v35 = vpop.f32.mrb[94].mxu0  ;;  %v3867_v20 = vadd.f32 %v6932_v53, %v5026_v33  ;;  %v3858_v12 = vpop.f32.mrb[159].mxu1  ;;  %v7258_v45 = vld [vmem:[#allocation4_spill] sm:$0xff] }
 0x31d   : > { %v4026_v56 = vmax.f32 %v3856_v62, 0.0  ;;  %v7089_v47 = vadd.f32 %v5185_v13, %v3641_v35  ;;  %v3643_v60 = vpop.f32.mrb[95].mxu0  ;;  %v3859_v43 = vadd.f32 %v6920_v8, %v3858_v12  ;;  %v5193_v58 = vadd.f32 %v6722_v26, %v7258_v45 }
 0x31e   : > { %v4905_v25 = vpack.c.bf16 %v4028_v14, %v4028_v14  ;;  %v4029_v28 = vmax.f32 %v3867_v20, 0.0 }
 0x31f   : > { %v4903_v59 = vpack.c.bf16 %v4026_v56, %v4026_v56  ;;  %v4027_v17 = vmax.f32 %v3859_v43, 0.0 }
 0x320   : > { %4349 = vst.msk [vmem:[%s6947_s7 + $0x78] sm:$0xf] %vm4318_vm0, %v4905_v25  ;;  %v4906_v19 = vpack.c.bf16 %v4029_v28, %v4029_v28 }
 0x321   : > { %4347 = vst.msk [vmem:[%s6947_s7 + $0x70] sm:$0xf] %vm4318_vm0, %v4903_v59  ;;  %v4904_v53 = vpack.c.bf16 %v4027_v17, %v4027_v17  ;;  %v5029_v11 = vpop.f32.mrb[160].mxu1  ;;  %v7259_v17 = vld [vmem:[#allocation5_spill] sm:$0xff] }
 0x322   : > { %4350 = vst.msk [vmem:[%s6947_s7 + $0x7c] sm:$0xf] %vm4318_vm0, %v4906_v19  ;;  %v3646_v55 = vpop.f32.mrb[96].mxu0  ;;  %v3880_v8 = vadd.f32 %v6965_v42, %v5029_v11  ;;  %v3871_v63 = vpop.f32.mrb[161].mxu1 }
 0x323   : > { %4348 = vst.msk [vmem:[%s6947_s7 + $0x74] sm:$0xf] %vm4318_vm0, %v4904_v53  ;;  %v7105_v46 = vadd.f32 %v5187_v51, %v3646_v55  ;;  %v3648_v32 = vpop.f32.mrb[97].mxu0  ;;  %v3872_v30 = vadd.f32 %v6940_v61, %v3871_v63  ;;  %v5030_v52 = vpop.f32.mrb[162].mxu1 }
 0x324   : > { %v4032_v31 = vmax.f32 %v3880_v8, 0.0  ;;  %v3649_v41 = vpop.f32.mrb[98].mxu0  ;;  %v3883_v24 = vadd.f32 %v6969_v57, %v5030_v52  ;;  %v3874_v42 = vpop.f32.mrb[163].mxu1  ;;  %v7260_v8 = vld [vmem:[#allocation6_spill] sm:$0xff] }
 0x325   : > { %v4030_v22 = vmax.f32 %v3872_v30, 0.0  ;;  %v7109_v29 = vadd.f32 %v5189_v44, %v3649_v41  ;;  %v3651_v50 = vpop.f32.mrb[99].mxu0  ;;  %v3875_v16 = vadd.f32 %v6949_v0, %v3874_v42 }
 0x326   : > { %v4909_v48 = vpack.c.bf16 %v4032_v31, %v4032_v31  ;;  %v4033_v37 = vmax.f32 %v3883_v24, 0.0 }
 0x327   : > { %v4907_v10 = vpack.c.bf16 %v4030_v22, %v4030_v22  ;;  %v4031_v39 = vmax.f32 %v3875_v16, 0.0 }
 0x328   : > { %4353 = vst.msk [vmem:[%s6947_s7 + $0x88] sm:$0xf] %vm4318_vm0, %v4909_v48  ;;  %v4910_v61 = vpack.c.bf16 %v4033_v37, %v4033_v37 }
 0x329   : > { %4351 = vst.msk [vmem:[%s6947_s7 + $0x80] sm:$0xf] %vm4318_vm0, %v4907_v10  ;;  %v4908_v57 = vpack.c.bf16 %v4031_v39, %v4031_v39  ;;  %v5033_v27 = vpop.f32.mrb[164].mxu1  ;;  %v7261_v39 = vld [vmem:[#allocation7_spill] sm:$0xff] }
 0x32a   : > { %4354 = vst.msk [vmem:[%s6947_s7 + $0x8c] sm:$0xf] %vm4318_vm0, %v4910_v61  ;;  %v3654_v15 = vpop.f32.mrb[100].mxu0  ;;  %v3896_v0 = vadd.f32 %v7005_v2, %v5033_v27  ;;  %v3887_v40 = vpop.f32.mrb[165].mxu1  ;;  %v7262_v27 = vld [vmem:[#allocation8_spill] sm:$0xff] }
 0x32b   : > { %4352 = vst.msk [vmem:[%s6947_s7 + $0x84] sm:$0xf] %vm4318_vm0, %v4908_v57  ;;  %v7125_v13 = vadd.f32 %v5191_v4, %v3654_v15  ;;  %v3656_v23 = vpop.f32.mrb[101].mxu0  ;;  %v3888_v62 = vadd.f32 %v6985_v54, %v3887_v40  ;;  %v5034_v33 = vpop.f32.mrb[166].mxu1 }
 0x32c   : > { %v4036_v14 = vmax.f32 %v3896_v0, 0.0  ;;  %v3657_v35 = vpop.f32.mrb[102].mxu0  ;;  %v3899_v20 = vadd.f32 %v7009_v36, %v5034_v33  ;;  %v3890_v12 = vpop.f32.mrb[167].mxu1  ;;  %v7137_v36 = vld [vmem:[%s7240_s2] ss:$0 sm:$0xff] }
 0x32d   : > { %v4034_v2 = vmax.f32 %v3888_v62, 0.0  ;;  %v7129_v56 = vadd.f32 %v5193_v58, %v3657_v35  ;;  %v3659_v26 = vpop.f32.mrb[103].mxu0  ;;  %v3891_v60 = vadd.f32 %v6989_v7, %v3890_v12  ;;  %v5195_v19 = vadd.f32 %v7137_v36, %v7259_v17 }
 0x32e   : > { %v4913_v43 = vpack.c.bf16 %v4036_v14, %v4036_v14  ;;  %v4037_v25 = vmax.f32 %v3899_v20, 0.0  ;;  %v5197_v63 = vadd.f32 %v7137_v36, %v7260_v8  ;;  %v5199_v61 = vadd.f32 %v7137_v36, %v7261_v39 }
 0x32f   : > { %v4911_v28 = vpack.c.bf16 %v4034_v2, %v4034_v2  ;;  %v4035_v59 = vmax.f32 %v3891_v60, 0.0  ;;  %v5201_v15 = vadd.f32 %v7137_v36, %v7262_v27 }
 0x330   : > { %4357 = vst.msk [vmem:[%s6947_s7 + $0x98] sm:$0xf] %vm4318_vm0, %v4913_v43  ;;  %v4914_v54 = vpack.c.bf16 %v4037_v25, %v4037_v25  ;;  %v7263_v25 = vld [vmem:[#allocation9_spill] sm:$0xff] }
 0x331   : > { %4355 = vst.msk [vmem:[%s6947_s7 + $0x90] sm:$0xf] %vm4318_vm0, %v4911_v28  ;;  %v4912_v51 = vpack.c.bf16 %v4035_v59, %v4035_v59  ;;  %v5037_v7 = vpop.f32.mrb[168].mxu1  ;;  %v5203_v28 = vadd.f32 %v7137_v36, %v7263_v25 }
 0x332   : > { %4358 = vst.msk [vmem:[%s6947_s7 + $0x9c] sm:$0xf] %vm4318_vm0, %v4914_v54  ;;  %v3662_v53 = vpop.f32.mrb[104].mxu0  ;;  %v3912_v11 = vadd.f32 %v7045_v1, %v5037_v7  ;;  %v3903_v55 = vpop.f32.mrb[169].mxu1 }
 0x333   : > { %4356 = vst.msk [vmem:[%s6947_s7 + $0x94] sm:$0xf] %vm4318_vm0, %v4912_v51  ;;  %v7150_v49 = vadd.f32 %v5195_v19, %v3662_v53  ;;  %v3664_v44 = vpop.f32.mrb[105].mxu0  ;;  %v3904_v32 = vadd.f32 %v7025_v34, %v3903_v55  ;;  %v5038_v30 = vpop.f32.mrb[170].mxu1  ;;  %v7264_v19 = vld [vmem:[#allocation10_spill] sm:$0xff] }
 0x334   : > { %v4040_v52 = vmax.f32 %v3912_v11, 0.0  ;;  %v3665_v31 = vpop.f32.mrb[106].mxu0  ;;  %v3915_v41 = vadd.f32 %v7049_v3, %v5038_v30  ;;  %v3906_v1 = vpop.f32.mrb[171].mxu1  ;;  %v5205_v51 = vadd.f32 %v7137_v36, %v7264_v19 }
 0x335   : > { %v4038_v24 = vmax.f32 %v3904_v32, 0.0  ;;  %v7154_v42 = vadd.f32 %v5197_v63, %v3665_v31  ;;  %v3667_v22 = vpop.f32.mrb[107].mxu0  ;;  %v3907_v50 = vadd.f32 %v7029_v9, %v3906_v1 }
 0x336   : > { %v4917_v16 = vpack.c.bf16 %v4040_v52, %v4040_v52  ;;  %v4041_v48 = vmax.f32 %v3915_v41, 0.0 }
 0x337   : > { %v4915_v37 = vpack.c.bf16 %v4038_v24, %v4038_v24  ;;  %v4039_v10 = vmax.f32 %v3907_v50, 0.0  ;;  %v7265_v50 = vld [vmem:[#allocation11_spill] sm:$0xff] }
 0x338   : > { %4361 = vst.msk [vmem:[%s6947_s7 + $0xa8] sm:$0xf] %vm4318_vm0, %v4917_v16  ;;  %v4918_v34 = vpack.c.bf16 %v4041_v48, %v4041_v48  ;;  %v5207_v16 = vadd.f32 %v7137_v36, %v7265_v50 }
 0x339   : > { %4359 = vst.msk [vmem:[%s6947_s7 + $0xa0] sm:$0xf] %vm4318_vm0, %v4915_v37  ;;  %v4916_v3 = vpack.c.bf16 %v4039_v10, %v4039_v10  ;;  %v5041_v21 = vpop.f32.mrb[172].mxu1 }
 0x33a   : > { %4362 = vst.msk [vmem:[%s6947_s7 + $0xac] sm:$0xf] %vm4318_vm0, %v4918_v34  ;;  %v3670_v4 = vpop.f32.mrb[108].mxu0  ;;  %v3928_v9 = vadd.f32 %v7085_v6, %v5041_v21  ;;  %v3919_v57 = vpop.f32.mrb[173].mxu1  ;;  %v7266_v34 = vld [vmem:[#allocation12_spill] sm:$0xff] }
 0x33b   : > { %4360 = vst.msk [vmem:[%s6947_s7 + $0xa4] sm:$0xf] %vm4318_vm0, %v4916_v3  ;;  %v5200_v0 = vadd.f32 %v5199_v61, %v3670_v4  ;;  %v3672_v40 = vpop.f32.mrb[109].mxu0  ;;  %v3920_v45 = vadd.f32 %v7065_v18, %v3919_v57  ;;  %v5042_v58 = vpop.f32.mrb[174].mxu1  ;;  %v5209_v39 = vadd.f32 %v7137_v36, %v7266_v34 }
 0x33c   : > { %v4044_v23 = vmax.f32 %v3928_v9, 0.0  ;;  %v3673_v62 = vpop.f32.mrb[110].mxu0  ;;  %v3931_v33 = vadd.f32 %v7089_v47, %v5042_v58  ;;  %v3922_v14 = vpop.f32.mrb[175].mxu1 }
 0x33d   : > { %v4042_v6 = vmax.f32 %v3920_v45, 0.0  ;;  %v5202_v35 = vadd.f32 %v5201_v15, %v3673_v62  ;;  %v3675_v20 = vpop.f32.mrb[111].mxu0  ;;  %v3923_v12 = vadd.f32 %v7069_v5, %v3922_v14 }
 0x33e   : > { %v4921_v2 = vpack.c.bf16 %v4044_v23, %v4044_v23  ;;  %v4045_v26 = vmax.f32 %v3931_v33, 0.0 }
 0x33f   : > { %v4919_v60 = vpack.c.bf16 %v4042_v6, %v4042_v6  ;;  %v4043_v43 = vmax.f32 %v3923_v12, 0.0  ;;  %v7267_v6 = vld [vmem:[#allocation13_spill] sm:$0xff] }
 0x340   : > { %4365 = vst.msk [vmem:[%s6947_s7 + $0xb8] sm:$0xf] %vm4318_vm0, %v4921_v2  ;;  %v4922_v18 = vpack.c.bf16 %v4045_v26, %v4045_v26  ;;  %v5211_v20 = vadd.f32 %v7137_v36, %v7267_v6 }
 0x341   : > { %4363 = vst.msk [vmem:[%s6947_s7 + $0xb0] sm:$0xf] %vm4318_vm0, %v4919_v60  ;;  %v4920_v47 = vpack.c.bf16 %v4043_v43, %v4043_v43  ;;  %v5045_v59 = vpop.f32.mrb[176].mxu1  ;;  %v7268_v60 = vld [vmem:[#allocation14_spill] sm:$0xff] }
 0x342   : > { %4366 = vst.msk [vmem:[%s6947_s7 + $0xbc] sm:$0xf] %vm4318_vm0, %v4922_v18  ;;  %v3678_v54 = vpop.f32.mrb[112].mxu0  ;;  %v3944_v5 = vadd.f32 %v7125_v13, %v5045_v59  ;;  %v3935_v17 = vpop.f32.mrb[177].mxu1  ;;  %v5213_v43 = vadd.f32 %v7137_v36, %v7268_v60 }
 0x343   : > { %4364 = vst.msk [vmem:[%s6947_s7 + $0xb4] sm:$0xf] %vm4318_vm0, %v4920_v47  ;;  %v5204_v7 = vadd.f32 %v5203_v28, %v3678_v54  ;;  %v3680_v53 = vpop.f32.mrb[113].mxu0  ;;  %v3936_v11 = vadd.f32 %v7105_v46, %v3935_v17  ;;  %v5046_v55 = vpop.f32.mrb[178].mxu1 }
 0x344   : > { %v4048_v8 = vmax.f32 %v3944_v5, 0.0  ;;  %v3681_v63 = vpop.f32.mrb[114].mxu0  ;;  %v3947_v44 = vadd.f32 %v7129_v56, %v5046_v55  ;;  %v3938_v32 = vpop.f32.mrb[179].mxu1 }
 0x345   : > { %v4046_v13 = vmax.f32 %v3936_v11, 0.0  ;;  %v5206_v30 = vadd.f32 %v5205_v51, %v3681_v63  ;;  %v3683_v52 = vpop.f32.mrb[115].mxu0  ;;  %v3939_v31 = vadd.f32 %v7109_v29, %v3938_v32 }
 0x346   : > { %v4925_v41 = vpack.c.bf16 %v4048_v8, %v4048_v8  ;;  %v4049_v1 = vmax.f32 %v3947_v44, 0.0 }
 0x347   : > { %v4923_v24 = vpack.c.bf16 %v4046_v13, %v4046_v13  ;;  %v4047_v22 = vmax.f32 %v3939_v31, 0.0 }
 0x348   : > { %4369 = vst.msk [vmem:[%s6947_s7 + $0xc8] sm:$0xf] %vm4318_vm0, %v4925_v41  ;;  %v4926_v46 = vpack.c.bf16 %v4049_v1, %v4049_v1 }
 0x349   : > { %4367 = vst.msk [vmem:[%s6947_s7 + $0xc0] sm:$0xf] %vm4318_vm0, %v4923_v24  ;;  %v4924_v56 = vpack.c.bf16 %v4047_v22, %v4047_v22  ;;  %v5049_v48 = vpop.f32.mrb[180].mxu1 }
 0x34a   : > { %4370 = vst.msk [vmem:[%s6947_s7 + $0xcc] sm:$0xf] %vm4318_vm0, %v4926_v46  ;;  %v3686_v37 = vpop.f32.mrb[116].mxu0  ;;  %v3960_v10 = vadd.f32 %v5200_v0, %v5049_v48  ;;  %v3951_v29 = vpop.f32.mrb[181].mxu1 }
 0x34b   : > { %4368 = vst.msk [vmem:[%s6947_s7 + $0xc4] sm:$0xf] %vm4318_vm0, %v4924_v56  ;;  %v5208_v61 = vadd.f32 %v5207_v16, %v3686_v37  ;;  %v3688_v3 = vpop.f32.mrb[117].mxu0  ;;  %v3952_v21 = vadd.f32 %v7150_v49, %v3951_v29  ;;  %v5050_v4 = vpop.f32.mrb[182].mxu1 }
 0x34c   : > { %v4052_v9 = vmax.f32 %v3960_v10, 0.0  ;;  %v3689_v57 = vpop.f32.mrb[118].mxu0  ;;  %v3963_v27 = vadd.f32 %v5202_v35, %v5050_v4  ;;  %v3954_v15 = vpop.f32.mrb[183].mxu1 }
 0x34d   : > { %v4050_v40 = vmax.f32 %v3952_v21, 0.0  ;;  %v5210_v0 = vadd.f32 %v5209_v39, %v3689_v57  ;;  %v3691_v45 = vpop.f32.mrb[119].mxu0  ;;  %v3955_v58 = vadd.f32 %v7154_v42, %v3954_v15 }
 0x34e   : > { %v4929_v23 = vpack.c.bf16 %v4052_v9, %v4052_v9  ;;  %v4053_v62 = vmax.f32 %v3963_v27, 0.0 }
 0x34f   : > { %v4927_v33 = vpack.c.bf16 %v4050_v40, %v4050_v40  ;;  %v4051_v14 = vmax.f32 %v3955_v58, 0.0 }
 0x350   : > { %4373 = vst.msk [vmem:[%s6947_s7 + $0xd8] sm:$0xf] %vm4318_vm0, %v4929_v23  ;;  %v4930_v49 = vpack.c.bf16 %v4053_v62, %v4053_v62 }
 0x351   : > { %4371 = vst.msk [vmem:[%s6947_s7 + $0xd0] sm:$0xf] %vm4318_vm0, %v4927_v33  ;;  %v4928_v35 = vpack.c.bf16 %v4051_v14, %v4051_v14  ;;  %v5053_v12 = vpop.f32.mrb[184].mxu1 }
 0x352   : > { %4374 = vst.msk [vmem:[%s6947_s7 + $0xdc] sm:$0xf] %vm4318_vm0, %v4930_v49  ;;  %v3694_v2 = vpop.f32.mrb[120].mxu0  ;;  %v3976_v26 = vadd.f32 %v5208_v61, %v5053_v12  ;;  %v3967_v42 = vpop.f32.mrb[185].mxu1 }
 0x353   : > { %4372 = vst.msk [vmem:[%s6947_s7 + $0xd4] sm:$0xf] %vm4318_vm0, %v4928_v35  ;;  %v5212_v18 = vadd.f32 %v5211_v20, %v3694_v2  ;;  %v3696_v25 = vpop.f32.mrb[121].mxu0  ;;  %v3968_v28 = vadd.f32 %v5204_v7, %v3967_v42  ;;  %v5054_v47 = vpop.f32.mrb[186].mxu1  ;;  %v7269_v7 = vld [vmem:[#allocation15_spill] sm:$0xff] }
 0x354   : > { %v4056_v59 = vmax.f32 %v3976_v26, 0.0  ;;  %v3697_v54 = vpop.f32.mrb[122].mxu0  ;;  %v3979_v5 = vadd.f32 %v5210_v0, %v5054_v47  ;;  %v3970_v17 = vpop.f32.mrb[187].mxu1  ;;  %v5215_v13 = vadd.f32 %v7137_v36, %v7269_v7 }
 0x355   : > { %v4054_v19 = vmax.f32 %v3968_v28, 0.0  ;;  %v5214_v51 = vadd.f32 %v5213_v43, %v3697_v54  ;;  %v3699_v53 = vpop.f32.mrb[123].mxu0  ;;  %v3971_v11 = vadd.f32 %v5206_v30, %v3970_v17  ;;  %v5217_v30 = vadd.f32 %v7137_v36, %v6930_v38 }
 0x356   : > { %v4933_v55 = vpack.c.bf16 %v4056_v59, %v4056_v59  ;;  %v4057_v8 = vmax.f32 %v3979_v5, 0.0 }
 0x357   : > { %v4931_v63 = vpack.c.bf16 %v4054_v19, %v4054_v19  ;;  %v4055_v44 = vmax.f32 %v3971_v11, 0.0 }
 0x358   : > { %4377 = vst.msk [vmem:[%s6947_s7 + $0xe8] sm:$0xf] %vm4318_vm0, %v4933_v55  ;;  %v4934_v32 = vpack.c.bf16 %v4057_v8, %v4057_v8 }
 0x359   : > { %4375 = vst.msk [vmem:[%s6947_s7 + $0xe0] sm:$0xf] %vm4318_vm0, %v4931_v63  ;;  %v4932_v52 = vpack.c.bf16 %v4055_v44, %v4055_v44  ;;  %v5057_v31 = vpop.f32.mrb[188].mxu1 }
 0x35a   : > { %4378 = vst.msk [vmem:[%s6947_s7 + $0xec] sm:$0xf] %vm4318_vm0, %v4934_v32  ;;  %v3702_v41 = vpop.f32.mrb[124].mxu0  ;;  %v3983_v1 = vpop.f32.mrb[189].mxu1 }
 0x35b   : > { %4376 = vst.msk [vmem:[%s6947_s7 + $0xe4] sm:$0xf] %vm4318_vm0, %v4932_v52  ;;  %v5216_v24 = vadd.f32 %v5215_v13, %v3702_v41  ;;  %v3704_v22 = vpop.f32.mrb[125].mxu0  ;;  %v3984_v46 = vadd.f32 %v5212_v18, %v3983_v1  ;;  %v5058_v50 = vpop.f32.mrb[190].mxu1 }
 0x35c   : > { %v3705_v16 = vpop.f32.mrb[126].mxu0  ;;  %v3986_v56 = vpop.f32.mrb[191].mxu1 }
 0x35d   : > { %v3992_v48 = vadd.f32 %v5216_v24, %v5057_v31  ;;  %v4058_v37 = vmax.f32 %v3984_v46, 0.0  ;;  %v5218_v10 = vadd.f32 %v5217_v30, %v3705_v16  ;;  %v3707_v29 = vpop.f32.mrb[127].mxu0  ;;  %v3987_v34 = vadd.f32 %v5214_v51, %v3986_v56 }
 0x35f   : > { %v4060_v39 = vmax.f32 %v3992_v48, 0.0  ;;  %v4935_v61 = vpack.c.bf16 %v4058_v37, %v4058_v37  ;;  %v3995_v38 = vadd.f32 %v5218_v10, %v5058_v50  ;;  %v4059_v36 = vmax.f32 %v3987_v34, 0.0 }
 0x361   : > { %v4937_v3 = vpack.c.bf16 %v4060_v39, %v4060_v39  ;;  %4379 = vst.msk [vmem:[%s6947_s7 + $0xf0] sm:$0xf] %vm4318_vm0, %v4935_v61  ;;  %v4061_v21 = vmax.f32 %v3995_v38, 0.0  ;;  %v4936_v4 = vpack.c.bf16 %v4059_v36, %v4059_v36 }
 0x363   : > { %4381 = vst.msk [vmem:[%s6947_s7 + $0xf8] sm:$0xf] %vm4318_vm0, %v4937_v3  ;;  %v4938_v9 = vpack.c.bf16 %v4061_v21, %v4061_v21  ;;  %4380 = vst.msk [vmem:[%s6947_s7 + $0xf4] sm:$0xf] %vm4318_vm0, %v4936_v4 }
 0x365   : > { %4382 = vst.msk [vmem:[%s6947_s7 + $0xfc] sm:$0xf] %vm4318_vm0, %v4938_v9 }
 0x366 PF: > { %s13_s12 = sadd.s32 1, %s5980_s12  }
 0x367   : > { %p10_p4 = scmp.ge.s32.totalorder %s13_s12, 4  }
 0x369   :  { %12 = sbr.rel (!%p10_p4) target bundleno = 1 (0x1), region = 62 }

// kernel: convnet_v7_forward.7
= control target key start
LH: loop header
LB: loop body
LE: loop exit
PB: predicated region body
PF: predicated region fallthrough
CT: control target
= control target key end

     0   :  { %vm256_vm0 = vcmask 261120   ;;  %vm599_vm1 = vcmask 257024   ;;  %s1458_s0 = inlined_call_operand.vmem [shape: bf16[4,248,32], index: 0, kind: input, shape index: {}]   ;;  %s1459_s1 = inlined_call_operand.vmem [shape: bf16[248,32], index: 1, kind: output, shape index: {}]  }
   0x1   :  { %v698_v0 = vld [vmem:[%s1458_s0] sm:$0xff]   ;;  %v1022_v1 = vld [vmem:[%s1458_s0 + $0x78] sm:$0xff]   ;;  %v1031_v6 = vld [vmem:[%s1458_s0 + $0x170] sm:$0xff]  }
   0x2   :  { %v975_v2 = vld [vmem:[%s1458_s0 + $0xf8] sm:$0xff]   ;;  %v699_v3 = vunpack.c.l.bf16 %v698_v0  ;;  %v760_v4 = vunpack.c.h.bf16 %v1022_v1  ;;  %v700_v7 = vunpack.c.h.bf16 %v698_v0  ;;  %v960_v8 = vld [vmem:[%s1458_s0 + $0x80] sm:$0xff]   ;;  %v884_v10 = vunpack.c.h.bf16 %v1031_v6  ;;  %v945_v14 = vld [vmem:[%s1458_s0 + $0x8] sm:$0xff]  }
   0x3   :  { %v823_v5 = vunpack.c.l.bf16 %v975_v2  ;;  %v991_v9 = vld [vmem:[%s1458_s0 + $0x178] sm:$0xff]   ;;  %v763_v11 = vunpack.c.l.bf16 %v960_v8  ;;  %v824_v12 = vunpack.c.h.bf16 %v975_v2  ;;  %v976_v19 = vld [vmem:[%s1458_s0 + $0x100] sm:$0xff]   ;;  %v961_v24 = vld [vmem:[%s1458_s0 + $0x88] sm:$0xff]   ;;  %v703_v27 = vunpack.c.l.bf16 %v945_v14 }
   0x4   :  { %v887_v13 = vunpack.c.l.bf16 %v991_v9  ;;  %v257_v15 = vsel %vm256_vm0, %v699_v3, 0.0  ;;  %v258_v16 = vsel %vm256_vm0, %v760_v4, 0.0  ;;  %v264_v18 = vsel %vm256_vm0, %v700_v7, 0.0  ;;  %v992_v33 = vld [vmem:[%s1458_s0 + $0x180] sm:$0xff]   ;;  %v946_v38 = vld [vmem:[%s1458_s0 + $0x10] sm:$0xff]   ;;  %v977_v47 = vld [vmem:[%s1458_s0 + $0x108] sm:$0xff]  }
   0x5   :  { %v260_v17 = vsel %vm256_vm0, %v823_v5, 0.0  ;;  %v259_v20 = vadd.f32 %v258_v16, %v257_v15  ;;  %v262_v21 = vsel %vm256_vm0, %v884_v10, 0.0  ;;  %v265_v22 = vsel %vm256_vm0, %v763_v11, 0.0  ;;  %v962_v52 = vld [vmem:[%s1458_s0 + $0x90] sm:$0xff]   ;;  %v993_v61 = vld [vmem:[%s1458_s0 + $0x188] sm:$0xff]   ;;  %v947_v3 = vld [vmem:[%s1458_s0 + $0x18] sm:$0xff]  }
   0x6   :  { %v267_v23 = vsel %vm256_vm0, %v824_v12, 0.0  ;;  %v266_v25 = vadd.f32 %v265_v22, %v264_v18  ;;  %v269_v26 = vsel %vm256_vm0, %v887_v13, 0.0  ;;  %v764_v28 = vunpack.c.h.bf16 %v960_v8  ;;  %v978_v13 = vld [vmem:[%s1458_s0 + $0x110] sm:$0xff]   ;;  %v963_v22 = vld [vmem:[%s1458_s0 + $0x98] sm:$0xff]  }
   0x7   :  { %v261_v29 = vadd.f32 %v260_v17, %v259_v20  ;;  %v827_v30 = vunpack.c.l.bf16 %v976_v19  ;;  %v888_v31 = vunpack.c.h.bf16 %v991_v9  ;;  %v704_v32 = vunpack.c.h.bf16 %v945_v14 }
   0x8   :  { %v268_v34 = vadd.f32 %v267_v23, %v266_v25  ;;  %v271_v35 = vsel %vm256_vm0, %v703_v27, 0.0  ;;  %v272_v36 = vsel %vm256_vm0, %v764_v28, 0.0  ;;  %v767_v37 = vunpack.c.l.bf16 %v961_v24  ;;  %v994_v27 = vld [vmem:[%s1458_s0 + $0x190] sm:$0xff]  }
   0x9   :  { %v263_v39 = vadd.f32 %v262_v21, %v261_v29  ;;  %v273_v40 = vadd.f32 %v272_v36, %v271_v35  ;;  %v274_v41 = vsel %vm256_vm0, %v827_v30, 0.0  ;;  %v276_v42 = vsel %vm256_vm0, %v888_v31, 0.0 }
   0xa   :  { %v270_v43 = vadd.f32 %v269_v26, %v268_v34  ;;  %v828_v44 = vunpack.c.h.bf16 %v976_v19  ;;  %v891_v45 = vunpack.c.l.bf16 %v992_v33  ;;  %v278_v46 = vsel %vm256_vm0, %v704_v32, 0.0  ;;  %v948_v32 = vld [vmem:[%s1458_s0 + $0x20] sm:$0xff]  }
   0xb   :  { %v666_v48 = vpack.c.bf16 %v263_v39, %v263_v39  ;;  %v275_v49 = vadd.f32 %v274_v41, %v273_v40  ;;  %v279_v50 = vsel %vm256_vm0, %v767_v37, 0.0  ;;  %v707_v51 = vunpack.c.l.bf16 %v946_v38  ;;  %v979_v41 = vld [vmem:[%s1458_s0 + $0x118] sm:$0xff]  }
   0xc   :  { %v667_v53 = vpack.c.bf16 %v270_v43, %v270_v43  ;;  %v280_v54 = vadd.f32 %v279_v50, %v278_v46  ;;  %v281_v55 = vsel %vm256_vm0, %v828_v44, 0.0  ;;  %v283_v56 = vsel %vm256_vm0, %v891_v45, 0.0  ;;  %v964_v46 = vld [vmem:[%s1458_s0 + $0xa0] sm:$0xff]  }
   0xd   :  { %600 = vst.msk [vmem:[%s1459_s1] sm:$0xf] %vm599_vm1, %v666_v48  ;;  %v277_v57 = vadd.f32 %v276_v42, %v275_v49  ;;  %v768_v58 = vunpack.c.h.bf16 %v961_v24  ;;  %v831_v59 = vunpack.c.l.bf16 %v977_v47  ;;  %v892_v60 = vunpack.c.h.bf16 %v992_v33 }
   0xe   :  { %601 = vst.msk [vmem:[%s1459_s1 + $0x4] sm:$0xf] %vm599_vm1, %v667_v53  ;;  %v282_v62 = vadd.f32 %v281_v55, %v280_v54  ;;  %v285_v63 = vsel %vm256_vm0, %v707_v51, 0.0  ;;  %v708_v0 = vunpack.c.h.bf16 %v946_v38  ;;  %v771_v2 = vunpack.c.l.bf16 %v962_v52  ;;  %v995_v55 = vld [vmem:[%s1458_s0 + $0x198] sm:$0xff]  }
   0xf   :  { %v668_v4 = vpack.c.bf16 %v277_v57, %v277_v57  ;;  %v286_v5 = vsel %vm256_vm0, %v768_v58, 0.0  ;;  %v288_v7 = vsel %vm256_vm0, %v831_v59, 0.0  ;;  %v290_v8 = vsel %vm256_vm0, %v892_v60, 0.0  ;;  %v949_v60 = vld [vmem:[%s1458_s0 + $0x28] sm:$0xff]  }
  0x10   :  { %v284_v9 = vadd.f32 %v283_v56, %v282_v62  ;;  %v287_v10 = vadd.f32 %v286_v5, %v285_v63  ;;  %v832_v11 = vunpack.c.h.bf16 %v977_v47  ;;  %v895_v12 = vunpack.c.l.bf16 %v993_v61 }
  0x11   :  { %602 = vst.msk [vmem:[%s1459_s1 + $0x8] sm:$0xf] %vm599_vm1, %v668_v4  ;;  %v292_v14 = vsel %vm256_vm0, %v708_v0, 0.0  ;;  %v293_v15 = vsel %vm256_vm0, %v771_v2, 0.0  ;;  %v711_v16 = vunpack.c.l.bf16 %v947_v3  ;;  %v772_v17 = vunpack.c.h.bf16 %v962_v52 }
  0x12   :  { %v669_v18 = vpack.c.bf16 %v284_v9, %v284_v9  ;;  %v289_v19 = vadd.f32 %v288_v7, %v287_v10  ;;  %v294_v20 = vadd.f32 %v293_v15, %v292_v14  ;;  %v295_v21 = vsel %vm256_vm0, %v832_v11, 0.0  ;;  %v980_v7 = vld [vmem:[%s1458_s0 + $0x120] sm:$0xff]  }
  0x13   :  { %v297_v23 = vsel %vm256_vm0, %v895_v12, 0.0  ;;  %v835_v24 = vunpack.c.l.bf16 %v978_v13  ;;  %v896_v25 = vunpack.c.h.bf16 %v993_v61  ;;  %v299_v26 = vsel %vm256_vm0, %v711_v16, 0.0  ;;  %v965_v16 = vld [vmem:[%s1458_s0 + $0xa8] sm:$0xff]  }
  0x14   :  { %603 = vst.msk [vmem:[%s1459_s1 + $0xc] sm:$0xf] %vm599_vm1, %v669_v18  ;;  %v291_v28 = vadd.f32 %v290_v8, %v289_v19  ;;  %v296_v29 = vadd.f32 %v295_v21, %v294_v20  ;;  %v300_v30 = vsel %vm256_vm0, %v772_v17, 0.0  ;;  %v712_v31 = vunpack.c.h.bf16 %v947_v3  ;;  %v996_v21 = vld [vmem:[%s1458_s0 + $0x1a0] sm:$0xff]  }
  0x15   :  { %v301_v33 = vadd.f32 %v300_v30, %v299_v26  ;;  %v302_v34 = vsel %vm256_vm0, %v835_v24, 0.0  ;;  %v304_v35 = vsel %vm256_vm0, %v896_v25, 0.0  ;;  %v775_v36 = vunpack.c.l.bf16 %v963_v22  ;;  %v950_v26 = vld [vmem:[%s1458_s0 + $0x30] sm:$0xff]  }
  0x16   :  { %v670_v37 = vpack.c.bf16 %v291_v28, %v291_v28  ;;  %v298_v38 = vadd.f32 %v297_v23, %v296_v29  ;;  %v836_v39 = vunpack.c.h.bf16 %v978_v13  ;;  %v899_v40 = vunpack.c.l.bf16 %v994_v27 }
  0x17   :  { %v303_v42 = vadd.f32 %v302_v34, %v301_v33  ;;  %v306_v43 = vsel %vm256_vm0, %v712_v31, 0.0  ;;  %v307_v44 = vsel %vm256_vm0, %v775_v36, 0.0  ;;  %v715_v45 = vunpack.c.l.bf16 %v948_v32 }
  0x18   :  { %604 = vst.msk [vmem:[%s1459_s1 + $0x10] sm:$0xf] %vm599_vm1, %v670_v37  ;;  %v671_v47 = vpack.c.bf16 %v298_v38, %v298_v38  ;;  %v308_v48 = vadd.f32 %v307_v44, %v306_v43  ;;  %v309_v49 = vsel %vm256_vm0, %v836_v39, 0.0  ;;  %v311_v50 = vsel %vm256_vm0, %v899_v40, 0.0  ;;  %v966_v40 = vld [vmem:[%s1458_s0 + $0xb0] sm:$0xff]  }
  0x19   :  { %v305_v51 = vadd.f32 %v304_v35, %v303_v42  ;;  %v776_v52 = vunpack.c.h.bf16 %v963_v22  ;;  %v839_v53 = vunpack.c.l.bf16 %v979_v41  ;;  %v900_v54 = vunpack.c.h.bf16 %v994_v27  ;;  %v981_v35 = vld [vmem:[%s1458_s0 + $0x128] sm:$0xff]  }
  0x1a   :  { %605 = vst.msk [vmem:[%s1459_s1 + $0x14] sm:$0xf] %vm599_vm1, %v671_v47  ;;  %v310_v56 = vadd.f32 %v309_v49, %v308_v48  ;;  %v313_v57 = vsel %vm256_vm0, %v715_v45, 0.0  ;;  %v716_v58 = vunpack.c.h.bf16 %v948_v32  ;;  %v779_v59 = vunpack.c.l.bf16 %v964_v46  ;;  %v997_v49 = vld [vmem:[%s1458_s0 + $0x1a8] sm:$0xff]  }
  0x1b   :  { %v672_v61 = vpack.c.bf16 %v305_v51, %v305_v51  ;;  %v314_v62 = vsel %vm256_vm0, %v776_v52, 0.0  ;;  %v316_v63 = vsel %vm256_vm0, %v839_v53, 0.0  ;;  %v318_v0 = vsel %vm256_vm0, %v900_v54, 0.0  ;;  %v951_v54 = vld [vmem:[%s1458_s0 + $0x38] sm:$0xff]  }
  0x1c   :  { %v312_v2 = vadd.f32 %v311_v50, %v310_v56  ;;  %v315_v3 = vadd.f32 %v314_v62, %v313_v57  ;;  %v840_v4 = vunpack.c.h.bf16 %v979_v41  ;;  %v903_v5 = vunpack.c.l.bf16 %v995_v55 }
  0x1d   :  { %606 = vst.msk [vmem:[%s1459_s1 + $0x18] sm:$0xf] %vm599_vm1, %v672_v61  ;;  %v320_v8 = vsel %vm256_vm0, %v716_v58, 0.0  ;;  %v321_v9 = vsel %vm256_vm0, %v779_v59, 0.0  ;;  %v719_v10 = vunpack.c.l.bf16 %v949_v60  ;;  %v780_v11 = vunpack.c.h.bf16 %v964_v46 }
  0x1e   :  { %v673_v12 = vpack.c.bf16 %v312_v2, %v312_v2  ;;  %v317_v13 = vadd.f32 %v316_v63, %v315_v3  ;;  %v322_v14 = vadd.f32 %v321_v9, %v320_v8  ;;  %v323_v15 = vsel %vm256_vm0, %v840_v4, 0.0  ;;  %v982_v63 = vld [vmem:[%s1458_s0 + $0x130] sm:$0xff]  }
  0x1f   :  { %v325_v17 = vsel %vm256_vm0, %v903_v5, 0.0  ;;  %v843_v18 = vunpack.c.l.bf16 %v980_v7  ;;  %v904_v19 = vunpack.c.h.bf16 %v995_v55  ;;  %v327_v20 = vsel %vm256_vm0, %v719_v10, 0.0  ;;  %v967_v10 = vld [vmem:[%s1458_s0 + $0xb8] sm:$0xff]  }
  0x20   :  { %607 = vst.msk [vmem:[%s1459_s1 + $0x1c] sm:$0xf] %vm599_vm1, %v673_v12  ;;  %v319_v22 = vadd.f32 %v318_v0, %v317_v13  ;;  %v324_v23 = vadd.f32 %v323_v15, %v322_v14  ;;  %v328_v24 = vsel %vm256_vm0, %v780_v11, 0.0  ;;  %v720_v25 = vunpack.c.h.bf16 %v949_v60  ;;  %v998_v15 = vld [vmem:[%s1458_s0 + $0x1b0] sm:$0xff]  }
  0x21   :  { %v329_v27 = vadd.f32 %v328_v24, %v327_v20  ;;  %v330_v28 = vsel %vm256_vm0, %v843_v18, 0.0  ;;  %v332_v29 = vsel %vm256_vm0, %v904_v19, 0.0  ;;  %v783_v30 = vunpack.c.l.bf16 %v965_v16  ;;  %v952_v20 = vld [vmem:[%s1458_s0 + $0x40] sm:$0xff]  }
  0x22   :  { %v674_v31 = vpack.c.bf16 %v319_v22, %v319_v22  ;;  %v326_v32 = vadd.f32 %v325_v17, %v324_v23  ;;  %v844_v33 = vunpack.c.h.bf16 %v980_v7  ;;  %v907_v34 = vunpack.c.l.bf16 %v996_v21 }
  0x23   :  { %v331_v36 = vadd.f32 %v330_v28, %v329_v27  ;;  %v334_v37 = vsel %vm256_vm0, %v720_v25, 0.0  ;;  %v335_v38 = vsel %vm256_vm0, %v783_v30, 0.0  ;;  %v723_v39 = vunpack.c.l.bf16 %v950_v26 }
  0x24   :  { %608 = vst.msk [vmem:[%s1459_s1 + $0x20] sm:$0xf] %vm599_vm1, %v674_v31  ;;  %v675_v41 = vpack.c.bf16 %v326_v32, %v326_v32  ;;  %v336_v42 = vadd.f32 %v335_v38, %v334_v37  ;;  %v337_v43 = vsel %vm256_vm0, %v844_v33, 0.0  ;;  %v339_v44 = vsel %vm256_vm0, %v907_v34, 0.0  ;;  %v968_v34 = vld [vmem:[%s1458_s0 + $0xc0] sm:$0xff]  }
  0x25   :  { %v333_v45 = vadd.f32 %v332_v29, %v331_v36  ;;  %v784_v46 = vunpack.c.h.bf16 %v965_v16  ;;  %v847_v47 = vunpack.c.l.bf16 %v981_v35  ;;  %v908_v48 = vunpack.c.h.bf16 %v996_v21  ;;  %v983_v29 = vld [vmem:[%s1458_s0 + $0x138] sm:$0xff]  }
  0x26   :  { %609 = vst.msk [vmem:[%s1459_s1 + $0x24] sm:$0xf] %vm599_vm1, %v675_v41  ;;  %v338_v50 = vadd.f32 %v337_v43, %v336_v42  ;;  %v341_v51 = vsel %vm256_vm0, %v723_v39, 0.0  ;;  %v724_v52 = vunpack.c.h.bf16 %v950_v26  ;;  %v787_v53 = vunpack.c.l.bf16 %v966_v40  ;;  %v999_v43 = vld [vmem:[%s1458_s0 + $0x1b8] sm:$0xff]  }
  0x27   :  { %v676_v55 = vpack.c.bf16 %v333_v45, %v333_v45  ;;  %v342_v56 = vsel %vm256_vm0, %v784_v46, 0.0  ;;  %v344_v57 = vsel %vm256_vm0, %v847_v47, 0.0  ;;  %v346_v58 = vsel %vm256_vm0, %v908_v48, 0.0  ;;  %v953_v48 = vld [vmem:[%s1458_s0 + $0x48] sm:$0xff]  }
  0x28   :  { %v340_v59 = vadd.f32 %v339_v44, %v338_v50  ;;  %v343_v60 = vadd.f32 %v342_v56, %v341_v51  ;;  %v848_v61 = vunpack.c.h.bf16 %v981_v35  ;;  %v911_v62 = vunpack.c.l.bf16 %v997_v49 }
  0x29   :  { %610 = vst.msk [vmem:[%s1459_s1 + $0x28] sm:$0xf] %vm599_vm1, %v676_v55  ;;  %v348_v0 = vsel %vm256_vm0, %v724_v52, 0.0  ;;  %v349_v2 = vsel %vm256_vm0, %v787_v53, 0.0  ;;  %v727_v3 = vunpack.c.l.bf16 %v951_v54  ;;  %v788_v4 = vunpack.c.h.bf16 %v966_v40 }
  0x2a   :  { %v677_v5 = vpack.c.bf16 %v340_v59, %v340_v59  ;;  %v345_v7 = vadd.f32 %v344_v57, %v343_v60  ;;  %v350_v8 = vadd.f32 %v349_v2, %v348_v0  ;;  %v351_v9 = vsel %vm256_vm0, %v848_v61, 0.0  ;;  %v984_v57 = vld [vmem:[%s1458_s0 + $0x140] sm:$0xff]  }
  0x2b   :  { %v353_v11 = vsel %vm256_vm0, %v911_v62, 0.0  ;;  %v851_v12 = vunpack.c.l.bf16 %v982_v63  ;;  %v912_v13 = vunpack.c.h.bf16 %v997_v49  ;;  %v355_v14 = vsel %vm256_vm0, %v727_v3, 0.0  ;;  %v969_v3 = vld [vmem:[%s1458_s0 + $0xc8] sm:$0xff]  }
  0x2c   :  { %611 = vst.msk [vmem:[%s1459_s1 + $0x2c] sm:$0xf] %vm599_vm1, %v677_v5  ;;  %v347_v16 = vadd.f32 %v346_v58, %v345_v7  ;;  %v352_v17 = vadd.f32 %v351_v9, %v350_v8  ;;  %v356_v18 = vsel %vm256_vm0, %v788_v4, 0.0  ;;  %v728_v19 = vunpack.c.h.bf16 %v951_v54  ;;  %v1000_v9 = vld [vmem:[%s1458_s0 + $0x1c0] sm:$0xff]  }
  0x2d   :  { %v357_v21 = vadd.f32 %v356_v18, %v355_v14  ;;  %v358_v22 = vsel %vm256_vm0, %v851_v12, 0.0  ;;  %v360_v23 = vsel %vm256_vm0, %v912_v13, 0.0  ;;  %v791_v24 = vunpack.c.l.bf16 %v967_v10  ;;  %v954_v14 = vld [vmem:[%s1458_s0 + $0x50] sm:$0xff]  }
  0x2e   :  { %v678_v25 = vpack.c.bf16 %v347_v16, %v347_v16  ;;  %v354_v26 = vadd.f32 %v353_v11, %v352_v17  ;;  %v852_v27 = vunpack.c.h.bf16 %v982_v63  ;;  %v915_v28 = vunpack.c.l.bf16 %v998_v15 }
  0x2f   :  { %v359_v30 = vadd.f32 %v358_v22, %v357_v21  ;;  %v362_v31 = vsel %vm256_vm0, %v728_v19, 0.0  ;;  %v363_v32 = vsel %vm256_vm0, %v791_v24, 0.0  ;;  %v731_v33 = vunpack.c.l.bf16 %v952_v20 }
  0x30   :  { %612 = vst.msk [vmem:[%s1459_s1 + $0x30] sm:$0xf] %vm599_vm1, %v678_v25  ;;  %v679_v35 = vpack.c.bf16 %v354_v26, %v354_v26  ;;  %v364_v36 = vadd.f32 %v363_v32, %v362_v31  ;;  %v365_v37 = vsel %vm256_vm0, %v852_v27, 0.0  ;;  %v367_v38 = vsel %vm256_vm0, %v915_v28, 0.0  ;;  %v970_v28 = vld [vmem:[%s1458_s0 + $0xd0] sm:$0xff]  }
  0x31   :  { %v361_v39 = vadd.f32 %v360_v23, %v359_v30  ;;  %v792_v40 = vunpack.c.h.bf16 %v967_v10  ;;  %v855_v41 = vunpack.c.l.bf16 %v983_v29  ;;  %v916_v42 = vunpack.c.h.bf16 %v998_v15  ;;  %v985_v23 = vld [vmem:[%s1458_s0 + $0x148] sm:$0xff]  }
  0x32   :  { %613 = vst.msk [vmem:[%s1459_s1 + $0x34] sm:$0xf] %vm599_vm1, %v679_v35  ;;  %v366_v44 = vadd.f32 %v365_v37, %v364_v36  ;;  %v369_v45 = vsel %vm256_vm0, %v731_v33, 0.0  ;;  %v732_v46 = vunpack.c.h.bf16 %v952_v20  ;;  %v795_v47 = vunpack.c.l.bf16 %v968_v34  ;;  %v1001_v37 = vld [vmem:[%s1458_s0 + $0x1c8] sm:$0xff]  }
  0x33   :  { %v680_v49 = vpack.c.bf16 %v361_v39, %v361_v39  ;;  %v370_v50 = vsel %vm256_vm0, %v792_v40, 0.0  ;;  %v372_v51 = vsel %vm256_vm0, %v855_v41, 0.0  ;;  %v374_v52 = vsel %vm256_vm0, %v916_v42, 0.0  ;;  %v955_v42 = vld [vmem:[%s1458_s0 + $0x58] sm:$0xff]  }
  0x34   :  { %v368_v53 = vadd.f32 %v367_v38, %v366_v44  ;;  %v371_v54 = vadd.f32 %v370_v50, %v369_v45  ;;  %v856_v55 = vunpack.c.h.bf16 %v983_v29  ;;  %v919_v56 = vunpack.c.l.bf16 %v999_v43 }
  0x35   :  { %614 = vst.msk [vmem:[%s1459_s1 + $0x38] sm:$0xf] %vm599_vm1, %v680_v49  ;;  %v376_v58 = vsel %vm256_vm0, %v732_v46, 0.0  ;;  %v377_v59 = vsel %vm256_vm0, %v795_v47, 0.0  ;;  %v735_v60 = vunpack.c.l.bf16 %v953_v48  ;;  %v796_v61 = vunpack.c.h.bf16 %v968_v34 }
  0x36   :  { %v681_v62 = vpack.c.bf16 %v368_v53, %v368_v53  ;;  %v373_v63 = vadd.f32 %v372_v51, %v371_v54  ;;  %v378_v0 = vadd.f32 %v377_v59, %v376_v58  ;;  %v379_v2 = vsel %vm256_vm0, %v856_v55, 0.0  ;;  %v986_v51 = vld [vmem:[%s1458_s0 + $0x150] sm:$0xff]  }
  0x37   :  { %v381_v4 = vsel %vm256_vm0, %v919_v56, 0.0  ;;  %v859_v5 = vunpack.c.l.bf16 %v984_v57  ;;  %v920_v7 = vunpack.c.h.bf16 %v999_v43  ;;  %v383_v8 = vsel %vm256_vm0, %v735_v60, 0.0  ;;  %v971_v60 = vld [vmem:[%s1458_s0 + $0xd8] sm:$0xff]  }
  0x38   :  { %615 = vst.msk [vmem:[%s1459_s1 + $0x3c] sm:$0xf] %vm599_vm1, %v681_v62  ;;  %v375_v10 = vadd.f32 %v374_v52, %v373_v63  ;;  %v380_v11 = vadd.f32 %v379_v2, %v378_v0  ;;  %v384_v12 = vsel %vm256_vm0, %v796_v61, 0.0  ;;  %v736_v13 = vunpack.c.h.bf16 %v953_v48  ;;  %v1002_v2 = vld [vmem:[%s1458_s0 + $0x1d0] sm:$0xff]  }
  0x39   :  { %v385_v15 = vadd.f32 %v384_v12, %v383_v8  ;;  %v386_v16 = vsel %vm256_vm0, %v859_v5, 0.0  ;;  %v388_v17 = vsel %vm256_vm0, %v920_v7, 0.0  ;;  %v799_v18 = vunpack.c.l.bf16 %v969_v3  ;;  %v956_v8 = vld [vmem:[%s1458_s0 + $0x60] sm:$0xff]  }
  0x3a   :  { %v682_v19 = vpack.c.bf16 %v375_v10, %v375_v10  ;;  %v382_v20 = vadd.f32 %v381_v4, %v380_v11  ;;  %v860_v21 = vunpack.c.h.bf16 %v984_v57  ;;  %v923_v22 = vunpack.c.l.bf16 %v1000_v9 }
  0x3b   :  { %v387_v24 = vadd.f32 %v386_v16, %v385_v15  ;;  %v390_v25 = vsel %vm256_vm0, %v736_v13, 0.0  ;;  %v391_v26 = vsel %vm256_vm0, %v799_v18, 0.0  ;;  %v739_v27 = vunpack.c.l.bf16 %v954_v14 }
  0x3c   :  { %616 = vst.msk [vmem:[%s1459_s1 + $0x40] sm:$0xf] %vm599_vm1, %v682_v19  ;;  %v683_v29 = vpack.c.bf16 %v382_v20, %v382_v20  ;;  %v392_v30 = vadd.f32 %v391_v26, %v390_v25  ;;  %v393_v31 = vsel %vm256_vm0, %v860_v21, 0.0  ;;  %v395_v32 = vsel %vm256_vm0, %v923_v22, 0.0  ;;  %v972_v22 = vld [vmem:[%s1458_s0 + $0xe0] sm:$0xff]  }
  0x3d   :  { %v389_v33 = vadd.f32 %v388_v17, %v387_v24  ;;  %v800_v34 = vunpack.c.h.bf16 %v969_v3  ;;  %v863_v35 = vunpack.c.l.bf16 %v985_v23  ;;  %v924_v36 = vunpack.c.h.bf16 %v1000_v9  ;;  %v987_v17 = vld [vmem:[%s1458_s0 + $0x158] sm:$0xff]  }
  0x3e   :  { %617 = vst.msk [vmem:[%s1459_s1 + $0x44] sm:$0xf] %vm599_vm1, %v683_v29  ;;  %v394_v38 = vadd.f32 %v393_v31, %v392_v30  ;;  %v397_v39 = vsel %vm256_vm0, %v739_v27, 0.0  ;;  %v740_v40 = vunpack.c.h.bf16 %v954_v14  ;;  %v803_v41 = vunpack.c.l.bf16 %v970_v28  ;;  %v1003_v31 = vld [vmem:[%s1458_s0 + $0x1d8] sm:$0xff]  }
  0x3f   :  { %v684_v43 = vpack.c.bf16 %v389_v33, %v389_v33  ;;  %v398_v44 = vsel %vm256_vm0, %v800_v34, 0.0  ;;  %v400_v45 = vsel %vm256_vm0, %v863_v35, 0.0  ;;  %v402_v46 = vsel %vm256_vm0, %v924_v36, 0.0  ;;  %v957_v36 = vld [vmem:[%s1458_s0 + $0x68] sm:$0xff]  }
  0x40   :  { %v396_v47 = vadd.f32 %v395_v32, %v394_v38  ;;  %v399_v48 = vadd.f32 %v398_v44, %v397_v39  ;;  %v864_v49 = vunpack.c.h.bf16 %v985_v23  ;;  %v927_v50 = vunpack.c.l.bf16 %v1001_v37 }
  0x41   :  { %618 = vst.msk [vmem:[%s1459_s1 + $0x48] sm:$0xf] %vm599_vm1, %v684_v43  ;;  %v404_v52 = vsel %vm256_vm0, %v740_v40, 0.0  ;;  %v405_v53 = vsel %vm256_vm0, %v803_v41, 0.0  ;;  %v743_v54 = vunpack.c.l.bf16 %v955_v42  ;;  %v804_v55 = vunpack.c.h.bf16 %v970_v28 }
  0x42   :  { %v685_v56 = vpack.c.bf16 %v396_v47, %v396_v47  ;;  %v401_v57 = vadd.f32 %v400_v45, %v399_v48  ;;  %v406_v58 = vadd.f32 %v405_v53, %v404_v52  ;;  %v407_v59 = vsel %vm256_vm0, %v864_v49, 0.0  ;;  %v988_v45 = vld [vmem:[%s1458_s0 + $0x160] sm:$0xff]  }
  0x43   :  { %v409_v61 = vsel %vm256_vm0, %v927_v50, 0.0  ;;  %v867_v62 = vunpack.c.l.bf16 %v986_v51  ;;  %v928_v63 = vunpack.c.h.bf16 %v1001_v37  ;;  %v411_v0 = vsel %vm256_vm0, %v743_v54, 0.0  ;;  %v973_v54 = vld [vmem:[%s1458_s0 + $0xe8] sm:$0xff]  }
  0x44   :  { %619 = vst.msk [vmem:[%s1459_s1 + $0x4c] sm:$0xf] %vm599_vm1, %v685_v56  ;;  %v403_v3 = vadd.f32 %v402_v46, %v401_v57  ;;  %v408_v4 = vadd.f32 %v407_v59, %v406_v58  ;;  %v412_v5 = vsel %vm256_vm0, %v804_v55, 0.0  ;;  %v744_v7 = vunpack.c.h.bf16 %v955_v42  ;;  %v1004_v59 = vld [vmem:[%s1458_s0 + $0x1e0] sm:$0xff]  }
  0x45   :  { %v413_v9 = vadd.f32 %v412_v5, %v411_v0  ;;  %v414_v10 = vsel %vm256_vm0, %v867_v62, 0.0  ;;  %v416_v11 = vsel %vm256_vm0, %v928_v63, 0.0  ;;  %v807_v12 = vunpack.c.l.bf16 %v971_v60  ;;  %v958_v0 = vld [vmem:[%s1458_s0 + $0x70] sm:$0xff]  }
  0x46   :  { %v686_v13 = vpack.c.bf16 %v403_v3, %v403_v3  ;;  %v410_v14 = vadd.f32 %v409_v61, %v408_v4  ;;  %v868_v15 = vunpack.c.h.bf16 %v986_v51  ;;  %v931_v16 = vunpack.c.l.bf16 %v1002_v2 }
  0x47   :  { %v415_v18 = vadd.f32 %v414_v10, %v413_v9  ;;  %v418_v19 = vsel %vm256_vm0, %v744_v7, 0.0  ;;  %v419_v20 = vsel %vm256_vm0, %v807_v12, 0.0  ;;  %v747_v21 = vunpack.c.l.bf16 %v956_v8 }
  0x48   :  { %620 = vst.msk [vmem:[%s1459_s1 + $0x50] sm:$0xf] %vm599_vm1, %v686_v13  ;;  %v687_v23 = vpack.c.bf16 %v410_v14, %v410_v14  ;;  %v420_v24 = vadd.f32 %v419_v20, %v418_v19  ;;  %v421_v25 = vsel %vm256_vm0, %v868_v15, 0.0  ;;  %v423_v26 = vsel %vm256_vm0, %v931_v16, 0.0  ;;  %v974_v16 = vld [vmem:[%s1458_s0 + $0xf0] sm:$0xff]  }
  0x49   :  { %v417_v27 = vadd.f32 %v416_v11, %v415_v18  ;;  %v808_v28 = vunpack.c.h.bf16 %v971_v60  ;;  %v871_v29 = vunpack.c.l.bf16 %v987_v17  ;;  %v932_v30 = vunpack.c.h.bf16 %v1002_v2  ;;  %v989_v11 = vld [vmem:[%s1458_s0 + $0x168] sm:$0xff]  }
  0x4a   :  { %621 = vst.msk [vmem:[%s1459_s1 + $0x54] sm:$0xf] %vm599_vm1, %v687_v23  ;;  %v422_v32 = vadd.f32 %v421_v25, %v420_v24  ;;  %v425_v33 = vsel %vm256_vm0, %v747_v21, 0.0  ;;  %v748_v34 = vunpack.c.h.bf16 %v956_v8  ;;  %v811_v35 = vunpack.c.l.bf16 %v972_v22  ;;  %v1005_v25 = vld [vmem:[%s1458_s0 + $0x1e8] sm:$0xff]  }
  0x4b   :  { %v688_v37 = vpack.c.bf16 %v417_v27, %v417_v27  ;;  %v426_v38 = vsel %vm256_vm0, %v808_v28, 0.0  ;;  %v428_v39 = vsel %vm256_vm0, %v871_v29, 0.0  ;;  %v430_v40 = vsel %vm256_vm0, %v932_v30, 0.0 }
  0x4c   :  { %v424_v41 = vadd.f32 %v423_v26, %v422_v32  ;;  %v427_v42 = vadd.f32 %v426_v38, %v425_v33  ;;  %v872_v43 = vunpack.c.h.bf16 %v987_v17  ;;  %v935_v44 = vunpack.c.l.bf16 %v1003_v31 }
  0x4d   :  { %622 = vst.msk [vmem:[%s1459_s1 + $0x58] sm:$0xf] %vm599_vm1, %v688_v37  ;;  %v432_v46 = vsel %vm256_vm0, %v748_v34, 0.0  ;;  %v433_v47 = vsel %vm256_vm0, %v811_v35, 0.0  ;;  %v751_v48 = vunpack.c.l.bf16 %v957_v36  ;;  %v812_v49 = vunpack.c.h.bf16 %v972_v22 }
  0x4e   :  { %v689_v50 = vpack.c.bf16 %v424_v41, %v424_v41  ;;  %v429_v51 = vadd.f32 %v428_v39, %v427_v42  ;;  %v434_v52 = vadd.f32 %v433_v47, %v432_v46  ;;  %v435_v53 = vsel %vm256_vm0, %v872_v43, 0.0 }
  0x4f   :  { %v437_v55 = vsel %vm256_vm0, %v935_v44, 0.0  ;;  %v875_v56 = vunpack.c.l.bf16 %v988_v45  ;;  %v936_v57 = vunpack.c.h.bf16 %v1003_v31  ;;  %v439_v58 = vsel %vm256_vm0, %v751_v48, 0.0 }
  0x50   :  { %623 = vst.msk [vmem:[%s1459_s1 + $0x5c] sm:$0xf] %vm599_vm1, %v689_v50  ;;  %v431_v60 = vadd.f32 %v430_v40, %v429_v51  ;;  %v436_v61 = vadd.f32 %v435_v53, %v434_v52  ;;  %v440_v62 = vsel %vm256_vm0, %v812_v49, 0.0  ;;  %v752_v63 = vunpack.c.h.bf16 %v957_v36 }
  0x51   :  { %v441_v2 = vadd.f32 %v440_v62, %v439_v58  ;;  %v442_v3 = vsel %vm256_vm0, %v875_v56, 0.0  ;;  %v444_v4 = vsel %vm256_vm0, %v936_v57, 0.0  ;;  %v815_v5 = vunpack.c.l.bf16 %v973_v54 }
  0x52   :  { %v690_v7 = vpack.c.bf16 %v431_v60, %v431_v60  ;;  %v438_v8 = vadd.f32 %v437_v55, %v436_v61  ;;  %v876_v9 = vunpack.c.h.bf16 %v988_v45  ;;  %v939_v10 = vunpack.c.l.bf16 %v1004_v59 }
  0x53   :  { %v443_v12 = vadd.f32 %v442_v3, %v441_v2  ;;  %v446_v13 = vsel %vm256_vm0, %v752_v63, 0.0  ;;  %v447_v14 = vsel %vm256_vm0, %v815_v5, 0.0  ;;  %v755_v15 = vunpack.c.l.bf16 %v958_v0 }
  0x54   :  { %624 = vst.msk [vmem:[%s1459_s1 + $0x60] sm:$0xf] %vm599_vm1, %v690_v7  ;;  %v691_v17 = vpack.c.bf16 %v438_v8, %v438_v8  ;;  %v448_v18 = vadd.f32 %v447_v14, %v446_v13  ;;  %v449_v19 = vsel %vm256_vm0, %v876_v9, 0.0  ;;  %v451_v20 = vsel %vm256_vm0, %v939_v10, 0.0 }
  0x55   :  { %v445_v21 = vadd.f32 %v444_v4, %v443_v12  ;;  %v816_v22 = vunpack.c.h.bf16 %v973_v54  ;;  %v879_v23 = vunpack.c.l.bf16 %v989_v11  ;;  %v940_v24 = vunpack.c.h.bf16 %v1004_v59 }
  0x56   :  { %625 = vst.msk [vmem:[%s1459_s1 + $0x64] sm:$0xf] %vm599_vm1, %v691_v17  ;;  %v450_v26 = vadd.f32 %v449_v19, %v448_v18  ;;  %v453_v27 = vsel %vm256_vm0, %v755_v15, 0.0  ;;  %v756_v28 = vunpack.c.h.bf16 %v958_v0  ;;  %v819_v29 = vunpack.c.l.bf16 %v974_v16 }
  0x57   :  { %v692_v30 = vpack.c.bf16 %v445_v21, %v445_v21  ;;  %v454_v31 = vsel %vm256_vm0, %v816_v22, 0.0  ;;  %v456_v32 = vsel %vm256_vm0, %v879_v23, 0.0  ;;  %v458_v33 = vsel %vm256_vm0, %v940_v24, 0.0 }
  0x58   :  { %v452_v34 = vadd.f32 %v451_v20, %v450_v26  ;;  %v455_v35 = vadd.f32 %v454_v31, %v453_v27  ;;  %v880_v36 = vunpack.c.h.bf16 %v989_v11  ;;  %v943_v37 = vunpack.c.l.bf16 %v1005_v25 }
  0x59   :  { %626 = vst.msk [vmem:[%s1459_s1 + $0x68] sm:$0xf] %vm599_vm1, %v692_v30  ;;  %v460_v38 = vsel %vm256_vm0, %v756_v28, 0.0  ;;  %v461_v39 = vsel %vm256_vm0, %v819_v29, 0.0  ;;  %v759_v40 = vunpack.c.l.bf16 %v1022_v1  ;;  %v820_v41 = vunpack.c.h.bf16 %v974_v16 }
  0x5a   :  { %v693_v42 = vpack.c.bf16 %v452_v34, %v452_v34  ;;  %v457_v43 = vadd.f32 %v456_v32, %v455_v35  ;;  %v462_v44 = vadd.f32 %v461_v39, %v460_v38  ;;  %v463_v45 = vsel %vm256_vm0, %v880_v36, 0.0 }
  0x5b   :  { %v465_v46 = vsel %vm256_vm0, %v943_v37, 0.0  ;;  %v883_v47 = vunpack.c.l.bf16 %v1031_v6  ;;  %v944_v48 = vunpack.c.h.bf16 %v1005_v25  ;;  %v467_v49 = vsel %vm256_vm0, %v759_v40, 0.0 }
  0x5c   :  { %627 = vst.msk [vmem:[%s1459_s1 + $0x6c] sm:$0xf] %vm599_vm1, %v693_v42  ;;  %v459_v50 = vadd.f32 %v458_v33, %v457_v43  ;;  %v464_v1 = vadd.f32 %v463_v45, %v462_v44  ;;  %v468_v51 = vsel %vm256_vm0, %v820_v41, 0.0 }
  0x5d   :  { %v469_v52 = vadd.f32 %v468_v51, %v467_v49  ;;  %v470_v53 = vsel %vm256_vm0, %v883_v47, 0.0  ;;  %v472_v56 = vsel %vm256_vm0, %v944_v48, 0.0 }
  0x5e   :  { %v694_v54 = vpack.c.bf16 %v459_v50, %v459_v50  ;;  %v466_v55 = vadd.f32 %v465_v46, %v464_v1 }
  0x5f   :  { %v471_v6 = vadd.f32 %v470_v53, %v469_v52 }
  0x60   :  { %628 = vst.msk [vmem:[%s1459_s1 + $0x70] sm:$0xf] %vm599_vm1, %v694_v54  ;;  %v695_v57 = vpack.c.bf16 %v466_v55, %v466_v55 }
  0x61   :  { %v473_v58 = vadd.f32 %v472_v56, %v471_v6 }
  0x62   :  { %629 = vst.msk [vmem:[%s1459_s1 + $0x74] sm:$0xf] %vm599_vm1, %v695_v57 }
  0x63   :  { %v696_v59 = vpack.c.bf16 %v473_v58, %v473_v58 }
  0x65   :  { %630 = vst.msk [vmem:[%s1459_s1 + $0x78] sm:$0xf] %vm599_vm1, %v696_v59 }

// kernel: convnet_v7_forward.8
= control target key start
LH: loop header
LB: loop body
LE: loop exit
PB: predicated region body
PF: predicated region fallthrough
CT: control target
= control target key end

     0   :  { %vm1290_vm0 = vcmask 519168   ;;  %s2327_s1 = inlined_call_operand.vmem [shape: bf16[896,64], index: 1, kind: input, shape index: {}]   ;;  %s2328_s0 = inlined_call_operand.vmem [shape: bf16[128,896], index: 0, kind: input, shape index: {}]   ;;  %s2329_s2 = inlined_call_operand.vmem [shape: f32[1,64], index: 2, kind: input, shape index: {}]   ;;  %s2330_s3 = inlined_call_operand.vmem [shape: bf16[128,64], index: 3, kind: output, shape index: {}]  }
   0x1   :  { %v1696_v0 = vld [vmem:[%s2327_s1 + $0x40] sm:$0xff]   ;;  %v1700_v4 = vld [vmem:[%s2327_s1 + $0x48] sm:$0xff]   ;;  %v1704_v8 = vld [vmem:[%s2327_s1 + $0x50] sm:$0xff]  }
   0x2   :  { %v1697_v1 = vld [vmem:[%s2327_s1] sm:$0xff]   ;;  %1456 = vmatprep.subr.bf16.mxu0 %v1696_v0  ;;  %v1701_v5 = vld [vmem:[%s2327_s1 + $0x8] sm:$0xff]   ;;  %v1705_v9 = vld [vmem:[%s2327_s1 + $0x10] sm:$0xff]  }
   0x3   :  { %v1698_v2 = vld [vmem:[%s2327_s1 + $0xc0] sm:$0xff]   ;;  %1457 = vmatpush3.bf16.msra.mxu0 %v1697_v1  ;;  %v1702_v6 = vld [vmem:[%s2327_s1 + $0xc8] sm:$0xff]   ;;  %v1706_v10 = vld [vmem:[%s2327_s1 + $0xd0] sm:$0xff]  }
   0x4   :  { %v1699_v3 = vld [vmem:[%s2327_s1 + $0x80] sm:$0xff]   ;;  %1520 = vmatprep.subr.bf16.mxu1 %v1698_v2  ;;  %1458 = vmatprep.subr.bf16.mxu0 %v1700_v4  ;;  %v1703_v7 = vld [vmem:[%s2327_s1 + $0x88] sm:$0xff]   ;;  %v1707_v11 = vld [vmem:[%s2327_s1 + $0x90] sm:$0xff]  }
   0x5   :  { %1521 = vmatpush3.bf16.msra.mxu1 %v1699_v3  ;;  %v1708_v12 = vld [vmem:[%s2327_s1 + $0x58] sm:$0xff]   ;;  %v1712_v16 = vld [vmem:[%s2327_s1 + $0x60] sm:$0xff]   ;;  %v1716_v20 = vld [vmem:[%s2327_s1 + $0x68] sm:$0xff]  }
   0x6   :  { %1522 = vmatprep.subr.bf16.mxu1 %v1702_v6  ;;  %v1709_v13 = vld [vmem:[%s2327_s1 + $0x18] sm:$0xff]   ;;  %v1713_v17 = vld [vmem:[%s2327_s1 + $0x20] sm:$0xff]   ;;  %v1717_v21 = vld [vmem:[%s2327_s1 + $0x28] sm:$0xff]  }
   0x7   :  { %1459 = vmatpush3.bf16.msra.mxu0 %v1701_v5  ;;  %v1710_v14 = vld [vmem:[%s2327_s1 + $0xd8] sm:$0xff]   ;;  %v1714_v18 = vld [vmem:[%s2327_s1 + $0xe0] sm:$0xff]   ;;  %v1718_v22 = vld [vmem:[%s2327_s1 + $0xe8] sm:$0xff]  }
   0x8   :  { %1460 = vmatprep.subr.bf16.mxu0 %v1704_v8  ;;  %v1711_v15 = vld [vmem:[%s2327_s1 + $0x98] sm:$0xff]   ;;  %v1715_v19 = vld [vmem:[%s2327_s1 + $0xa0] sm:$0xff]   ;;  %v1719_v23 = vld [vmem:[%s2327_s1 + $0xa8] sm:$0xff]  }
   0x9   :  { %1523 = vmatpush3.bf16.msra.mxu1 %v1703_v7  ;;  %v1720_v24 = vld [vmem:[%s2327_s1 + $0x70] sm:$0xff]   ;;  %v1724_v28 = vld [vmem:[%s2327_s1 + $0x78] sm:$0xff]   ;;  %v1729_v32 = vld [vmem:[%s2328_s0 + $0x4] ss:$28 sps:$4 sm:$0xff]  }
   0xa   :  { %1524 = vmatprep.subr.bf16.mxu1 %v1706_v10  ;;  %v1721_v25 = vld [vmem:[%s2327_s1 + $0x30] sm:$0xff]   ;;  %v1725_v29 = vld [vmem:[%s2327_s1 + $0x38] sm:$0xff]   ;;  %854 = vmatprep.mubr.bf16.mxu0 %v1729_v32  ;;  %v1731_v34 = vld [vmem:[%s2327_s1 + $0x140] sm:$0xff]  }
   0xb   :  { %1461 = vmatpush3.bf16.msra.mxu0 %v1705_v9  ;;  %v1722_v26 = vld [vmem:[%s2327_s1 + $0xf0] sm:$0xff]   ;;  %v1726_v30 = vld [vmem:[%s2327_s1 + $0xf8] sm:$0xff]   ;;  %v1732_v35 = vld [vmem:[%s2328_s0 + $0x8] ss:$28 sps:$4 sm:$0xff]  }
   0xc   :  { %1462 = vmatprep.subr.bf16.mxu0 %v1708_v12  ;;  %v1723_v27 = vld [vmem:[%s2327_s1 + $0xb0] sm:$0xff]   ;;  %v1727_v31 = vld [vmem:[%s2328_s0] ss:$28 sps:$4 sm:$0xff]   ;;  %v1734_v36 = vld [vmem:[%s2328_s0 + $0xc] ss:$28 sps:$4 sm:$0xff]  }
   0xd   :  { %1525 = vmatpush3.bf16.msra.mxu1 %v1707_v11  ;;  %v1730_v33 = vld [vmem:[%s2327_s1 + $0xb8] sm:$0xff]   ;;  %v1735_v37 = vld [vmem:[%s2327_s1 + $0x100] sm:$0xff]   ;;  %951 = vmatprep.mubr.bf16.mxu1 %v1734_v36  ;;  %v1739_v40 = vld [vmem:[%s2327_s1 + $0x148] sm:$0xff]  }
   0xe   :  { %1526 = vmatprep.subr.bf16.mxu1 %v1710_v14  ;;  %v1736_v38 = vld [vmem:[%s2328_s0 + $0x3c] ss:$28 sps:$4 sm:$0xff]   ;;  %v1740_v41 = vld [vmem:[%s2328_s0 + $0x44] ss:$28 sps:$4 sm:$0xff]   ;;  %v1742_v42 = vld [vmem:[%s2327_s1 + $0x108] sm:$0xff]  }
   0xf   :  { %1463 = vmatpush3.bf16.msra.mxu0 %v1709_v13  ;;  %v1738_v39 = vld [vmem:[%s2328_s0 + $0x38] ss:$28 sps:$4 sm:$0xff]   ;;  %v1743_v43 = vld [vmem:[%s2328_s0 + $0x40] ss:$28 sps:$4 sm:$0xff]   ;;  %v1746_v48 = vld [vmem:[%s2328_s0 + $0x70] ss:$28 sps:$4 sm:$0xff]  }
  0x10   :  { %1464 = vmatprep.subr.bf16.mxu0 %v1712_v16  ;;  %v1744_v44 = vld [vmem:[%s2328_s0 + $0x74] ss:$28 sps:$4 sm:$0xff]   ;;  %v1748_v46 = vld [vmem:[%s2328_s0 + $0x7c] ss:$28 sps:$4 sm:$0xff]   ;;  %v1752_v49 = vld [vmem:[%s2328_s0 + $0xac] ss:$28 sps:$4 sm:$0xff]  }
  0x11   :  { %1527 = vmatpush3.bf16.msra.mxu1 %v1711_v15  ;;  %v1747_v45 = vld [vmem:[%s2327_s1 + $0x150] sm:$0xff]   ;;  %v1755_v50 = vld [vmem:[%s2327_s1 + $0x158] sm:$0xff]   ;;  %v1763_v54 = vld [vmem:[%s2327_s1 + $0x160] sm:$0xff]  }
  0x12   :  { %1528 = vmatprep.subr.bf16.mxu1 %v1714_v18  ;;  %v1750_v47 = vld [vmem:[%s2327_s1 + $0x110] sm:$0xff]   ;;  %v1758_v52 = vld [vmem:[%s2327_s1 + $0x118] sm:$0xff]   ;;  %v1754_v55 = vld [vmem:[%s2328_s0 + $0xa8] ss:$28 sps:$4 sm:$0xff]  }
  0x13   :  { %1465 = vmatpush3.bf16.msra.mxu0 %v1713_v17  ;;  %v1751_v51 = vld [vmem:[%s2328_s0 + $0x78] ss:$28 sps:$4 sm:$0xff]   ;;  %v1766_v56 = vld [vmem:[%s2327_s1 + $0x120] sm:$0xff]   ;;  %v1759_v59 = vld [vmem:[%s2328_s0 + $0xb0] ss:$28 sps:$4 sm:$0xff]  }
  0x14   :  { %1466 = vmatprep.subr.bf16.mxu0 %v1716_v20  ;;  %v1756_v53 = vld [vmem:[%s2328_s0 + $0xb4] ss:$28 sps:$4 sm:$0xff]   ;;  %v1760_v57 = vld [vmem:[%s2328_s0 + $0xe4] ss:$28 sps:$4 sm:$0xff]   ;;  %v1764_v60 = vld [vmem:[%s2328_s0 + $0xec] ss:$28 sps:$4 sm:$0xff]  }
  0x15   :  { %1529 = vmatpush3.bf16.msra.mxu1 %v1715_v19  ;;  %v1768_v58 = vld [vmem:[%s2327_s1 + $0x180] sm:$0xff]   ;;  %v1772_v61 = vld [vmem:[%s2327_s1 + $0x168] sm:$0xff]   ;;  %v1778_v0 = vld [vmem:[%s2327_s1 + $0x190] sm:$0xff]  }
  0x16   :  { %1530 = vmatprep.subr.bf16.mxu1 %v1718_v22  ;;  %v1773_v62 = vld [vmem:[%s2327_s1 + $0x188] sm:$0xff]   ;;  %v1762_v1 = vld [vmem:[%s2328_s0 + $0xe0] ss:$28 sps:$4 sm:$0xff]   ;;  %v1782_v4 = vld [vmem:[%s2327_s1 + $0x170] sm:$0xff]  }
  0x17   :  { %1467 = vmatpush3.bf16.msra.mxu0 %v1717_v21  ;;  %v1776_v63 = vld [vmem:[%s2327_s1 + $0x128] sm:$0xff]   ;;  %v1769_v3 = vld [vmem:[%s2328_s0 + $0x11c] ss:$28 sps:$4 sm:$0xff]   ;;  %v1774_v6 = vld [vmem:[%s2328_s0 + $0x124] ss:$28 sps:$4 sm:$0xff]  }
  0x18   :  { %1468 = vmatprep.subr.bf16.mxu0 %v1720_v24  ;;  %v1767_v2 = vld [vmem:[%s2328_s0 + $0xe8] ss:$28 sps:$4 sm:$0xff]   ;;  %v1783_v5 = vld [vmem:[%s2327_s1 + $0x198] sm:$0xff]   ;;  %v1786_v7 = vld [vmem:[%s2327_s1 + $0x130] sm:$0xff]  }
  0x19   :  { %1531 = vmatpush3.bf16.msra.mxu1 %v1719_v23  ;;  %v1788_v8 = vld [vmem:[%s2327_s1 + $0x1a0] sm:$0xff]   ;;  %v1771_v9 = vld [vmem:[%s2328_s0 + $0x118] ss:$28 sps:$4 sm:$0xff]   ;;  %v1793_v13 = vld [vmem:[%s2327_s1 + $0x1a8] sm:$0xff]  }
  0x1a   :  { %1532 = vmatprep.subr.bf16.mxu1 %v1722_v26  ;;  %v1792_v10 = vld [vmem:[%s2327_s1 + $0x178] sm:$0xff]   ;;  %v1779_v12 = vld [vmem:[%s2328_s0 + $0x154] ss:$28 sps:$4 sm:$0xff]   ;;  %v1789_v18 = vld [vmem:[%s2328_s0 + $0x18c] ss:$28 sps:$4 sm:$0xff]  }
  0x1b   :  { %1469 = vmatpush3.bf16.msra.mxu0 %v1721_v25  ;;  %v1777_v11 = vld [vmem:[%s2328_s0 + $0x120] ss:$28 sps:$4 sm:$0xff]   ;;  %v1798_v16 = vld [vmem:[%s2327_s1 + $0x1b0] sm:$0xff]   ;;  %v1791_v22 = vld [vmem:[%s2328_s0 + $0x188] ss:$28 sps:$4 sm:$0xff]  }
  0x1c   :  { %1470 = vmatprep.subr.bf16.mxu0 %v1724_v28  ;;  %v1796_v14 = vld [vmem:[%s2327_s1 + $0x138] sm:$0xff]   ;;  %v1781_v17 = vld [vmem:[%s2328_s0 + $0x150] ss:$28 sps:$4 sm:$0xff]  }
  0x1d   :  { %1533 = vmatpush3.bf16.msra.mxu1 %v1723_v27  ;;  %v1784_v15 = vld [vmem:[%s2328_s0 + $0x15c] ss:$28 sps:$4 sm:$0xff]   ;;  %v1794_v21 = vld [vmem:[%s2328_s0 + $0x194] ss:$28 sps:$4 sm:$0xff]   ;;  %v1805_v27 = vld [vmem:[%s2328_s0 + $0x4c] ss:$28 sps:$4 sm:$0xff]  }
  0x1e   :  { %1534 = vmatprep.subr.bf16.mxu1 %v1726_v30  ;;  %v1802_v19 = vld [vmem:[%s2327_s1 + $0x1b8] sm:$0xff]   ;;  %v1801_v23 = vld [vmem:[%s2328_s0 + $0x14] ss:$28 sps:$4 sm:$0xff]   ;;  %v1807_v30 = vld [vmem:[%s2328_s0 + $0x48] ss:$28 sps:$4 sm:$0xff]  }
  0x1f   :  { %1471 = vmatpush3.bf16.msra.mxu0 %v1725_v29  ;;  %v1787_v20 = vld [vmem:[%s2328_s0 + $0x158] ss:$28 sps:$4 sm:$0xff]   ;;  %v1797_v24 = vld [vmem:[%s2328_s0 + $0x190] ss:$28 sps:$4 sm:$0xff]   ;;  %v1811_v29 = vld [vmem:[%s2328_s0 + $0x88] ss:$28 sps:$4 sm:$0xff]  }
  0x20   :  { %1584 = vmatprep.subr.bf16.mxu0 %v1731_v34  ;;  %v1803_v25 = vld [vmem:[%s2328_s0 + $0x18] ss:$28 sps:$4 sm:$0xff]   ;;  %v1799_v26 = vld [vmem:[%s2328_s0 + $0x10] ss:$28 sps:$4 sm:$0xff]   ;;  %v1812_v32 = vld [vmem:[%s2328_s0 + $0xc0] ss:$28 sps:$4 sm:$0xff]  }
  0x21   :  { %1535 = vmatpush3.bf16.msra.mxu1 %v1730_v33  ;;  %v1804_v28 = vld [vmem:[%s2328_s0 + $0x50] ss:$28 sps:$4 sm:$0xff]   ;;  %v1819_v33 = vld [vmem:[%s2328_s0 + $0xf8] ss:$28 sps:$4 sm:$0xff]   ;;  %v1810_v34 = vld [vmem:[%s2328_s0 + $0x80] ss:$28 sps:$4 sm:$0xff]  }
  0x22   :  { %855 = vmatmul.mubr.bf16.vlgmr.msra.gmra.mrb[0].mxu0 %v1727_v31  ;;  %1664 = vmatprep.subr.bf16.mxu1 %v1768_v58  ;;  %v1808_v31 = vld [vmem:[%s2328_s0 + $0x84] ss:$28 sps:$4 sm:$0xff]   ;;  %v1820_v36 = vld [vmem:[%s2328_s0 + $0x130] ss:$28 sps:$4 sm:$0xff]  }
  0x23   :  { %1585 = vmatpush3.bf16.msra.mxu0 %v1735_v37  ;;  %862 = vmatprep.mubr.bf16.mxu0 %v1736_v38  ;;  %v1827_v37 = vld [vmem:[%s2328_s0 + $0x168] ss:$28 sps:$4 sm:$0xff]   ;;  %v1815_v38 = vld [vmem:[%s2328_s0 + $0xb8] ss:$28 sps:$4 sm:$0xff]  }
  0x24   :  { %952 = vmatmul.mubr.bf16.vlgmr.msra.gmra.mrb[0].mxu1 %v1732_v35  ;;  %1586 = vmatprep.subr.bf16.mxu0 %v1739_v40  ;;  %v1813_v35 = vld [vmem:[%s2328_s0 + $0xbc] ss:$28 sps:$4 sm:$0xff]  }
  0x25   :  { %959 = vmatprep.mubr.bf16.mxu1 %v1740_v41  ;;  %1665 = vmatpush3.bf16.msra.mxu1 %v1768_v58  ;;  %v1828_v40 = vld [vmem:[%s2328_s0 + $0x1a0] ss:$28 sps:$4 sm:$0xff]   ;;  %v1818_v41 = vld [vmem:[%s2328_s0 + $0xf0] ss:$28 sps:$4 sm:$0xff]  }
  0x26   :  { %1666 = vmatprep.subr.bf16.mxu1 %v1773_v62 }
  0x27   :  { %1587 = vmatpush3.bf16.msra.mxu0 %v1742_v42  ;;  %v1821_v42 = vld [vmem:[%s2328_s0 + $0x12c] ss:$28 sps:$4 sm:$0xff]  }
  0x28   :  { %1588 = vmatprep.subr.bf16.mxu0 %v1747_v45  ;;  %v1826_v45 = vld [vmem:[%s2328_s0 + $0x160] ss:$28 sps:$4 sm:$0xff]  }
  0x29   :  { %1667 = vmatpush3.bf16.msra.mxu1 %v1773_v62 }
  0x2a   :  { %863 = vmatmul.mubr.bf16.gmra.mrb[4].mxu0 %v1738_v39  ;;  %1668 = vmatprep.subr.bf16.mxu1 %v1778_v0  ;;  %v1816_v39 = vld [vmem:[%s2328_s0 + $0xf4] ss:$28 sps:$4 sm:$0xff]  }
  0x2b   :  { %870 = vmatprep.mubr.bf16.mxu0 %v1744_v44  ;;  %1589 = vmatpush3.bf16.msra.mxu0 %v1750_v47  ;;  %v1824_v44 = vld [vmem:[%s2328_s0 + $0x164] ss:$28 sps:$4 sm:$0xff]   ;;  %v1831_v47 = vld [vmem:[%s2328_s0 + $0x198] ss:$28 sps:$4 sm:$0xff]  }
  0x2c   :  { %960 = vmatmul.mubr.bf16.gmra.mrb[4].mxu1 %v1743_v43  ;;  %1590 = vmatprep.subr.bf16.mxu0 %v1755_v50  ;;  %v1823_v43 = vld [vmem:[%s2328_s0 + $0x128] ss:$28 sps:$4 sm:$0xff]  }
  0x2d   :  { %967 = vmatprep.mubr.bf16.mxu1 %v1748_v46  ;;  %1669 = vmatpush3.bf16.msra.mxu1 %v1778_v0  ;;  %v1829_v46 = vld [vmem:[%s2328_s0 + $0x19c] ss:$28 sps:$4 sm:$0xff]  }
  0x2e   :  { %1670 = vmatprep.subr.bf16.mxu1 %v1783_v5 }
  0x2f   :  { %1591 = vmatpush3.bf16.msra.mxu0 %v1758_v52 }
  0x30   :  { %1592 = vmatprep.subr.bf16.mxu0 %v1763_v54 }
  0x31   :  { %1671 = vmatpush3.bf16.msra.mxu1 %v1783_v5 }
  0x32   :  { %871 = vmatmul.mubr.bf16.gmra.mrb[8].mxu0 %v1746_v48  ;;  %1672 = vmatprep.subr.bf16.mxu1 %v1788_v8 }
  0x33   :  { %878 = vmatprep.mubr.bf16.mxu0 %v1752_v49  ;;  %1593 = vmatpush3.bf16.msra.mxu0 %v1766_v56  ;;  %v2191_v49 = vld [vmem:[%s2329_s2] ss:$0 sm:$0xff] }
  0x34   :  { %968 = vmatmul.mubr.bf16.gmra.mrb[8].mxu1 %v1751_v51  ;;  %1594 = vmatprep.subr.bf16.mxu0 %v1772_v61 }
  0x35   :  { %975 = vmatprep.mubr.bf16.mxu1 %v1756_v53  ;;  %1673 = vmatpush3.bf16.msra.mxu1 %v1788_v8 }
  0x36   :  { %1674 = vmatprep.subr.bf16.mxu1 %v1793_v13 }
  0x37   :  { %1595 = vmatpush3.bf16.msra.mxu0 %v1776_v63 }
  0x38   :  { %1596 = vmatprep.subr.bf16.mxu0 %v1782_v4 }
  0x39   :  { %1675 = vmatpush3.bf16.msra.mxu1 %v1793_v13 }
  0x3a   :  { %879 = vmatmul.mubr.bf16.gmra.mrb[12].mxu0 %v1754_v55  ;;  %1676 = vmatprep.subr.bf16.mxu1 %v1798_v16 }
  0x3b   :  { %886 = vmatprep.mubr.bf16.mxu0 %v1760_v57  ;;  %1597 = vmatpush3.bf16.msra.mxu0 %v1786_v7 }
  0x3c   :  { %976 = vmatmul.mubr.bf16.gmra.mrb[12].mxu1 %v1759_v59  ;;  %1598 = vmatprep.subr.bf16.mxu0 %v1792_v10 }
  0x3d   :  { %983 = vmatprep.mubr.bf16.mxu1 %v1764_v60  ;;  %1677 = vmatpush3.bf16.msra.mxu1 %v1798_v16 }
  0x3e   :  { %1678 = vmatprep.subr.bf16.mxu1 %v1802_v19 }
  0x3f   :  { %1599 = vmatpush3.bf16.msra.mxu0 %v1796_v14 }
  0x41   :  { %1679 = vmatpush3.bf16.msra.mxu1 %v1802_v19 }
  0x42   :  { %887 = vmatmul.mubr.bf16.gmra.mrb[16].mxu0 %v1762_v1 }
  0x43   :  { %894 = vmatprep.mubr.bf16.mxu0 %v1769_v3 }
  0x44   :  { %984 = vmatmul.mubr.bf16.gmra.mrb[16].mxu1 %v1767_v2 }
  0x45   :  { %991 = vmatprep.mubr.bf16.mxu1 %v1774_v6 }
  0x4a   :  { %895 = vmatmul.mubr.bf16.gmra.mrb[20].mxu0 %v1771_v9 }
  0x4b   :  { %902 = vmatprep.mubr.bf16.mxu0 %v1779_v12 }
  0x4c   :  { %992 = vmatmul.mubr.bf16.gmra.mrb[20].mxu1 %v1777_v11 }
  0x4d   :  { %999 = vmatprep.mubr.bf16.mxu1 %v1784_v15 }
  0x52   :  { %903 = vmatmul.mubr.bf16.gmra.mrb[24].mxu0 %v1781_v17 }
  0x53   :  { %910 = vmatprep.mubr.bf16.mxu0 %v1789_v18 }
  0x54   :  { %1000 = vmatmul.mubr.bf16.gmra.mrb[24].mxu1 %v1787_v20 }
  0x55   :  { %1007 = vmatprep.mubr.bf16.mxu1 %v1794_v21 }
  0x5a   :  { %911 = vmatmul.mubr.bf16.gmra.mrb[28].mxu0 %v1791_v22 }
  0x5b   :  { %1048 = vmatprep.mubr.bf16.mxu0 %v1801_v23 }
  0x5c   :  { %1008 = vmatmul.mubr.bf16.gmra.mrb[28].mxu1 %v1797_v24 }
  0x5d   :  { %1680 = vmatprep.mubr.bf16.mxu1 %v1803_v25 }
  0x62   :  { %1049 = vmatmul.mubr.bf16.vlgmr.msra.gmra.mrb[32].mxu0 %v1799_v26 }
  0x63   :  { %1056 = vmatprep.mubr.bf16.mxu0 %v1805_v27 }
  0x64   :  { %1681 = vmatmul.mubr.bf16.vlgmr.msra.gmra.mrb[32].mxu1 %v1804_v28 }
  0x65   :  { %1684 = vmatprep.mubr.bf16.mxu1 %v1811_v29 }
  0x6a   :  { %1057 = vmatmul.mubr.bf16.gmra.mrb[36].mxu0 %v1807_v30 }
  0x6b   :  { %1064 = vmatprep.mubr.bf16.mxu0 %v1808_v31 }
  0x6c   :  { %1685 = vmatmul.mubr.bf16.gmra.mrb[36].mxu1 %v1812_v32 }
  0x6d   :  { %1688 = vmatprep.mubr.bf16.mxu1 %v1819_v33 }
  0x72   :  { %1065 = vmatmul.mubr.bf16.gmra.mrb[40].mxu0 %v1810_v34 }
  0x73   :  { %1072 = vmatprep.mubr.bf16.mxu0 %v1813_v35 }
  0x74   :  { %1689 = vmatmul.mubr.bf16.gmra.mrb[40].mxu1 %v1820_v36 }
  0x75   :  { %1692 = vmatprep.mubr.bf16.mxu1 %v1827_v37 }
  0x7a   :  { %1073 = vmatmul.mubr.bf16.gmra.mrb[44].mxu0 %v1815_v38 }
  0x7b   :  { %1080 = vmatprep.mubr.bf16.mxu0 %v1816_v39 }
  0x7c   :  { %1693 = vmatmul.mubr.bf16.gmra.mrb[44].mxu1 %v1828_v40 }
  0x82   :  { %1081 = vmatmul.mubr.bf16.gmra.mrb[48].mxu0 %v1818_v41 }
  0x83   :  { %1088 = vmatprep.mubr.bf16.mxu0 %v1821_v42 }
  0x8a   :  { %1089 = vmatmul.mubr.bf16.gmra.mrb[52].mxu0 %v1823_v43 }
  0x8b   :  { %1096 = vmatprep.mubr.bf16.mxu0 %v1824_v44 }
  0x92   :  { %1097 = vmatmul.mubr.bf16.gmra.mrb[56].mxu0 %v1826_v45 }
  0x93   :  { %1104 = vmatprep.mubr.bf16.mxu0 %v1829_v46 }
  0x9a   :  { %1105 = vmatmul.mubr.bf16.gmra.mrb[60].mxu0 %v1831_v47 }
  0xf5   :  { %v1472_v48 = vpop.f32.mrb[0].mxu0 }
  0xf6   :  { %v1473_v50 = vpop.f32.mrb[1].mxu0 }
  0xf7   :  { %v1474_v51 = vadd.f32 %v1473_v50, %v1472_v48  ;;  %v1475_v52 = vpop.f32.mrb[2].mxu0  ;;  %v1536_v53 = vpop.f32.mrb[0].mxu1 }
  0xf8   :  { %v1476_v54 = vpop.f32.mrb[3].mxu0  ;;  %v1537_v57 = vpop.f32.mrb[1].mxu1 }
  0xf9   :  { %v857_v55 = vadd.f32 %v1474_v51, %v2191_v49  ;;  %v1477_v56 = vadd.f32 %v1476_v54, %v1475_v52  ;;  %v1538_v58 = vadd.f32 %v1537_v57, %v1536_v53  ;;  %v1539_v59 = vpop.f32.mrb[2].mxu1 }
  0xfa   :  { %v1540_v61 = vpop.f32.mrb[3].mxu1 }
  0xfb   :  { %v860_v60 = vadd.f32 %v1477_v56, %v2191_v49  ;;  %v2195_v62 = vadd.f32 %v1538_v58, %v857_v55  ;;  %v1541_v63 = vadd.f32 %v1540_v61, %v1539_v59 }
  0xfd   :  { %v1478_v0 = vpop.f32.mrb[4].mxu0  ;;  %v2197_v1 = vadd.f32 %v1541_v63, %v860_v60 }
  0xfe   :  { %v1479_v2 = vpop.f32.mrb[5].mxu0 }
  0xff   :  { %v1480_v3 = vadd.f32 %v1479_v2, %v1478_v0  ;;  %v1481_v4 = vpop.f32.mrb[6].mxu0  ;;  %v1542_v5 = vpop.f32.mrb[4].mxu1 }
 0x100   :  { %v1482_v6 = vpop.f32.mrb[7].mxu0  ;;  %v1543_v9 = vpop.f32.mrb[5].mxu1 }
 0x101   :  { %v865_v7 = vadd.f32 %v1480_v3, %v2191_v49  ;;  %v1483_v8 = vadd.f32 %v1482_v6, %v1481_v4  ;;  %v1544_v10 = vadd.f32 %v1543_v9, %v1542_v5  ;;  %v1545_v11 = vpop.f32.mrb[6].mxu1 }
 0x102   :  { %v1546_v13 = vpop.f32.mrb[7].mxu1 }
 0x103   :  { %v868_v12 = vadd.f32 %v1483_v8, %v2191_v49  ;;  %v2201_v14 = vadd.f32 %v1544_v10, %v865_v7  ;;  %v1547_v15 = vadd.f32 %v1546_v13, %v1545_v11 }
 0x105   :  { %v1484_v16 = vpop.f32.mrb[8].mxu0  ;;  %v2203_v17 = vadd.f32 %v1547_v15, %v868_v12 }
 0x106   :  { %v1485_v18 = vpop.f32.mrb[9].mxu0 }
 0x107   :  { %v1486_v19 = vadd.f32 %v1485_v18, %v1484_v16  ;;  %v1487_v20 = vpop.f32.mrb[10].mxu0  ;;  %v1548_v21 = vpop.f32.mrb[8].mxu1 }
 0x108   :  { %v1488_v22 = vpop.f32.mrb[11].mxu0  ;;  %v1549_v25 = vpop.f32.mrb[9].mxu1 }
 0x109   :  { %v873_v23 = vadd.f32 %v1486_v19, %v2191_v49  ;;  %v1489_v24 = vadd.f32 %v1488_v22, %v1487_v20  ;;  %v1550_v26 = vadd.f32 %v1549_v25, %v1548_v21  ;;  %v1551_v27 = vpop.f32.mrb[10].mxu1 }
 0x10a   :  { %v1552_v29 = vpop.f32.mrb[11].mxu1 }
 0x10b   :  { %v876_v28 = vadd.f32 %v1489_v24, %v2191_v49  ;;  %v2207_v30 = vadd.f32 %v1550_v26, %v873_v23  ;;  %v1553_v31 = vadd.f32 %v1552_v29, %v1551_v27 }
 0x10d   :  { %v1490_v32 = vpop.f32.mrb[12].mxu0  ;;  %v2209_v33 = vadd.f32 %v1553_v31, %v876_v28 }
 0x10e   :  { %v1491_v34 = vpop.f32.mrb[13].mxu0 }
 0x10f   :  { %v1492_v35 = vadd.f32 %v1491_v34, %v1490_v32  ;;  %v1493_v36 = vpop.f32.mrb[14].mxu0  ;;  %v1554_v37 = vpop.f32.mrb[12].mxu1 }
 0x110   :  { %v1494_v38 = vpop.f32.mrb[15].mxu0  ;;  %v1555_v41 = vpop.f32.mrb[13].mxu1 }
 0x111   :  { %v881_v39 = vadd.f32 %v1492_v35, %v2191_v49  ;;  %v1495_v40 = vadd.f32 %v1494_v38, %v1493_v36  ;;  %v1556_v42 = vadd.f32 %v1555_v41, %v1554_v37  ;;  %v1557_v43 = vpop.f32.mrb[14].mxu1 }
 0x112   :  { %v1558_v45 = vpop.f32.mrb[15].mxu1 }
 0x113   :  { %v884_v44 = vadd.f32 %v1495_v40, %v2191_v49  ;;  %v2213_v46 = vadd.f32 %v1556_v42, %v881_v39  ;;  %v1559_v47 = vadd.f32 %v1558_v45, %v1557_v43 }
 0x115   :  { %v1496_v48 = vpop.f32.mrb[16].mxu0  ;;  %v2215_v50 = vadd.f32 %v1559_v47, %v884_v44 }
 0x116   :  { %v1497_v51 = vpop.f32.mrb[17].mxu0 }
 0x117   :  { %v1498_v52 = vadd.f32 %v1497_v51, %v1496_v48  ;;  %v1499_v53 = vpop.f32.mrb[18].mxu0  ;;  %v1560_v54 = vpop.f32.mrb[16].mxu1 }
 0x118   :  { %v1500_v55 = vpop.f32.mrb[19].mxu0  ;;  %v1561_v58 = vpop.f32.mrb[17].mxu1 }
 0x119   :  { %v889_v56 = vadd.f32 %v1498_v52, %v2191_v49  ;;  %v1501_v57 = vadd.f32 %v1500_v55, %v1499_v53  ;;  %v1562_v59 = vadd.f32 %v1561_v58, %v1560_v54  ;;  %v1563_v60 = vpop.f32.mrb[18].mxu1 }
 0x11a   :  { %v1564_v63 = vpop.f32.mrb[19].mxu1 }
 0x11b   :  { %v892_v61 = vadd.f32 %v1501_v57, %v2191_v49  ;;  %v2219_v0 = vadd.f32 %v1562_v59, %v889_v56  ;;  %v1565_v2 = vadd.f32 %v1564_v63, %v1563_v60 }
 0x11d   :  { %v1502_v3 = vpop.f32.mrb[20].mxu0  ;;  %v2221_v4 = vadd.f32 %v1565_v2, %v892_v61 }
 0x11e   :  { %v1503_v5 = vpop.f32.mrb[21].mxu0 }
 0x11f   :  { %v1504_v6 = vadd.f32 %v1503_v5, %v1502_v3  ;;  %v1505_v7 = vpop.f32.mrb[22].mxu0  ;;  %v1566_v8 = vpop.f32.mrb[20].mxu1 }
 0x120   :  { %v1506_v9 = vpop.f32.mrb[23].mxu0  ;;  %v1567_v12 = vpop.f32.mrb[21].mxu1 }
 0x121   :  { %v897_v10 = vadd.f32 %v1504_v6, %v2191_v49  ;;  %v1507_v11 = vadd.f32 %v1506_v9, %v1505_v7  ;;  %v1568_v13 = vadd.f32 %v1567_v12, %v1566_v8  ;;  %v1569_v15 = vpop.f32.mrb[22].mxu1 }
 0x122   :  { %v1570_v18 = vpop.f32.mrb[23].mxu1 }
 0x123   :  { %v900_v16 = vadd.f32 %v1507_v11, %v2191_v49  ;;  %v2225_v19 = vadd.f32 %v1568_v13, %v897_v10  ;;  %v1571_v20 = vadd.f32 %v1570_v18, %v1569_v15 }
 0x125   :  { %v1508_v21 = vpop.f32.mrb[24].mxu0  ;;  %v2227_v22 = vadd.f32 %v1571_v20, %v900_v16 }
 0x126   :  { %v1509_v23 = vpop.f32.mrb[25].mxu0 }
 0x127   :  { %v1510_v24 = vadd.f32 %v1509_v23, %v1508_v21  ;;  %v1511_v25 = vpop.f32.mrb[26].mxu0  ;;  %v1572_v26 = vpop.f32.mrb[24].mxu1 }
 0x128   :  { %v1512_v27 = vpop.f32.mrb[27].mxu0  ;;  %v1573_v31 = vpop.f32.mrb[25].mxu1 }
 0x129   :  { %v905_v28 = vadd.f32 %v1510_v24, %v2191_v49  ;;  %v1513_v29 = vadd.f32 %v1512_v27, %v1511_v25  ;;  %v1574_v32 = vadd.f32 %v1573_v31, %v1572_v26  ;;  %v1575_v34 = vpop.f32.mrb[26].mxu1 }
 0x12a   :  { %v1576_v36 = vpop.f32.mrb[27].mxu1 }
 0x12b   :  { %v908_v35 = vadd.f32 %v1513_v29, %v2191_v49  ;;  %v2231_v37 = vadd.f32 %v1574_v32, %v905_v28  ;;  %v1577_v38 = vadd.f32 %v1576_v36, %v1575_v34 }
 0x12d   :  { %v1514_v39 = vpop.f32.mrb[28].mxu0  ;;  %v2233_v40 = vadd.f32 %v1577_v38, %v908_v35 }
 0x12e   :  { %v1515_v41 = vpop.f32.mrb[29].mxu0 }
 0x12f   :  { %v1516_v42 = vadd.f32 %v1515_v41, %v1514_v39  ;;  %v1517_v43 = vpop.f32.mrb[30].mxu0  ;;  %v1578_v44 = vpop.f32.mrb[28].mxu1 }
 0x130   :  { %v1518_v45 = vpop.f32.mrb[31].mxu0  ;;  %v1579_v51 = vpop.f32.mrb[29].mxu1 }
 0x131   :  { %v913_v47 = vadd.f32 %v1516_v42, %v2191_v49  ;;  %v1519_v48 = vadd.f32 %v1518_v45, %v1517_v43  ;;  %v1580_v52 = vadd.f32 %v1579_v51, %v1578_v44  ;;  %v1581_v53 = vpop.f32.mrb[30].mxu1 }
 0x132   :  { %v1582_v55 = vpop.f32.mrb[31].mxu1 }
 0x133   :  { %v916_v54 = vadd.f32 %v1519_v48, %v2191_v49  ;;  %v2237_v56 = vadd.f32 %v1580_v52, %v913_v47  ;;  %v1583_v57 = vadd.f32 %v1582_v55, %v1581_v53 }
 0x135   :  { %v1600_v58 = vpop.f32.mrb[32].mxu0  ;;  %v2239_v59 = vadd.f32 %v1583_v57, %v916_v54 }
 0x136   :  { %v1601_v60 = vpop.f32.mrb[33].mxu0 }
 0x137   :  { %v1602_v61 = vadd.f32 %v1601_v60, %v1600_v58  ;;  %v1603_v63 = vpop.f32.mrb[34].mxu0  ;;  %v1682_v3 = vpop.f32.mrb[32].mxu1 }
 0x138   :  { %v1604_v2 = vpop.f32.mrb[35].mxu0  ;;  %v1147_v7 = vpop.f32.mrb[33].mxu1 }
 0x139   :  { %v1605_v5 = vadd.f32 %v1604_v2, %v1603_v63  ;;  %v1051_v6 = vadd.f32 %v1602_v61, %v2195_v62  ;;  %v1683_v8 = vpop.f32.mrb[34].mxu1 }
 0x13a   :  { %v1150_v10 = vpop.f32.mrb[35].mxu1 }
 0x13b   :  { %v1148_v9 = vadd.f32 %v1147_v7, %v1051_v6  ;;  %v1054_v49 = vadd.f32 %v1605_v5, %v2197_v1 }
 0x13d   :  { %v1210_v11 = vmax.f32 %v1148_v9, 0.0  ;;  %v1151_v12 = vadd.f32 %v1150_v10, %v1054_v49  ;;  %v1606_v13 = vpop.f32.mrb[36].mxu0 }
 0x13e   :  { %v1607_v15 = vpop.f32.mrb[37].mxu0 }
 0x13f   :  { %v1440_v16 = vpack.c.bf16 %v1210_v11, %v1210_v11  ;;  %v1211_v18 = vmax.f32 %v1151_v12, 0.0  ;;  %v1608_v20 = vadd.f32 %v1607_v15, %v1606_v13  ;;  %v1609_v21 = vpop.f32.mrb[38].mxu0  ;;  %v1686_v24 = vpop.f32.mrb[36].mxu1 }
 0x140   :  { %v1610_v23 = vpop.f32.mrb[39].mxu0  ;;  %v1163_v26 = vpop.f32.mrb[37].mxu1 }
 0x141   :  { %1291 = vst.msk [vmem:[%s2330_s3] sm:$0xf] %vm1290_vm0, %v1440_v16  ;;  %v1441_v62 = vpack.c.bf16 %v1211_v18, %v1211_v18  ;;  %v1059_v1 = vadd.f32 %v1608_v20, %v2201_v14  ;;  %v1611_v25 = vadd.f32 %v1610_v23, %v1609_v21  ;;  %v1687_v27 = vpop.f32.mrb[38].mxu1 }
 0x142   :  { %v1166_v31 = vpop.f32.mrb[39].mxu1 }
 0x143   :  { %1292 = vst.msk [vmem:[%s2330_s3 + $0x4] sm:$0xf] %vm1290_vm0, %v1441_v62  ;;  %v1156_v28 = vadd.f32 %v1682_v3, %v1059_v1  ;;  %v1062_v29 = vadd.f32 %v1611_v25, %v2203_v17 }
 0x145   :  { %v1212_v32 = vmax.f32 %v1156_v28, 0.0  ;;  %v1159_v34 = vadd.f32 %v1683_v8, %v1062_v29  ;;  %v1612_v35 = vpop.f32.mrb[40].mxu0 }
 0x146   :  { %v1613_v36 = vpop.f32.mrb[41].mxu0 }
 0x147   :  { %v1442_v38 = vpack.c.bf16 %v1212_v32, %v1212_v32  ;;  %v1213_v39 = vmax.f32 %v1159_v34, 0.0  ;;  %v1614_v41 = vadd.f32 %v1613_v36, %v1612_v35  ;;  %v1615_v14 = vpop.f32.mrb[42].mxu0  ;;  %v1690_v43 = vpop.f32.mrb[40].mxu1 }
 0x148   :  { %v1616_v42 = vpop.f32.mrb[43].mxu0  ;;  %v1179_v47 = vpop.f32.mrb[41].mxu1 }
 0x149   :  { %1293 = vst.msk [vmem:[%s2330_s3 + $0x8] sm:$0xf] %vm1290_vm0, %v1442_v38  ;;  %v1443_v44 = vpack.c.bf16 %v1213_v39, %v1213_v39  ;;  %v1617_v45 = vadd.f32 %v1616_v42, %v1615_v14  ;;  %v1067_v17 = vadd.f32 %v1614_v41, %v2207_v30  ;;  %v1691_v48 = vpop.f32.mrb[42].mxu1 }
 0x14a   :  { %v1182_v53 = vpop.f32.mrb[43].mxu1 }
 0x14b   :  { %1294 = vst.msk [vmem:[%s2330_s3 + $0xc] sm:$0xf] %vm1290_vm0, %v1443_v44  ;;  %v1164_v51 = vadd.f32 %v1163_v26, %v1067_v17  ;;  %v1070_v52 = vadd.f32 %v1617_v45, %v2209_v33 }
 0x14d   :  { %v1214_v54 = vmax.f32 %v1164_v51, 0.0  ;;  %v1167_v55 = vadd.f32 %v1166_v31, %v1070_v52  ;;  %v1618_v57 = vpop.f32.mrb[44].mxu0 }
 0x14e   :  { %v1619_v58 = vpop.f32.mrb[45].mxu0 }
 0x14f   :  { %v1444_v60 = vpack.c.bf16 %v1214_v54, %v1214_v54  ;;  %v1215_v61 = vmax.f32 %v1167_v55, 0.0  ;;  %v1620_v63 = vadd.f32 %v1619_v58, %v1618_v57  ;;  %v1621_v2 = vpop.f32.mrb[46].mxu0  ;;  %v2263_v3 = vpop.f32.mrb[44].mxu1 }
 0x150   :  { %v1622_v30 = vpop.f32.mrb[47].mxu0  ;;  %v1195_v7 = vpop.f32.mrb[45].mxu1 }
 0x151   :  { %1295 = vst.msk [vmem:[%s2330_s3 + $0x10] sm:$0xf] %vm1290_vm0, %v1444_v60  ;;  %v1445_v5 = vpack.c.bf16 %v1215_v61, %v1215_v61  ;;  %v1075_v33 = vadd.f32 %v1620_v63, %v2213_v46  ;;  %v1623_v6 = vadd.f32 %v1622_v30, %v1621_v2  ;;  %v2270_v8 = vpop.f32.mrb[46].mxu1 }
 0x152   :  { %v1198_v10 = vpop.f32.mrb[47].mxu1 }
 0x153   :  { %1296 = vst.msk [vmem:[%s2330_s3 + $0x14] sm:$0xf] %vm1290_vm0, %v1445_v5  ;;  %v1172_v9 = vadd.f32 %v1686_v24, %v1075_v33  ;;  %v1078_v49 = vadd.f32 %v1623_v6, %v2215_v50 }
 0x155   :  { %v1216_v11 = vmax.f32 %v1172_v9, 0.0  ;;  %v1175_v12 = vadd.f32 %v1687_v27, %v1078_v49  ;;  %v1624_v13 = vpop.f32.mrb[48].mxu0 }
 0x156   :  { %v1625_v15 = vpop.f32.mrb[49].mxu0 }
 0x157   :  { %v1446_v16 = vpack.c.bf16 %v1216_v11, %v1216_v11  ;;  %v1217_v18 = vmax.f32 %v1175_v12, 0.0  ;;  %v1626_v46 = vadd.f32 %v1625_v15, %v1624_v13  ;;  %v1627_v20 = vpop.f32.mrb[50].mxu0 }
 0x158   :  { %v1628_v21 = vpop.f32.mrb[51].mxu0 }
 0x159   :  { %1297 = vst.msk [vmem:[%s2330_s3 + $0x18] sm:$0xf] %vm1290_vm0, %v1446_v16  ;;  %v1447_v23 = vpack.c.bf16 %v1217_v18, %v1217_v18  ;;  %v1629_v62 = vadd.f32 %v1628_v21, %v1627_v20  ;;  %v1083_v24 = vadd.f32 %v1626_v46, %v2219_v0 }
 0x15b   :  { %1298 = vst.msk [vmem:[%s2330_s3 + $0x1c] sm:$0xf] %vm1290_vm0, %v1447_v23  ;;  %v1180_v50 = vadd.f32 %v1179_v47, %v1083_v24  ;;  %v1086_v1 = vadd.f32 %v1629_v62, %v2221_v4 }
 0x15d   :  { %v1218_v25 = vmax.f32 %v1180_v50, 0.0  ;;  %v1183_v26 = vadd.f32 %v1182_v53, %v1086_v1  ;;  %v1630_v27 = vpop.f32.mrb[52].mxu0 }
 0x15e   :  { %v1631_v28 = vpop.f32.mrb[53].mxu0 }
 0x15f   :  { %v1448_v29 = vpack.c.bf16 %v1218_v25, %v1218_v25  ;;  %v1219_v31 = vmax.f32 %v1183_v26, 0.0  ;;  %v1632_v32 = vadd.f32 %v1631_v28, %v1630_v27  ;;  %v1633_v34 = vpop.f32.mrb[54].mxu0 }
 0x160   :  { %v1634_v35 = vpop.f32.mrb[55].mxu0 }
 0x161   :  { %1299 = vst.msk [vmem:[%s2330_s3 + $0x20] sm:$0xf] %vm1290_vm0, %v1448_v29  ;;  %v1449_v0 = vpack.c.bf16 %v1219_v31, %v1219_v31  ;;  %v1091_v36 = vadd.f32 %v1632_v32, %v2225_v19  ;;  %v1635_v38 = vadd.f32 %v1634_v35, %v1633_v34 }
 0x163   :  { %1300 = vst.msk [vmem:[%s2330_s3 + $0x24] sm:$0xf] %vm1290_vm0, %v1449_v0  ;;  %v1188_v4 = vadd.f32 %v1690_v43, %v1091_v36  ;;  %v1094_v39 = vadd.f32 %v1635_v38, %v2227_v22 }
 0x165   :  { %v1220_v41 = vmax.f32 %v1188_v4, 0.0  ;;  %v1191_v14 = vadd.f32 %v1691_v48, %v1094_v39  ;;  %v1636_v42 = vpop.f32.mrb[56].mxu0 }
 0x166   :  { %v1637_v44 = vpop.f32.mrb[57].mxu0 }
 0x167   :  { %v1450_v45 = vpack.c.bf16 %v1220_v41, %v1220_v41  ;;  %v1221_v17 = vmax.f32 %v1191_v14, 0.0  ;;  %v1638_v47 = vadd.f32 %v1637_v44, %v1636_v42  ;;  %v1639_v51 = vpop.f32.mrb[58].mxu0 }
 0x168   :  { %v1640_v52 = vpop.f32.mrb[59].mxu0 }
 0x169   :  { %1301 = vst.msk [vmem:[%s2330_s3 + $0x28] sm:$0xf] %vm1290_vm0, %v1450_v45  ;;  %v1451_v19 = vpack.c.bf16 %v1221_v17, %v1221_v17  ;;  %v1641_v53 = vadd.f32 %v1640_v52, %v1639_v51  ;;  %v1099_v43 = vadd.f32 %v1638_v47, %v2231_v37 }
 0x16b   :  { %1302 = vst.msk [vmem:[%s2330_s3 + $0x2c] sm:$0xf] %vm1290_vm0, %v1451_v19  ;;  %v1196_v22 = vadd.f32 %v1195_v7, %v1099_v43  ;;  %v1102_v48 = vadd.f32 %v1641_v53, %v2233_v40 }
 0x16d   :  { %v1222_v54 = vmax.f32 %v1196_v22, 0.0  ;;  %v1199_v55 = vadd.f32 %v1198_v10, %v1102_v48  ;;  %v1642_v57 = vpop.f32.mrb[60].mxu0 }
 0x16e   :  { %v1643_v58 = vpop.f32.mrb[61].mxu0 }
 0x16f   :  { %v1452_v60 = vpack.c.bf16 %v1222_v54, %v1222_v54  ;;  %v1223_v61 = vmax.f32 %v1199_v55, 0.0  ;;  %v1644_v63 = vadd.f32 %v1643_v58, %v1642_v57  ;;  %v1645_v2 = vpop.f32.mrb[62].mxu0 }
 0x170   :  { %v1646_v30 = vpop.f32.mrb[63].mxu0 }
 0x171   :  { %1303 = vst.msk [vmem:[%s2330_s3 + $0x30] sm:$0xf] %vm1290_vm0, %v1452_v60  ;;  %v1453_v37 = vpack.c.bf16 %v1223_v61, %v1223_v61  ;;  %v1107_v5 = vadd.f32 %v1644_v63, %v2237_v56  ;;  %v1647_v33 = vadd.f32 %v1646_v30, %v1645_v2 }
 0x173   :  { %1304 = vst.msk [vmem:[%s2330_s3 + $0x34] sm:$0xf] %vm1290_vm0, %v1453_v37  ;;  %v1204_v40 = vadd.f32 %v2263_v3, %v1107_v5  ;;  %v1110_v6 = vadd.f32 %v1647_v33, %v2239_v59 }
 0x175   :  { %v1224_v7 = vmax.f32 %v1204_v40, 0.0  ;;  %v1207_v9 = vadd.f32 %v2270_v8, %v1110_v6 }
 0x177   :  { %v1454_v49 = vpack.c.bf16 %v1224_v7, %v1224_v7  ;;  %v1225_v10 = vmax.f32 %v1207_v9, 0.0 }
 0x179   :  { %1305 = vst.msk [vmem:[%s2330_s3 + $0x38] sm:$0xf] %vm1290_vm0, %v1454_v49  ;;  %v1455_v56 = vpack.c.bf16 %v1225_v10, %v1225_v10 }
 0x17b   :  { %1306 = vst.msk [vmem:[%s2330_s3 + $0x3c] sm:$0xf] %vm1290_vm0, %v1455_v56 }

// kernel: convnet_v7_forward.9
= control target key start
LH: loop header
LB: loop body
LE: loop exit
PB: predicated region body
PF: predicated region fallthrough
CT: control target
= control target key end

     0   :  { %vm40_vm0 = vcmask 523264   ;;  %vm85_vm1 = vcmask 519168   ;;  %s207_s0 = inlined_call_operand.vmem [shape: bf16[4,32,64], index: 0, kind: input, shape index: {}]   ;;  %s208_s1 = inlined_call_operand.vmem [shape: bf16[32,64], index: 1, kind: output, shape index: {}]  }
   0x1   :  { %v103_v0 = vld [vmem:[%s207_s0] sm:$0xff]   ;;  %v135_v1 = vld [vmem:[%s207_s0 + $0x10] sm:$0xff]   ;;  %v134_v12 = vld [vmem:[%s207_s0 + $0x8] sm:$0xff]  }
   0x2   :  { %v137_v2 = vld [vmem:[%s207_s0 + $0x20] sm:$0xff]   ;;  %v104_v3 = vunpack.c.l.bf16 %v103_v0  ;;  %v112_v4 = vunpack.c.l.bf16 %v135_v1  ;;  %v139_v6 = vld [vmem:[%s207_s0 + $0x30] sm:$0xff]   ;;  %v105_v7 = vunpack.c.h.bf16 %v103_v0  ;;  %v113_v9 = vunpack.c.h.bf16 %v135_v1  ;;  %v136_v13 = vld [vmem:[%s207_s0 + $0x18] sm:$0xff]  }
   0x3   :  { %v120_v5 = vunpack.c.l.bf16 %v137_v2  ;;  %v128_v8 = vunpack.c.l.bf16 %v139_v6  ;;  %v121_v10 = vunpack.c.h.bf16 %v137_v2  ;;  %v129_v11 = vunpack.c.h.bf16 %v139_v6  ;;  %v138_v18 = vld [vmem:[%s207_s0 + $0x28] sm:$0xff]   ;;  %v140_v19 = vld [vmem:[%s207_s0 + $0x38] sm:$0xff]  }
   0x4   :  { %v41_v14 = vsel %vm40_vm0, %v104_v3, -inf  ;;  %v42_v15 = vsel %vm40_vm0, %v112_v4, -inf  ;;  %v48_v17 = vsel %vm40_vm0, %v105_v7, -inf  ;;  %v49_v22 = vsel %vm40_vm0, %v113_v9, -inf }
   0x5   :  { %v44_v16 = vsel %vm40_vm0, %v120_v5, -inf  ;;  %v43_v20 = vmax.f32 %v41_v14, %v42_v15  ;;  %v46_v21 = vsel %vm40_vm0, %v128_v8, -inf  ;;  %v51_v23 = vsel %vm40_vm0, %v121_v10, -inf }
   0x6   :  { %v50_v24 = vmax.f32 %v48_v17, %v49_v22  ;;  %v53_v25 = vsel %vm40_vm0, %v129_v11, -inf  ;;  %v108_v26 = vunpack.c.l.bf16 %v134_v12  ;;  %v116_v27 = vunpack.c.l.bf16 %v136_v13 }
   0x7   :  { %v45_v28 = vmax.f32 %v43_v20, %v44_v16  ;;  %v124_v29 = vunpack.c.l.bf16 %v138_v18  ;;  %v132_v30 = vunpack.c.l.bf16 %v140_v19  ;;  %v109_v31 = vunpack.c.h.bf16 %v134_v12 }
   0x8   :  { %v52_v32 = vmax.f32 %v50_v24, %v51_v23  ;;  %v55_v33 = vsel %vm40_vm0, %v108_v26, -inf  ;;  %v56_v34 = vsel %vm40_vm0, %v116_v27, -inf  ;;  %v117_v35 = vunpack.c.h.bf16 %v136_v13 }
   0x9   :  { %v47_v36 = vmax.f32 %v45_v28, %v46_v21  ;;  %v57_v37 = vmax.f32 %v55_v33, %v56_v34  ;;  %v58_v38 = vsel %vm40_vm0, %v124_v29, -inf  ;;  %v60_v39 = vsel %vm40_vm0, %v132_v30, -inf }
   0xa   :  { %v54_v40 = vmax.f32 %v52_v32, %v53_v25  ;;  %v125_v41 = vunpack.c.h.bf16 %v138_v18  ;;  %v133_v42 = vunpack.c.h.bf16 %v140_v19  ;;  %v62_v43 = vsel %vm40_vm0, %v109_v31, -inf }
   0xb   :  { %v98_v44 = vpack.c.bf16 %v47_v36, %v47_v36  ;;  %v59_v45 = vmax.f32 %v57_v37, %v58_v38  ;;  %v63_v46 = vsel %vm40_vm0, %v117_v35, -inf }
   0xc   :  { %v99_v47 = vpack.c.bf16 %v54_v40, %v54_v40  ;;  %v64_v48 = vmax.f32 %v62_v43, %v63_v46  ;;  %v65_v49 = vsel %vm40_vm0, %v125_v41, -inf  ;;  %v67_v51 = vsel %vm40_vm0, %v133_v42, -inf }
   0xd   :  { %86 = vst.msk [vmem:[%s208_s1] sm:$0xf] %vm85_vm1, %v98_v44  ;;  %v61_v50 = vmax.f32 %v59_v45, %v60_v39 }
   0xe   :  { %87 = vst.msk [vmem:[%s208_s1 + $0x4] sm:$0xf] %vm85_vm1, %v99_v47  ;;  %v66_v52 = vmax.f32 %v64_v48, %v65_v49 }
   0xf   :  { %v100_v53 = vpack.c.bf16 %v61_v50, %v61_v50 }
  0x10   :  { %v68_v54 = vmax.f32 %v66_v52, %v67_v51 }
  0x11   :  { %88 = vst.msk [vmem:[%s208_s1 + $0x8] sm:$0xf] %vm85_vm1, %v100_v53 }
  0x12   :  { %v101_v55 = vpack.c.bf16 %v68_v54, %v68_v54 }
  0x14   :  { %89 = vst.msk [vmem:[%s208_s1 + $0xc] sm:$0xf] %vm85_vm1, %v101_v55 }

// kernel: convnet_v7_forward.10
= control target key start
LH: loop header
LB: loop body
LE: loop exit
PB: predicated region body
PF: predicated region fallthrough
CT: control target
= control target key end

     0   :  { %vm573_vm0 = vcmask 519168   ;;  %s966_s1 = inlined_call_operand.vmem [shape: bf16[640,64], index: 1, kind: input, shape index: {}]   ;;  %s967_s0 = inlined_call_operand.vmem [shape: bf16[32,640], index: 0, kind: input, shape index: {}]   ;;  %s968_s2 = inlined_call_operand.vmem [shape: f32[1,64], index: 2, kind: input, shape index: {}]   ;;  %s969_s3 = inlined_call_operand.vmem [shape: bf16[32,64], index: 3, kind: output, shape index: {}]  }
   0x1   :  { %v727_v0 = vld [vmem:[%s966_s1 + $0x40] sm:$0xff]   ;;  %v731_v4 = vld [vmem:[%s966_s1 + $0x48] sm:$0xff]   ;;  %v735_v8 = vld [vmem:[%s966_s1 + $0x50] sm:$0xff]  }
   0x2   :  { %v728_v1 = vld [vmem:[%s966_s1] sm:$0xff]   ;;  %641 = vmatprep.subr.bf16.mxu0 %v727_v0  ;;  %v732_v5 = vld [vmem:[%s966_s1 + $0x8] sm:$0xff]   ;;  %v736_v9 = vld [vmem:[%s966_s1 + $0x10] sm:$0xff]  }
   0x3   :  { %v729_v2 = vld [vmem:[%s966_s1 + $0xc0] sm:$0xff]   ;;  %642 = vmatpush3.bf16.msra.mxu0 %v728_v1  ;;  %v733_v6 = vld [vmem:[%s966_s1 + $0xc8] sm:$0xff]   ;;  %v737_v10 = vld [vmem:[%s966_s1 + $0xd0] sm:$0xff]  }
   0x4   :  { %v730_v3 = vld [vmem:[%s966_s1 + $0x80] sm:$0xff]   ;;  %669 = vmatprep.subr.bf16.mxu1 %v729_v2  ;;  %643 = vmatprep.subr.bf16.mxu0 %v731_v4  ;;  %v734_v7 = vld [vmem:[%s966_s1 + $0x88] sm:$0xff]   ;;  %v738_v11 = vld [vmem:[%s966_s1 + $0x90] sm:$0xff]  }
   0x5   :  { %670 = vmatpush3.bf16.msra.mxu1 %v730_v3  ;;  %v739_v12 = vld [vmem:[%s966_s1 + $0x58] sm:$0xff]   ;;  %v743_v16 = vld [vmem:[%s966_s1 + $0x60] sm:$0xff]   ;;  %v747_v20 = vld [vmem:[%s966_s1 + $0x68] sm:$0xff]  }
   0x6   :  { %671 = vmatprep.subr.bf16.mxu1 %v733_v6  ;;  %v740_v13 = vld [vmem:[%s966_s1 + $0x18] sm:$0xff]   ;;  %v744_v17 = vld [vmem:[%s966_s1 + $0x20] sm:$0xff]   ;;  %v748_v21 = vld [vmem:[%s966_s1 + $0x28] sm:$0xff]  }
   0x7   :  { %644 = vmatpush3.bf16.msra.mxu0 %v732_v5  ;;  %v741_v14 = vld [vmem:[%s966_s1 + $0xd8] sm:$0xff]   ;;  %v745_v18 = vld [vmem:[%s966_s1 + $0xe0] sm:$0xff]   ;;  %v749_v22 = vld [vmem:[%s966_s1 + $0xe8] sm:$0xff]  }
   0x8   :  { %645 = vmatprep.subr.bf16.mxu0 %v735_v8  ;;  %v742_v15 = vld [vmem:[%s966_s1 + $0x98] sm:$0xff]   ;;  %v746_v19 = vld [vmem:[%s966_s1 + $0xa0] sm:$0xff]   ;;  %v750_v23 = vld [vmem:[%s966_s1 + $0xa8] sm:$0xff]  }
   0x9   :  { %672 = vmatpush3.bf16.msra.mxu1 %v734_v7  ;;  %v751_v24 = vld [vmem:[%s966_s1 + $0x70] sm:$0xff]   ;;  %v755_v28 = vld [vmem:[%s966_s1 + $0x78] sm:$0xff]   ;;  %v762_v34 = vld [vmem:[%s966_s1 + $0x100] sm:$0xff]  }
   0xa   :  { %673 = vmatprep.subr.bf16.mxu1 %v737_v10  ;;  %v752_v25 = vld [vmem:[%s966_s1 + $0x30] sm:$0xff]   ;;  %v756_v29 = vld [vmem:[%s966_s1 + $0x38] sm:$0xff]   ;;  %v765_v36 = vld [vmem:[%s967_s0 + $0xc] ss:$20 sps:$4 sm:$0xff]  }
   0xb   :  { %646 = vmatpush3.bf16.msra.mxu0 %v736_v9  ;;  %v753_v26 = vld [vmem:[%s966_s1 + $0xf0] sm:$0xff]   ;;  %v757_v30 = vld [vmem:[%s966_s1 + $0xf8] sm:$0xff]   ;;  %v766_v37 = vld [vmem:[%s966_s1 + $0x108] sm:$0xff]   ;;  %487 = vmatprep.mubr.bf16.mxu1 %v765_v36 }
   0xc   :  { %647 = vmatprep.subr.bf16.mxu0 %v739_v12  ;;  %v754_v27 = vld [vmem:[%s966_s1 + $0xb0] sm:$0xff]   ;;  %v760_v32 = vld [vmem:[%s967_s0 + $0x4] ss:$20 sps:$4 sm:$0xff]   ;;  %v763_v35 = vld [vmem:[%s967_s0 + $0x8] ss:$20 sps:$4 sm:$0xff]  }
   0xd   :  { %674 = vmatpush3.bf16.msra.mxu1 %v738_v11  ;;  %v758_v31 = vld [vmem:[%s967_s0] ss:$20 sps:$4 sm:$0xff]   ;;  %v761_v33 = vld [vmem:[%s966_s1 + $0xb8] sm:$0xff]   ;;  %438 = vmatprep.mubr.bf16.mxu0 %v760_v32  ;;  %v776_v43 = vld [vmem:[%s967_s0 + $0x30] ss:$20 sps:$4 sm:$0xff]  }
   0xe   :  { %675 = vmatprep.subr.bf16.mxu1 %v741_v14  ;;  %v767_v38 = vld [vmem:[%s966_s1 + $0x110] sm:$0xff]   ;;  %v770_v39 = vld [vmem:[%s967_s0 + $0x2c] ss:$20 sps:$4 sm:$0xff]   ;;  %v768_v40 = vld [vmem:[%s966_s1 + $0x118] sm:$0xff]  }
   0xf   :  { %648 = vmatpush3.bf16.msra.mxu0 %v740_v13  ;;  %v773_v41 = vld [vmem:[%s967_s0 + $0x28] ss:$20 sps:$4 sm:$0xff]   ;;  %v769_v44 = vld [vmem:[%s966_s1 + $0x120] sm:$0xff]   ;;  %v777_v47 = vld [vmem:[%s966_s1 + $0x130] sm:$0xff]  }
  0x10   :  { %649 = vmatprep.subr.bf16.mxu0 %v743_v16  ;;  %v774_v42 = vld [vmem:[%s967_s0 + $0x34] ss:$20 sps:$4 sm:$0xff]   ;;  %v779_v45 = vld [vmem:[%s967_s0 + $0x10] ss:$20 sps:$4 sm:$0xff]   ;;  %v778_v48 = vld [vmem:[%s966_s1 + $0x138] sm:$0xff]  }
  0x11   :  { %676 = vmatpush3.bf16.msra.mxu1 %v742_v15  ;;  %v772_v46 = vld [vmem:[%s966_s1 + $0x128] sm:$0xff]   ;;  %v582_v51 = vld [vmem:[%s968_s2] ss:$0 sm:$0xff] }
  0x12   :  { %677 = vmatprep.subr.bf16.mxu1 %v745_v18  ;;  %v780_v49 = vld [vmem:[%s967_s0 + $0x38] ss:$20 sps:$4 sm:$0xff]  }
  0x13   :  { %650 = vmatpush3.bf16.msra.mxu0 %v744_v17 }
  0x14   :  { %651 = vmatprep.subr.bf16.mxu0 %v747_v20 }
  0x15   :  { %678 = vmatpush3.bf16.msra.mxu1 %v746_v19 }
  0x16   :  { %679 = vmatprep.subr.bf16.mxu1 %v749_v22 }
  0x17   :  { %652 = vmatpush3.bf16.msra.mxu0 %v748_v21 }
  0x18   :  { %653 = vmatprep.subr.bf16.mxu0 %v751_v24 }
  0x19   :  { %680 = vmatpush3.bf16.msra.mxu1 %v750_v23 }
  0x1a   :  { %681 = vmatprep.subr.bf16.mxu1 %v753_v26 }
  0x1b   :  { %654 = vmatpush3.bf16.msra.mxu0 %v752_v25 }
  0x1c   :  { %655 = vmatprep.subr.bf16.mxu0 %v755_v28 }
  0x1d   :  { %682 = vmatpush3.bf16.msra.mxu1 %v754_v27 }
  0x1e   :  { %683 = vmatprep.subr.bf16.mxu1 %v757_v30 }
  0x1f   :  { %656 = vmatpush3.bf16.msra.mxu0 %v756_v29 }
  0x20   :  { %707 = vmatprep.subr.bf16.mxu0 %v762_v34 }
  0x21   :  { %684 = vmatpush3.bf16.msra.mxu1 %v761_v33 }
  0x22   :  { %439 = vmatmul.mubr.bf16.vlgmr.msra.gmra.mrb[0].mxu0 %v758_v31 }
  0x23   :  { %708 = vmatpush3.bf16.msra.mxu0 %v762_v34  ;;  %446 = vmatprep.mubr.bf16.mxu0 %v770_v39 }
  0x24   :  { %488 = vmatmul.mubr.bf16.vlgmr.msra.gmra.mrb[0].mxu1 %v763_v35  ;;  %709 = vmatprep.subr.bf16.mxu0 %v766_v37 }
  0x25   :  { %495 = vmatprep.mubr.bf16.mxu1 %v774_v42 }
  0x27   :  { %710 = vmatpush3.bf16.msra.mxu0 %v766_v37 }
  0x28   :  { %711 = vmatprep.subr.bf16.mxu0 %v767_v38 }
  0x2a   :  { %447 = vmatmul.mubr.bf16.gmra.mrb[4].mxu0 %v773_v41 }
  0x2b   :  { %712 = vmatpush3.bf16.msra.mxu0 %v767_v38  ;;  %723 = vmatprep.mubr.bf16.mxu0 %v779_v45 }
  0x2c   :  { %713 = vmatprep.subr.bf16.mxu0 %v768_v40  ;;  %496 = vmatmul.mubr.bf16.gmra.mrb[4].mxu1 %v776_v43 }
  0x2f   :  { %714 = vmatpush3.bf16.msra.mxu0 %v768_v40 }
  0x30   :  { %715 = vmatprep.subr.bf16.mxu0 %v769_v44 }
  0x33   :  { %716 = vmatpush3.bf16.msra.mxu0 %v769_v44 }
  0x34   :  { %717 = vmatprep.subr.bf16.mxu0 %v772_v46 }
  0x37   :  { %718 = vmatpush3.bf16.msra.mxu0 %v772_v46 }
  0x38   :  { %719 = vmatprep.subr.bf16.mxu0 %v777_v47 }
  0x3b   :  { %720 = vmatpush3.bf16.msra.mxu0 %v777_v47 }
  0x3c   :  { %721 = vmatprep.subr.bf16.mxu0 %v778_v48 }
  0x3f   :  { %722 = vmatpush3.bf16.msra.mxu0 %v778_v48 }
  0x42   :  { %724 = vmatmul.mubr.bf16.vlgmr.msra.gmra.mrb[8].mxu0 %v780_v49 }
  0xf5   :  { %v657_v50 = vpop.f32.mrb[0].mxu0 }
  0xf6   :  { %v658_v52 = vpop.f32.mrb[1].mxu0 }
  0xf7   :  { %v659_v53 = vadd.f32 %v658_v52, %v657_v50  ;;  %v660_v54 = vpop.f32.mrb[2].mxu0  ;;  %v685_v55 = vpop.f32.mrb[0].mxu1 }
  0xf8   :  { %v661_v56 = vpop.f32.mrb[3].mxu0  ;;  %v686_v59 = vpop.f32.mrb[1].mxu1 }
  0xf9   :  { %v441_v57 = vadd.f32 %v659_v53, %v582_v51  ;;  %v662_v58 = vadd.f32 %v661_v56, %v660_v54  ;;  %v687_v60 = vadd.f32 %v686_v59, %v685_v55  ;;  %v688_v61 = vpop.f32.mrb[2].mxu1 }
  0xfa   :  { %v689_v63 = vpop.f32.mrb[3].mxu1 }
  0xfb   :  { %v444_v62 = vadd.f32 %v662_v58, %v582_v51  ;;  %v690_v0 = vadd.f32 %v689_v63, %v688_v61  ;;  %v490_v1 = vadd.f32 %v687_v60, %v441_v57 }
  0xfd   :  { %v663_v2 = vpop.f32.mrb[4].mxu0  ;;  %v493_v4 = vadd.f32 %v690_v0, %v444_v62 }
  0xfe   :  { %v664_v3 = vpop.f32.mrb[5].mxu0 }
  0xff   :  { %v665_v5 = vadd.f32 %v664_v3, %v663_v2  ;;  %v666_v6 = vpop.f32.mrb[6].mxu0  ;;  %v691_v7 = vpop.f32.mrb[4].mxu1 }
 0x100   :  { %v667_v8 = vpop.f32.mrb[7].mxu0  ;;  %v692_v11 = vpop.f32.mrb[5].mxu1 }
 0x101   :  { %v449_v9 = vadd.f32 %v665_v5, %v582_v51  ;;  %v668_v10 = vadd.f32 %v667_v8, %v666_v6  ;;  %v693_v12 = vadd.f32 %v692_v11, %v691_v7  ;;  %v694_v13 = vpop.f32.mrb[6].mxu1 }
 0x102   :  { %v695_v15 = vpop.f32.mrb[7].mxu1 }
 0x103   :  { %v452_v14 = vadd.f32 %v668_v10, %v582_v51  ;;  %v696_v16 = vadd.f32 %v695_v15, %v694_v13  ;;  %v498_v17 = vadd.f32 %v693_v12, %v449_v9 }
 0x105   :  { %v501_v18 = vadd.f32 %v696_v16, %v452_v14 }
 0x115   :  { %v725_v19 = vpop.f32.mrb[8].mxu0 }
 0x116   :  { %v547_v20 = vadd.f32 %v725_v19, %v498_v17  ;;  %v538_v21 = vpop.f32.mrb[9].mxu0 }
 0x117   :  { %v539_v22 = vadd.f32 %v538_v21, %v490_v1  ;;  %v726_v23 = vpop.f32.mrb[10].mxu0 }
 0x118   :  { %v555_v24 = vmax.f32 %v547_v20, 0.0  ;;  %v550_v25 = vadd.f32 %v726_v23, %v501_v18  ;;  %v541_v26 = vpop.f32.mrb[11].mxu0 }
 0x119   :  { %v553_v27 = vmax.f32 %v539_v22, 0.0  ;;  %v542_v28 = vadd.f32 %v541_v26, %v493_v4 }
 0x11a   :  { %v639_v29 = vpack.c.bf16 %v555_v24, %v555_v24  ;;  %v556_v30 = vmax.f32 %v550_v25, 0.0 }
 0x11b   :  { %v637_v31 = vpack.c.bf16 %v553_v27, %v553_v27  ;;  %v554_v32 = vmax.f32 %v542_v28, 0.0 }
 0x11c   :  { %576 = vst.msk [vmem:[%s969_s3 + $0x8] sm:$0xf] %vm573_vm0, %v639_v29  ;;  %v640_v33 = vpack.c.bf16 %v556_v30, %v556_v30 }
 0x11d   :  { %574 = vst.msk [vmem:[%s969_s3] sm:$0xf] %vm573_vm0, %v637_v31  ;;  %v638_v34 = vpack.c.bf16 %v554_v32, %v554_v32 }
 0x11e   :  { %577 = vst.msk [vmem:[%s969_s3 + $0xc] sm:$0xf] %vm573_vm0, %v640_v33 }
 0x11f   :  { %575 = vst.msk [vmem:[%s969_s3 + $0x4] sm:$0xf] %vm573_vm0, %v638_v34 }

// kernel: convnet_v7_forward.11
= control target key start
LH: loop header
LB: loop body
LE: loop exit
PB: predicated region body
PF: predicated region fallthrough
CT: control target
= control target key end

     0   :  { %vm1085_vm0 = vcmask 523264   ;;  %vm1524_vm1 = vcmask 15360   ;;  %s2683_s1 = inlined_call_operand.vmem [shape: bf16[1344,256], index: 1, kind: input, shape index: {}]   ;;  %s2684_s0 = inlined_call_operand.vmem [shape: bf16[8,1344], index: 0, kind: input, shape index: {}]   ;;  %s2685_s3 = inlined_call_operand.vmem [shape: bf16[256,2], index: 3, kind: input, shape index: {}]   ;;  %s2686_s2 = inlined_call_operand.vmem [shape: f32[1,256], index: 2, kind: input, shape index: {}]   ;;  %s2687_s4 = inlined_call_operand.vmem [shape: f32[1,2], index: 4, kind: input, shape index: {}]   ;;  %s2688_s5 = inlined_call_operand.vmem [shape: f32[8,2], index: 5, kind: output, shape index: {}]  }
   0x1   :  { %v1768_v0 = vld [vmem:[%s2683_s1 + $0x4] ss:$8 sps:$4 sm:$0xff]   ;;  %v1772_v2 = vld [vmem:[%s2683_s1] ss:$8 sps:$4 sm:$0xff]   ;;  %v1774_v4 = vld [vmem:[%s2683_s1 + $0x14] ss:$8 sps:$4 sm:$0xff]  }
   0x2   :  { %v1770_v1 = vld [vmem:[%s2683_s1 + $0x204] ss:$8 sps:$4 sm:$0xff]   ;;  %1089 = vmatprep.subr.bf16.mxu1 %v1768_v0  ;;  %v1773_v3 = vld [vmem:[%s2683_s1 + $0x200] ss:$8 sps:$4 sm:$0xff]   ;;  %v1776_v5 = vld [vmem:[%s2683_s1 + $0x214] ss:$8 sps:$4 sm:$0xff]  }
   0x3   :  { %1171 = vmatprep.subr.bf16.mxu0 %v1770_v1  ;;  %1090 = vmatpush1.bf16.msra.mxu1 %v1772_v2  ;;  %v1778_v6 = vld [vmem:[%s2683_s1 + $0x10] ss:$8 sps:$4 sm:$0xff]   ;;  %v1780_v8 = vld [vmem:[%s2683_s1 + $0x24] ss:$8 sps:$4 sm:$0xff]   ;;  %v1784_v10 = vld [vmem:[%s2683_s1 + $0x20] ss:$8 sps:$4 sm:$0xff]  }
   0x4   :  { %1172 = vmatpush1.bf16.msra.mxu0 %v1773_v3  ;;  %1091 = vmatprep.subr.bf16.mxu1 %v1774_v4  ;;  %v1779_v7 = vld [vmem:[%s2683_s1 + $0x210] ss:$8 sps:$4 sm:$0xff]   ;;  %v1782_v9 = vld [vmem:[%s2683_s1 + $0x224] ss:$8 sps:$4 sm:$0xff]   ;;  %v1785_v11 = vld [vmem:[%s2683_s1 + $0x220] ss:$8 sps:$4 sm:$0xff]  }
   0x5   :  { %1173 = vmatprep.subr.bf16.mxu0 %v1776_v5  ;;  %v1786_v12 = vld [vmem:[%s2683_s1 + $0x34] ss:$8 sps:$4 sm:$0xff]   ;;  %v1790_v14 = vld [vmem:[%s2683_s1 + $0x30] ss:$8 sps:$4 sm:$0xff]   ;;  %v1792_v16 = vld [vmem:[%s2683_s1 + $0x44] ss:$8 sps:$4 sm:$0xff]  }
   0x6   :  { %v1788_v13 = vld [vmem:[%s2683_s1 + $0x234] ss:$8 sps:$4 sm:$0xff]   ;;  %v1791_v15 = vld [vmem:[%s2683_s1 + $0x230] ss:$8 sps:$4 sm:$0xff]   ;;  %v1794_v17 = vld [vmem:[%s2683_s1 + $0x244] ss:$8 sps:$4 sm:$0xff]  }
   0x7   :  { %1092 = vmatpush1.bf16.msra.mxu1 %v1778_v6  ;;  %v1796_v18 = vld [vmem:[%s2683_s1 + $0x40] ss:$8 sps:$4 sm:$0xff]   ;;  %v1798_v20 = vld [vmem:[%s2683_s1 + $0x54] ss:$8 sps:$4 sm:$0xff]   ;;  %v1802_v22 = vld [vmem:[%s2683_s1 + $0x50] ss:$8 sps:$4 sm:$0xff]  }
   0x8   :  { %1174 = vmatpush1.bf16.msra.mxu0 %v1779_v7  ;;  %1093 = vmatprep.subr.bf16.mxu1 %v1780_v8  ;;  %v1797_v19 = vld [vmem:[%s2683_s1 + $0x240] ss:$8 sps:$4 sm:$0xff]   ;;  %v1800_v21 = vld [vmem:[%s2683_s1 + $0x254] ss:$8 sps:$4 sm:$0xff]   ;;  %v1803_v23 = vld [vmem:[%s2683_s1 + $0x250] ss:$8 sps:$4 sm:$0xff]  }
   0x9   :  { %1175 = vmatprep.subr.bf16.mxu0 %v1782_v9  ;;  %v1804_v24 = vld [vmem:[%s2683_s1 + $0x64] ss:$8 sps:$4 sm:$0xff]   ;;  %v1808_v26 = vld [vmem:[%s2683_s1 + $0x60] ss:$8 sps:$4 sm:$0xff]   ;;  %v1810_v28 = vld [vmem:[%s2683_s1 + $0x74] ss:$8 sps:$4 sm:$0xff]  }
   0xa   :  { %v1806_v25 = vld [vmem:[%s2683_s1 + $0x264] ss:$8 sps:$4 sm:$0xff]   ;;  %v1809_v27 = vld [vmem:[%s2683_s1 + $0x260] ss:$8 sps:$4 sm:$0xff]   ;;  %v1812_v29 = vld [vmem:[%s2683_s1 + $0x274] ss:$8 sps:$4 sm:$0xff]  }
   0xb   :  { %1094 = vmatpush1.bf16.msra.mxu1 %v1784_v10  ;;  %v1814_v30 = vld [vmem:[%s2683_s1 + $0x70] ss:$8 sps:$4 sm:$0xff]   ;;  %v1816_v32 = vld [vmem:[%s2683_s1 + $0x84] ss:$8 sps:$4 sm:$0xff]   ;;  %v1820_v34 = vld [vmem:[%s2683_s1 + $0x80] ss:$8 sps:$4 sm:$0xff]  }
   0xc   :  { %1176 = vmatpush1.bf16.msra.mxu0 %v1785_v11  ;;  %1095 = vmatprep.subr.bf16.mxu1 %v1786_v12  ;;  %v1815_v31 = vld [vmem:[%s2683_s1 + $0x270] ss:$8 sps:$4 sm:$0xff]   ;;  %v1818_v33 = vld [vmem:[%s2683_s1 + $0x284] ss:$8 sps:$4 sm:$0xff]   ;;  %v1821_v35 = vld [vmem:[%s2683_s1 + $0x280] ss:$8 sps:$4 sm:$0xff]  }
   0xd   :  { %1177 = vmatprep.subr.bf16.mxu0 %v1788_v13  ;;  %v1822_v36 = vld [vmem:[%s2683_s1 + $0x94] ss:$8 sps:$4 sm:$0xff]   ;;  %v1826_v38 = vld [vmem:[%s2683_s1 + $0x90] ss:$8 sps:$4 sm:$0xff]   ;;  %v1828_v40 = vld [vmem:[%s2683_s1 + $0xa4] ss:$8 sps:$4 sm:$0xff]  }
   0xe   :  { %v1824_v37 = vld [vmem:[%s2683_s1 + $0x294] ss:$8 sps:$4 sm:$0xff]   ;;  %v1827_v39 = vld [vmem:[%s2683_s1 + $0x290] ss:$8 sps:$4 sm:$0xff]   ;;  %v1830_v41 = vld [vmem:[%s2683_s1 + $0x2a4] ss:$8 sps:$4 sm:$0xff]  }
   0xf   :  { %1096 = vmatpush1.bf16.msra.mxu1 %v1790_v14  ;;  %v1832_v42 = vld [vmem:[%s2683_s1 + $0xa0] ss:$8 sps:$4 sm:$0xff]   ;;  %v1834_v44 = vld [vmem:[%s2683_s1 + $0xb4] ss:$8 sps:$4 sm:$0xff]   ;;  %v1838_v47 = vld [vmem:[%s2683_s1 + $0xb0] ss:$8 sps:$4 sm:$0xff]  }
  0x10   :  { %1178 = vmatpush1.bf16.msra.mxu0 %v1791_v15  ;;  %1097 = vmatprep.subr.bf16.mxu1 %v1792_v16  ;;  %v1833_v43 = vld [vmem:[%s2683_s1 + $0x2a0] ss:$8 sps:$4 sm:$0xff]   ;;  %v1836_v45 = vld [vmem:[%s2683_s1 + $0x2b4] ss:$8 sps:$4 sm:$0xff]   ;;  %v1839_v49 = vld [vmem:[%s2683_s1 + $0x2b0] ss:$8 sps:$4 sm:$0xff]  }
  0x11   :  { %1179 = vmatprep.subr.bf16.mxu0 %v1794_v17  ;;  %v21_v46 = vld [vmem:[%s2684_s0] sm:$0xff]  ;;  %v23_v50 = vld [vmem:[%s2684_s0 + $0x10] sm:$0xff] }
  0x12   :  { %v1531_v48 = vcombine.high %v21_v46, %v21_v46  ;;  %v1840_v51 = vld [vmem:[%s2683_s1 + $0xc4] ss:$8 sps:$4 sm:$0xff]   ;;  %v1535_v53 = vcombine.high %v23_v50, %v23_v50  ;;  %v1844_v54 = vld [vmem:[%s2683_s1 + $0xc0] ss:$8 sps:$4 sm:$0xff]   ;;  %v1846_v56 = vld [vmem:[%s2683_s1 + $0xd4] ss:$8 sps:$4 sm:$0xff]   ;;  %v1530_v6 = vcombine.low %v21_v46, %v21_v46  ;;  %v1534_v7 = vcombine.low %v23_v50, %v23_v50 }
  0x13   :  { %1098 = vmatpush1.bf16.msra.mxu1 %v1796_v18  ;;  %v1842_v52 = vld [vmem:[%s2683_s1 + $0x2c4] ss:$8 sps:$4 sm:$0xff]   ;;  %v1845_v55 = vld [vmem:[%s2683_s1 + $0x2c0] ss:$8 sps:$4 sm:$0xff]   ;;  %v1848_v57 = vld [vmem:[%s2683_s1 + $0x2d4] ss:$8 sps:$4 sm:$0xff]  }
  0x14   :  { %1180 = vmatpush1.bf16.msra.mxu0 %v1797_v19  ;;  %1099 = vmatprep.subr.bf16.mxu1 %v1798_v20  ;;  %v1850_v58 = vld [vmem:[%s2683_s1 + $0xd0] ss:$8 sps:$4 sm:$0xff]   ;;  %v1852_v60 = vld [vmem:[%s2683_s1 + $0xe4] ss:$8 sps:$4 sm:$0xff]   ;;  %v1856_v62 = vld [vmem:[%s2683_s1 + $0xe0] ss:$8 sps:$4 sm:$0xff]  }
  0x15   :  { %1181 = vmatprep.subr.bf16.mxu0 %v1800_v21  ;;  %1121 = vmatprep.mubr.bf16.mxu1 %v1531_v48  ;;  %v1851_v59 = vld [vmem:[%s2683_s1 + $0x2d0] ss:$8 sps:$4 sm:$0xff]   ;;  %v1854_v61 = vld [vmem:[%s2683_s1 + $0x2e4] ss:$8 sps:$4 sm:$0xff]   ;;  %v1857_v63 = vld [vmem:[%s2683_s1 + $0x2e0] ss:$8 sps:$4 sm:$0xff]  }
  0x16   :  { %1203 = vmatprep.mubr.bf16.mxu0 %v1535_v53  ;;  %v1858_v0 = vld [vmem:[%s2683_s1 + $0xf4] ss:$8 sps:$4 sm:$0xff]   ;;  %v1862_v2 = vld [vmem:[%s2683_s1 + $0xf0] ss:$8 sps:$4 sm:$0xff]   ;;  %v1868_v4 = vld [vmem:[%s2683_s1 + $0x104] ss:$8 sps:$4 sm:$0xff]  }
  0x17   :  { %1100 = vmatpush1.bf16.msra.mxu1 %v1802_v22  ;;  %v1860_v1 = vld [vmem:[%s2683_s1 + $0x2f4] ss:$8 sps:$4 sm:$0xff]   ;;  %v1863_v3 = vld [vmem:[%s2683_s1 + $0x2f0] ss:$8 sps:$4 sm:$0xff]   ;;  %v1873_v5 = vld [vmem:[%s2683_s1 + $0x304] ss:$8 sps:$4 sm:$0xff]  }
  0x18   :  { %1182 = vmatpush1.bf16.msra.mxu0 %v1803_v23  ;;  %1101 = vmatprep.subr.bf16.mxu1 %v1804_v24  ;;  %v1866_v8 = vld [vmem:[%s2683_s1 + $0x100] ss:$8 sps:$4 sm:$0xff]   ;;  %v1876_v10 = vld [vmem:[%s2683_s1 + $0x114] ss:$8 sps:$4 sm:$0xff]   ;;  %v1874_v12 = vld [vmem:[%s2683_s1 + $0x110] ss:$8 sps:$4 sm:$0xff]  }
  0x19   :  { %1183 = vmatprep.subr.bf16.mxu0 %v1806_v25  ;;  %v1871_v9 = vld [vmem:[%s2683_s1 + $0x300] ss:$8 sps:$4 sm:$0xff]   ;;  %v1879_v11 = vld [vmem:[%s2683_s1 + $0x314] ss:$8 sps:$4 sm:$0xff]   ;;  %v1877_v13 = vld [vmem:[%s2683_s1 + $0x310] ss:$8 sps:$4 sm:$0xff]  }
  0x1a   :  { %v1882_v14 = vld [vmem:[%s2683_s1 + $0x124] ss:$8 sps:$4 sm:$0xff]   ;;  %v1880_v16 = vld [vmem:[%s2683_s1 + $0x120] ss:$8 sps:$4 sm:$0xff]   ;;  %v1888_v18 = vld [vmem:[%s2683_s1 + $0x134] ss:$8 sps:$4 sm:$0xff]  }
  0x1b   :  { %1102 = vmatpush1.bf16.msra.mxu1 %v1808_v26  ;;  %v1885_v15 = vld [vmem:[%s2683_s1 + $0x324] ss:$8 sps:$4 sm:$0xff]   ;;  %v1883_v17 = vld [vmem:[%s2683_s1 + $0x320] ss:$8 sps:$4 sm:$0xff]   ;;  %v1891_v19 = vld [vmem:[%s2683_s1 + $0x334] ss:$8 sps:$4 sm:$0xff]  }
  0x1c   :  { %1184 = vmatpush1.bf16.msra.mxu0 %v1809_v27  ;;  %1103 = vmatprep.subr.bf16.mxu1 %v1810_v28  ;;  %v1886_v20 = vld [vmem:[%s2683_s1 + $0x130] ss:$8 sps:$4 sm:$0xff]   ;;  %v1894_v22 = vld [vmem:[%s2683_s1 + $0x144] ss:$8 sps:$4 sm:$0xff]   ;;  %v1892_v24 = vld [vmem:[%s2683_s1 + $0x140] ss:$8 sps:$4 sm:$0xff]  }
  0x1d   :  { %1185 = vmatprep.subr.bf16.mxu0 %v1812_v29  ;;  %v1889_v21 = vld [vmem:[%s2683_s1 + $0x330] ss:$8 sps:$4 sm:$0xff]   ;;  %v1897_v23 = vld [vmem:[%s2683_s1 + $0x344] ss:$8 sps:$4 sm:$0xff]   ;;  %v1895_v25 = vld [vmem:[%s2683_s1 + $0x340] ss:$8 sps:$4 sm:$0xff]  }
  0x1e   :  { %v1900_v26 = vld [vmem:[%s2683_s1 + $0x154] ss:$8 sps:$4 sm:$0xff]   ;;  %v1898_v28 = vld [vmem:[%s2683_s1 + $0x150] ss:$8 sps:$4 sm:$0xff]   ;;  %v1930_v50 = vld [vmem:[%s2683_s1 + $0x1a4] ss:$8 sps:$4 sm:$0xff]  }
  0x1f   :  { %1104 = vmatpush1.bf16.msra.mxu1 %v1814_v30  ;;  %v1903_v27 = vld [vmem:[%s2683_s1 + $0x354] ss:$8 sps:$4 sm:$0xff]   ;;  %v1901_v29 = vld [vmem:[%s2683_s1 + $0x350] ss:$8 sps:$4 sm:$0xff]   ;;  %v1906_v30 = vld [vmem:[%s2683_s1 + $0x164] ss:$8 sps:$4 sm:$0xff]  }
  0x20   :  { %1186 = vmatpush1.bf16.msra.mxu0 %v1815_v31  ;;  %1105 = vmatprep.subr.bf16.mxu1 %v1816_v32  ;;  %v1909_v31 = vld [vmem:[%s2683_s1 + $0x364] ss:$8 sps:$4 sm:$0xff]   ;;  %v1924_v46 = vld [vmem:[%s2683_s1 + $0x194] ss:$8 sps:$4 sm:$0xff]   ;;  %v1922_v48 = vld [vmem:[%s2683_s1 + $0x190] ss:$8 sps:$4 sm:$0xff]  }
  0x21   :  { %1187 = vmatprep.subr.bf16.mxu0 %v1818_v33  ;;  %v2365_v32 = vld [vmem:[%s2684_s0 + $0x8] sm:$0xff]  ;;  %v2370_v33 = vld [vmem:[%s2684_s0 + $0x18] sm:$0xff] }
  0x22   :  { %v1931_v53 = vld [vmem:[%s2683_s1 + $0x3a0] ss:$8 sps:$4 sm:$0xff]  }
  0x23   :  { %1106 = vmatpush1.bf16.msra.mxu1 %v1820_v34  ;;  %v1904_v34 = vld [vmem:[%s2683_s1 + $0x160] ss:$8 sps:$4 sm:$0xff]  }
  0x24   :  { %1188 = vmatpush1.bf16.msra.mxu0 %v1821_v35  ;;  %1107 = vmatprep.subr.bf16.mxu1 %v1822_v36  ;;  %v1907_v35 = vld [vmem:[%s2683_s1 + $0x360] ss:$8 sps:$4 sm:$0xff]   ;;  %v1533_v36 = vcombine.high %v2365_v32, %v2365_v32 }
  0x25   :  { %1189 = vmatprep.subr.bf16.mxu0 %v1824_v37  ;;  %v1537_v37 = vcombine.high %v2370_v33, %v2370_v33 }
  0x27   :  { %1108 = vmatpush1.bf16.msra.mxu1 %v1826_v38  ;;  %v1912_v38 = vld [vmem:[%s2683_s1 + $0x174] ss:$8 sps:$4 sm:$0xff]  }
  0x28   :  { %1190 = vmatpush1.bf16.msra.mxu0 %v1827_v39  ;;  %1109 = vmatprep.subr.bf16.mxu1 %v1828_v40  ;;  %v1915_v39 = vld [vmem:[%s2683_s1 + $0x374] ss:$8 sps:$4 sm:$0xff]   ;;  %v1910_v40 = vld [vmem:[%s2683_s1 + $0x170] ss:$8 sps:$4 sm:$0xff]  }
  0x29   :  { %1191 = vmatprep.subr.bf16.mxu0 %v1830_v41  ;;  %v1913_v41 = vld [vmem:[%s2683_s1 + $0x370] ss:$8 sps:$4 sm:$0xff]  }
  0x2b   :  { %1110 = vmatpush1.bf16.msra.mxu1 %v1832_v42  ;;  %v1918_v42 = vld [vmem:[%s2683_s1 + $0x184] ss:$8 sps:$4 sm:$0xff]  }
  0x2c   :  { %1192 = vmatpush1.bf16.msra.mxu0 %v1833_v43  ;;  %1111 = vmatprep.subr.bf16.mxu1 %v1834_v44  ;;  %v1921_v43 = vld [vmem:[%s2683_s1 + $0x384] ss:$8 sps:$4 sm:$0xff]   ;;  %v1916_v44 = vld [vmem:[%s2683_s1 + $0x180] ss:$8 sps:$4 sm:$0xff]  }
  0x2d   :  { %1193 = vmatprep.subr.bf16.mxu0 %v1836_v45  ;;  %v1919_v45 = vld [vmem:[%s2683_s1 + $0x380] ss:$8 sps:$4 sm:$0xff]  }
  0x2f   :  { %1112 = vmatpush1.bf16.msra.mxu1 %v1838_v47  ;;  %v1927_v47 = vld [vmem:[%s2683_s1 + $0x394] ss:$8 sps:$4 sm:$0xff]  }
  0x30   :  { %1194 = vmatpush1.bf16.msra.mxu0 %v1839_v49  ;;  %1113 = vmatprep.subr.bf16.mxu1 %v1840_v51  ;;  %v1925_v49 = vld [vmem:[%s2683_s1 + $0x390] ss:$8 sps:$4 sm:$0xff]   ;;  %v1933_v51 = vld [vmem:[%s2683_s1 + $0x3a4] ss:$8 sps:$4 sm:$0xff]  }
  0x31   :  { %1195 = vmatprep.subr.bf16.mxu0 %v1842_v52  ;;  %v1928_v52 = vld [vmem:[%s2683_s1 + $0x1a0] ss:$8 sps:$4 sm:$0xff]  }
  0x33   :  { %1114 = vmatpush1.bf16.msra.mxu1 %v1844_v54  ;;  %v1936_v54 = vld [vmem:[%s2683_s1 + $0x1b4] ss:$8 sps:$4 sm:$0xff]  }
  0x34   :  { %1196 = vmatpush1.bf16.msra.mxu0 %v1845_v55  ;;  %1115 = vmatprep.subr.bf16.mxu1 %v1846_v56  ;;  %v1939_v55 = vld [vmem:[%s2683_s1 + $0x3b4] ss:$8 sps:$4 sm:$0xff]   ;;  %v1934_v56 = vld [vmem:[%s2683_s1 + $0x1b0] ss:$8 sps:$4 sm:$0xff]  }
  0x35   :  { %1197 = vmatprep.subr.bf16.mxu0 %v1848_v57  ;;  %v1937_v57 = vld [vmem:[%s2683_s1 + $0x3b0] ss:$8 sps:$4 sm:$0xff]  }
  0x37   :  { %1116 = vmatpush1.bf16.msra.mxu1 %v1850_v58  ;;  %v1942_v58 = vld [vmem:[%s2683_s1 + $0x1c4] ss:$8 sps:$4 sm:$0xff]  }
  0x38   :  { %1198 = vmatpush1.bf16.msra.mxu0 %v1851_v59  ;;  %1117 = vmatprep.subr.bf16.mxu1 %v1852_v60  ;;  %v1945_v59 = vld [vmem:[%s2683_s1 + $0x3c4] ss:$8 sps:$4 sm:$0xff]   ;;  %v1940_v60 = vld [vmem:[%s2683_s1 + $0x1c0] ss:$8 sps:$4 sm:$0xff]  }
  0x39   :  { %1199 = vmatprep.subr.bf16.mxu0 %v1854_v61  ;;  %v1943_v61 = vld [vmem:[%s2683_s1 + $0x3c0] ss:$8 sps:$4 sm:$0xff]  }
  0x3b   :  { %1118 = vmatpush1.bf16.msra.mxu1 %v1856_v62  ;;  %v1948_v62 = vld [vmem:[%s2683_s1 + $0x1d4] ss:$8 sps:$4 sm:$0xff]  }
  0x3c   :  { %1200 = vmatpush1.bf16.msra.mxu0 %v1857_v63  ;;  %1119 = vmatprep.subr.bf16.mxu1 %v1858_v0  ;;  %v1951_v63 = vld [vmem:[%s2683_s1 + $0x3d4] ss:$8 sps:$4 sm:$0xff]   ;;  %v1946_v0 = vld [vmem:[%s2683_s1 + $0x1d0] ss:$8 sps:$4 sm:$0xff]  }
  0x3d   :  { %1201 = vmatprep.subr.bf16.mxu0 %v1860_v1  ;;  %v1949_v1 = vld [vmem:[%s2683_s1 + $0x3d0] ss:$8 sps:$4 sm:$0xff]  }
  0x3f   :  { %1120 = vmatpush1.bf16.msra.mxu1 %v1862_v2  ;;  %v1954_v2 = vld [vmem:[%s2683_s1 + $0x1e4] ss:$8 sps:$4 sm:$0xff]  }
  0x40   :  { %1202 = vmatpush1.bf16.msra.mxu0 %v1863_v3  ;;  %1130 = vmatprep.subr.bf16.mxu1 %v1868_v4  ;;  %v1957_v3 = vld [vmem:[%s2683_s1 + $0x3e4] ss:$8 sps:$4 sm:$0xff]   ;;  %v1952_v4 = vld [vmem:[%s2683_s1 + $0x1e0] ss:$8 sps:$4 sm:$0xff]  }
  0x41   :  { %1212 = vmatprep.subr.bf16.mxu0 %v1873_v5  ;;  %v1955_v5 = vld [vmem:[%s2683_s1 + $0x3e0] ss:$8 sps:$4 sm:$0xff]  }
  0x42   :  { %1122 = vmatmul.mubr.bf16.vlgmr.msra.gmra.mrb[0].mxu1 %v1530_v6  ;;  %v1960_v6 = vld [vmem:[%s2683_s1 + $0x1f4] ss:$8 sps:$4 sm:$0xff]  }
  0x43   :  { %1204 = vmatmul.mubr.bf16.vlgmr.msra.gmra.mrb[0].mxu0 %v1534_v7  ;;  %1131 = vmatpush1.bf16.msra.mxu1 %v1866_v8  ;;  %v1963_v7 = vld [vmem:[%s2683_s1 + $0x3f4] ss:$8 sps:$4 sm:$0xff]   ;;  %v1958_v8 = vld [vmem:[%s2683_s1 + $0x1f0] ss:$8 sps:$4 sm:$0xff]  }
  0x44   :  { %1213 = vmatpush1.bf16.msra.mxu0 %v1871_v9  ;;  %1132 = vmatprep.subr.bf16.mxu1 %v1876_v10  ;;  %v1961_v9 = vld [vmem:[%s2683_s1 + $0x3f0] ss:$8 sps:$4 sm:$0xff]   ;;  %v1970_v10 = vld [vmem:[%s2683_s1 + $0x404] ss:$8 sps:$4 sm:$0xff]  }
  0x45   :  { %1214 = vmatprep.subr.bf16.mxu0 %v1879_v11  ;;  %1162 = vmatprep.mubr.bf16.mxu1 %v1533_v36  ;;  %v2006_v11 = vld [vmem:[%s2683_s1 + $0x504] ss:$8 sps:$4 sm:$0xff]  }
  0x46   :  { %1244 = vmatprep.mubr.bf16.mxu0 %v1537_v37  ;;  %v1988_v36 = vld [vmem:[%s2683_s1 + $0x464] ss:$8 sps:$4 sm:$0xff]   ;;  %v1986_v37 = vld [vmem:[%s2683_s1 + $0x460] ss:$8 sps:$4 sm:$0xff]  }
  0x47   :  { %1133 = vmatpush1.bf16.msra.mxu1 %v1874_v12  ;;  %v1532_v12 = vcombine.low %v2365_v32, %v2365_v32  ;;  %v2030_v32 = vld [vmem:[%s2684_s0 + $0x28] ss:$0 sps:$4 sm:$0xff]  }
  0x48   :  { %1215 = vmatpush1.bf16.msra.mxu0 %v1877_v13  ;;  %1134 = vmatprep.subr.bf16.mxu1 %v1882_v14  ;;  %v1536_v13 = vcombine.low %v2370_v33, %v2370_v33  ;;  %v2503_v14 = vld [vmem:[%s2684_s0 + $0x20] sm:$0xff] }
  0x49   :  { %1216 = vmatprep.subr.bf16.mxu0 %v1885_v15  ;;  %v1968_v15 = vld [vmem:[%s2683_s1 + $0x400] ss:$8 sps:$4 sm:$0xff]  }
  0x4a   :  { %v1980_v33 = vld [vmem:[%s2683_s1 + $0x440] ss:$8 sps:$4 sm:$0xff]  }
  0x4b   :  { %1135 = vmatpush1.bf16.msra.mxu1 %v1880_v16  ;;  %v2004_v16 = vld [vmem:[%s2683_s1 + $0x500] ss:$8 sps:$4 sm:$0xff]  }
  0x4c   :  { %1217 = vmatpush1.bf16.msra.mxu0 %v1883_v17  ;;  %1136 = vmatprep.subr.bf16.mxu1 %v1888_v18  ;;  %v1973_v17 = vld [vmem:[%s2683_s1 + $0x414] ss:$8 sps:$4 sm:$0xff]  }
  0x4d   :  { %1218 = vmatprep.subr.bf16.mxu0 %v1891_v19  ;;  %v2012_v18 = vld [vmem:[%s2683_s1 + $0x514] ss:$8 sps:$4 sm:$0xff]   ;;  %v1539_v19 = vcombine.high %v2503_v14, %v2503_v14 }
  0x4f   :  { %1137 = vmatpush1.bf16.msra.mxu1 %v1886_v20  ;;  %v1971_v20 = vld [vmem:[%s2683_s1 + $0x410] ss:$8 sps:$4 sm:$0xff]  }
  0x50   :  { %1219 = vmatpush1.bf16.msra.mxu0 %v1889_v21  ;;  %1138 = vmatprep.subr.bf16.mxu1 %v1894_v22  ;;  %v2010_v21 = vld [vmem:[%s2683_s1 + $0x510] ss:$8 sps:$4 sm:$0xff]   ;;  %v1976_v22 = vld [vmem:[%s2683_s1 + $0x424] ss:$8 sps:$4 sm:$0xff]  }
  0x51   :  { %1220 = vmatprep.subr.bf16.mxu0 %v1897_v23  ;;  %v2018_v23 = vld [vmem:[%s2683_s1 + $0x524] ss:$8 sps:$4 sm:$0xff]  }
  0x53   :  { %1139 = vmatpush1.bf16.msra.mxu1 %v1892_v24  ;;  %v2055_v24 = vmov 0  }
  0x54   :  { %1221 = vmatpush1.bf16.msra.mxu0 %v1895_v25  ;;  %1140 = vmatprep.subr.bf16.mxu1 %v1900_v26  ;;  %v1974_v25 = vld [vmem:[%s2683_s1 + $0x420] ss:$8 sps:$4 sm:$0xff]  }
  0x55   :  { %1222 = vmatprep.subr.bf16.mxu0 %v1903_v27  ;;  %v2016_v26 = vld [vmem:[%s2683_s1 + $0x520] ss:$8 sps:$4 sm:$0xff]   ;;  %v1979_v27 = vld [vmem:[%s2683_s1 + $0x434] ss:$8 sps:$4 sm:$0xff]  }
  0x57   :  { %1141 = vmatpush1.bf16.msra.mxu1 %v1898_v28  ;;  %v2024_v28 = vld [vmem:[%s2683_s1 + $0x534] ss:$8 sps:$4 sm:$0xff]  }
  0x58   :  { %1223 = vmatpush1.bf16.msra.mxu0 %v1901_v29  ;;  %1142 = vmatprep.subr.bf16.mxu1 %v1906_v30  ;;  %v1977_v29 = vld [vmem:[%s2683_s1 + $0x430] ss:$8 sps:$4 sm:$0xff]  }
  0x59   :  { %1224 = vmatprep.subr.bf16.mxu0 %v1909_v31  ;;  %v2022_v30 = vld [vmem:[%s2683_s1 + $0x530] ss:$8 sps:$4 sm:$0xff]   ;;  %v1982_v31 = vld [vmem:[%s2683_s1 + $0x444] ss:$8 sps:$4 sm:$0xff]  }
  0x5b   :  { %1143 = vmatpush1.bf16.msra.mxu1 %v1904_v34  ;;  %v1985_v34 = vld [vmem:[%s2683_s1 + $0x454] ss:$8 sps:$4 sm:$0xff]  }
  0x5c   :  { %1225 = vmatpush1.bf16.msra.mxu0 %v1907_v35  ;;  %1144 = vmatprep.subr.bf16.mxu1 %v1912_v38  ;;  %v1983_v35 = vld [vmem:[%s2683_s1 + $0x450] ss:$8 sps:$4 sm:$0xff]   ;;  %v1991_v38 = vld [vmem:[%s2683_s1 + $0x474] ss:$8 sps:$4 sm:$0xff]  }
  0x5d   :  { %1226 = vmatprep.subr.bf16.mxu0 %v1915_v39  ;;  %v1989_v39 = vld [vmem:[%s2683_s1 + $0x470] ss:$8 sps:$4 sm:$0xff]  }
  0x5f   :  { %1145 = vmatpush1.bf16.msra.mxu1 %v1910_v40  ;;  %v1994_v40 = vld [vmem:[%s2683_s1 + $0x484] ss:$8 sps:$4 sm:$0xff]  }
  0x60   :  { %1227 = vmatpush1.bf16.msra.mxu0 %v1913_v41  ;;  %1146 = vmatprep.subr.bf16.mxu1 %v1918_v42  ;;  %v1992_v41 = vld [vmem:[%s2683_s1 + $0x480] ss:$8 sps:$4 sm:$0xff]   ;;  %v1997_v42 = vld [vmem:[%s2683_s1 + $0x494] ss:$8 sps:$4 sm:$0xff]  }
  0x61   :  { %1228 = vmatprep.subr.bf16.mxu0 %v1921_v43  ;;  %v1995_v43 = vld [vmem:[%s2683_s1 + $0x490] ss:$8 sps:$4 sm:$0xff]  }
  0x63   :  { %1147 = vmatpush1.bf16.msra.mxu1 %v1916_v44  ;;  %v2000_v44 = vld [vmem:[%s2683_s1 + $0x4a4] ss:$8 sps:$4 sm:$0xff]  }
  0x64   :  { %1229 = vmatpush1.bf16.msra.mxu0 %v1919_v45  ;;  %1148 = vmatprep.subr.bf16.mxu1 %v1924_v46  ;;  %v1998_v45 = vld [vmem:[%s2683_s1 + $0x4a0] ss:$8 sps:$4 sm:$0xff]   ;;  %v2003_v46 = vld [vmem:[%s2683_s1 + $0x4b4] ss:$8 sps:$4 sm:$0xff]  }
  0x65   :  { %1230 = vmatprep.subr.bf16.mxu0 %v1927_v47  ;;  %v2001_v47 = vld [vmem:[%s2683_s1 + $0x4b0] ss:$8 sps:$4 sm:$0xff]  }
  0x67   :  { %1149 = vmatpush1.bf16.msra.mxu1 %v1922_v48  ;;  %v2009_v48 = vld [vmem:[%s2683_s1 + $0x4c4] ss:$8 sps:$4 sm:$0xff]  }
  0x68   :  { %1231 = vmatpush1.bf16.msra.mxu0 %v1925_v49  ;;  %1150 = vmatprep.subr.bf16.mxu1 %v1930_v50  ;;  %v2007_v49 = vld [vmem:[%s2683_s1 + $0x4c0] ss:$8 sps:$4 sm:$0xff]   ;;  %v2015_v50 = vld [vmem:[%s2683_s1 + $0x4d4] ss:$8 sps:$4 sm:$0xff]  }
  0x69   :  { %1232 = vmatprep.subr.bf16.mxu0 %v1933_v51  ;;  %v2013_v51 = vld [vmem:[%s2683_s1 + $0x4d0] ss:$8 sps:$4 sm:$0xff]  }
  0x6b   :  { %1151 = vmatpush1.bf16.msra.mxu1 %v1928_v52  ;;  %v2021_v52 = vld [vmem:[%s2683_s1 + $0x4e4] ss:$8 sps:$4 sm:$0xff]  }
  0x6c   :  { %1233 = vmatpush1.bf16.msra.mxu0 %v1931_v53  ;;  %1152 = vmatprep.subr.bf16.mxu1 %v1936_v54  ;;  %v2019_v53 = vld [vmem:[%s2683_s1 + $0x4e0] ss:$8 sps:$4 sm:$0xff]   ;;  %v2027_v54 = vld [vmem:[%s2683_s1 + $0x4f4] ss:$8 sps:$4 sm:$0xff]  }
  0x6d   :  { %1234 = vmatprep.subr.bf16.mxu0 %v1939_v55  ;;  %v2025_v55 = vld [vmem:[%s2683_s1 + $0x4f0] ss:$8 sps:$4 sm:$0xff]  }
  0x6f   :  { %1153 = vmatpush1.bf16.msra.mxu1 %v1934_v56  ;;  %v1538_v56 = vcombine.low %v2503_v14, %v2503_v14 }
  0x70   :  { %1235 = vmatpush1.bf16.msra.mxu0 %v1937_v57  ;;  %1154 = vmatprep.subr.bf16.mxu1 %v1942_v58  ;;  %v2031_v57 = vld [vmem:[%s2685_s3 + $0x40] sm:$0xff]  }
  0x71   :  { %1236 = vmatprep.subr.bf16.mxu0 %v1945_v59  ;;  %v2032_v58 = vld [vmem:[%s2685_s3] sm:$0xff]   ;;  %v2033_v59 = vld [vmem:[%s2685_s3 + $0x48] sm:$0xff]  }
  0x73   :  { %1155 = vmatpush1.bf16.msra.mxu1 %v1940_v60  ;;  %v2034_v60 = vld [vmem:[%s2685_s3 + $0x8] sm:$0xff]  }
  0x74   :  { %1237 = vmatpush1.bf16.msra.mxu0 %v1943_v61  ;;  %1156 = vmatprep.subr.bf16.mxu1 %v1948_v62  ;;  %v2035_v61 = vld [vmem:[%s2685_s3 + $0x50] sm:$0xff]  }
  0x75   :  { %1238 = vmatprep.subr.bf16.mxu0 %v1951_v63  ;;  %v2036_v62 = vld [vmem:[%s2685_s3 + $0x10] sm:$0xff]   ;;  %v2037_v63 = vld [vmem:[%s2685_s3 + $0x58] sm:$0xff]  }
  0x77   :  { %1157 = vmatpush1.bf16.msra.mxu1 %v1946_v0  ;;  %v2038_v0 = vld [vmem:[%s2685_s3 + $0x18] sm:$0xff]  }
  0x78   :  { %1239 = vmatpush1.bf16.msra.mxu0 %v1949_v1  ;;  %1158 = vmatprep.subr.bf16.mxu1 %v1954_v2  ;;  %v2039_v1 = vld [vmem:[%s2685_s3 + $0x60] sm:$0xff]  }
  0x79   :  { %1240 = vmatprep.subr.bf16.mxu0 %v1957_v3  ;;  %v2040_v2 = vld [vmem:[%s2685_s3 + $0x20] sm:$0xff]   ;;  %v2041_v3 = vld [vmem:[%s2685_s3 + $0x68] sm:$0xff]  }
  0x7b   :  { %1159 = vmatpush1.bf16.msra.mxu1 %v1952_v4  ;;  %v2042_v4 = vld [vmem:[%s2685_s3 + $0x28] sm:$0xff]  }
  0x7c   :  { %1241 = vmatpush1.bf16.msra.mxu0 %v1955_v5  ;;  %1160 = vmatprep.subr.bf16.mxu1 %v1960_v6  ;;  %v2043_v5 = vld [vmem:[%s2685_s3 + $0x70] sm:$0xff]  }
  0x7d   :  { %1242 = vmatprep.subr.bf16.mxu0 %v1963_v7  ;;  %v2044_v6 = vld [vmem:[%s2685_s3 + $0x30] sm:$0xff]   ;;  %v2045_v7 = vld [vmem:[%s2685_s3 + $0x78] sm:$0xff]  }
  0x7f   :  { %1161 = vmatpush1.bf16.msra.mxu1 %v1958_v8  ;;  %v2046_v8 = vld [vmem:[%s2685_s3 + $0x38] sm:$0xff]  }
  0x80   :  { %1243 = vmatpush1.bf16.msra.mxu0 %v1961_v9  ;;  %1294 = vmatprep.subr.bf16.mxu1 %v2006_v11 }
  0x81   :  { %1253 = vmatprep.subr.bf16.mxu0 %v1970_v10 }
  0x82   :  { %1163 = vmatmul.mubr.bf16.vlgmr.msra.gmra.mrb[0].mxu1 %v1532_v12 }
  0x83   :  { %1245 = vmatmul.mubr.bf16.vlgmr.msra.gmra.mrb[0].mxu0 %v1536_v13  ;;  %1295 = vmatpush1.bf16.msra.mxu1 %v2004_v16 }
  0x84   :  { %1254 = vmatpush1.bf16.msra.mxu0 %v1968_v15  ;;  %1296 = vmatprep.subr.bf16.mxu1 %v2012_v18 }
  0x85   :  { %1255 = vmatprep.subr.bf16.mxu0 %v1973_v17  ;;  %1326 = vmatprep.mubr.bf16.mxu1 %v2055_v24  ;;  %v197_v17 = vlaneseq }
  0x86   :  { %1285 = vmatprep.mubr.bf16.mxu0 %v1539_v19 }
  0x87   :  { %1297 = vmatpush1.bf16.msra.mxu1 %v2010_v21  ;;  %v198_v18 = vshrl.u32 %v197_v17, 7 }
  0x88   :  { %1256 = vmatpush1.bf16.msra.mxu0 %v1971_v20  ;;  %1298 = vmatprep.subr.bf16.mxu1 %v2018_v23  ;;  %v195_v20 = vld [vmem:[%s2686_s2] sm:$0x3] }
  0x89   :  { %1257 = vmatprep.subr.bf16.mxu0 %v1976_v22  ;;  %v199_v19 = vsub.s32 0, %v198_v18  ;;  %v203_v21 = vsub.s32 1, %v198_v18 }
  0x8b   :  { %1299 = vmatpush1.bf16.msra.mxu1 %v2016_v26  ;;  %v200_v22 = vrot.slane %v195_v20, %v199_v19  ;;  %v204_v23 = vrot.slane %v195_v20, %v203_v21 }
  0x8c   :  { %1258 = vmatpush1.bf16.msra.mxu0 %v1974_v25  ;;  %1300 = vmatprep.subr.bf16.mxu1 %v2024_v28 }
  0x8d   :  { %1259 = vmatprep.subr.bf16.mxu0 %v1979_v27 }
  0x8f   :  { %1301 = vmatpush1.bf16.msra.mxu1 %v2022_v30 }
  0x90   :  { %1260 = vmatpush1.bf16.msra.mxu0 %v1977_v29  ;;  %1727 = vmatprep.subr.bf16.mxu1 %v2031_v57 }
  0x91   :  { %1261 = vmatprep.subr.bf16.mxu0 %v1982_v31 }
  0x92   :  { %1709 = vmatmul.mubr.msk.bf16.vlgmr.msra.gmra.mrb[4].mxu1 %vm1085_vm0, %v2030_v32 }
  0x93   :  { %1728 = vmatpush3.bf16.msra.mxu1 %v2032_v58 }
  0x94   :  { %1262 = vmatpush1.bf16.msra.mxu0 %v1980_v33  ;;  %1729 = vmatprep.subr.bf16.mxu1 %v2033_v59 }
  0x95   :  { %1263 = vmatprep.subr.bf16.mxu0 %v1985_v34 }
  0x97   :  { %1730 = vmatpush3.bf16.msra.mxu1 %v2034_v60 }
  0x98   :  { %1264 = vmatpush1.bf16.msra.mxu0 %v1983_v35  ;;  %1731 = vmatprep.subr.bf16.mxu1 %v2035_v61 }
  0x99   :  { %1265 = vmatprep.subr.bf16.mxu0 %v1988_v36 }
  0x9b   :  { %1732 = vmatpush3.bf16.msra.mxu1 %v2036_v62 }
  0x9c   :  { %1266 = vmatpush1.bf16.msra.mxu0 %v1986_v37  ;;  %1733 = vmatprep.subr.bf16.mxu1 %v2037_v63 }
  0x9d   :  { %1267 = vmatprep.subr.bf16.mxu0 %v1991_v38 }
  0x9f   :  { %1734 = vmatpush3.bf16.msra.mxu1 %v2038_v0 }
  0xa0   :  { %1268 = vmatpush1.bf16.msra.mxu0 %v1989_v39  ;;  %1735 = vmatprep.subr.bf16.mxu1 %v2039_v1 }
  0xa1   :  { %1269 = vmatprep.subr.bf16.mxu0 %v1994_v40 }
  0xa3   :  { %1736 = vmatpush3.bf16.msra.mxu1 %v2040_v2 }
  0xa4   :  { %1270 = vmatpush1.bf16.msra.mxu0 %v1992_v41  ;;  %1737 = vmatprep.subr.bf16.mxu1 %v2041_v3 }
  0xa5   :  { %1271 = vmatprep.subr.bf16.mxu0 %v1997_v42 }
  0xa7   :  { %1738 = vmatpush3.bf16.msra.mxu1 %v2042_v4 }
  0xa8   :  { %1272 = vmatpush1.bf16.msra.mxu0 %v1995_v43  ;;  %1739 = vmatprep.subr.bf16.mxu1 %v2043_v5 }
  0xa9   :  { %1273 = vmatprep.subr.bf16.mxu0 %v2000_v44 }
  0xab   :  { %1740 = vmatpush3.bf16.msra.mxu1 %v2044_v6 }
  0xac   :  { %1274 = vmatpush1.bf16.msra.mxu0 %v1998_v45  ;;  %1741 = vmatprep.subr.bf16.mxu1 %v2045_v7 }
  0xad   :  { %1275 = vmatprep.subr.bf16.mxu0 %v2003_v46 }
  0xaf   :  { %1742 = vmatpush3.bf16.msra.mxu1 %v2046_v8 }
  0xb0   :  { %1276 = vmatpush1.bf16.msra.mxu0 %v2001_v47  ;;  %v1710_v47 = vld [vmem:[%s2687_s4] ss:$0 sm:$0xff] }
  0xb1   :  { %1277 = vmatprep.subr.bf16.mxu0 %v2009_v48 }
  0xb4   :  { %1278 = vmatpush1.bf16.msra.mxu0 %v2007_v49 }
  0xb5   :  { %1279 = vmatprep.subr.bf16.mxu0 %v2015_v50 }
  0xb8   :  { %1280 = vmatpush1.bf16.msra.mxu0 %v2013_v51 }
  0xb9   :  { %1281 = vmatprep.subr.bf16.mxu0 %v2021_v52 }
  0xbc   :  { %1282 = vmatpush1.bf16.msra.mxu0 %v2019_v53 }
  0xbd   :  { %1283 = vmatprep.subr.bf16.mxu0 %v2027_v54 }
  0xc0   :  { %1284 = vmatpush1.bf16.msra.mxu0 %v2025_v55 }
  0xc3   :  { %1286 = vmatmul.mubr.bf16.vlgmr.msra.gmra.mrb[0].mxu0 %v1538_v56 }
 0x155   :  { %v1164_v9 = vpop.f32.mrb[0].mxu1 }
 0x156   :  { %v1166_v10 = vpop.f32.mrb[1].mxu1  ;;  %v1749_v24 = vadd.f32 %v1164_v9, %v200_v22 }
 0x157   :  { %v1168_v11 = vpop.f32.mrb[2].mxu1  ;;  %v1752_v25 = vadd.f32 %v1166_v10, %v204_v23 }
 0x158   :  { %v1169_v12 = vpop.f32.mrb[3].mxu1 }
 0x165   :  { %v1328_v13 = vpop.f32.mrb[4].mxu1 }
 0x166   :  { %v1330_v14 = vpop.f32.mrb[5].mxu1 }
 0x167   :  { %v1332_v15 = vpop.f32.mrb[6].mxu1 }
 0x168   :  { %v1333_v16 = vpop.f32.mrb[7].mxu1 }
 0x196   :  { %v1287_v26 = vpop.f32.mrb[0].mxu0 }
 0x197   :  { %v1750_v27 = vadd.f32 %v1749_v24, %v1287_v26  ;;  %v1289_v28 = vpop.f32.mrb[1].mxu0 }
 0x198   :  { %v1753_v29 = vadd.f32 %v1752_v25, %v1289_v28  ;;  %v1291_v30 = vpop.f32.mrb[2].mxu0 }
 0x199   :  { %v1751_v31 = vadd.f32 %v1750_v27, %v1328_v13  ;;  %v1292_v32 = vpop.f32.mrb[3].mxu0 }
 0x19a   :  { %v1754_v33 = vadd.f32 %v1753_v29, %v1330_v14 }
 0x19b   :  { %v1335_v34 = vsub.f32 0.0, %v1751_v31 }
 0x19c   :  { %v1336_v35 = vsub.f32 0.0, %v1754_v33 }
 0x19d   :  { %v1337_v36 = vmul.f32 1.442695, %v1335_v34 }
 0x19e   :  { %v1339_v37 = vmul.f32 1.442695, %v1336_v35 }
 0x19f   :  { %2047 = vpow2.f32 %v1337_v36 }
 0x1a0   :  { %2049 = vpow2.f32 %v1339_v37 }
 0x1a9   :  { %v2048_v38 = vpop.eup %2047 }
 0x1aa   :  { %v2050_v39 = vpop.eup %2049  ;;  %v1341_v40 = vadd.f32 1.0, %v2048_v38 }
 0x1ab   :  { %v1342_v41 = vadd.f32 1.0, %v2050_v39 }
 0x1ac   :  { %2051 = vrcp.f32 %v1341_v40 }
 0x1ad   :  { %2053 = vrcp.f32 %v1342_v41 }
 0x1b6   :  { %v2052_v42 = vpop.eup %2051 }
 0x1b7   :  { %v2054_v43 = vpop.eup %2053  ;;  %v1347_v45 = vpack.c.bf16 %v2052_v42, %v2052_v42 }
 0x1b8   :  { %v1348_v44 = vpack.c.bf16 %v2054_v43, %v2054_v43 }
 0x1ba   :  { %1516 = vmatprep.mubr.bf16.mxu1 %v1348_v44 }
 0x1bb   :  { %1517 = vmatmul.mubr.bf16.vlgmr.msra.gmra.mrb[8].mxu1 %v1347_v45 }
 0x28e   :  { %v1743_v46 = vpop.f32.mrb[8].mxu1 }
 0x28f   :  { %v1744_v48 = vpop.f32.mrb[9].mxu1 }
 0x290   :  { %v1745_v49 = vadd.f32 %v1744_v48, %v1743_v46  ;;  %v1746_v50 = vpop.f32.mrb[10].mxu1 }
 0x291   :  { %v1747_v51 = vpop.f32.mrb[11].mxu1 }
 0x292   :  { %v1519_v52 = vadd.f32 %v1745_v49, %v1710_v47 }
 0x294   :  { %1525 = vst.msk [vmem:[%s2688_s5] sm:$0xff] %vm1524_vm1, %v1519_v52 }

</bundles_post_ra>
